<compile_context>
chip_gen: v7x
topology: tpu7x:2x2x1
jax: 0.10.0
libtpu: 0.0.40
codegen_flags: <defaults>
</compile_context>

<pallas_src>
import jax
import jax.numpy as jnp
from jax import lax
from jax.experimental import pallas as pl
from jax.experimental.pallas import tpu as pltpu


def _round_up(x, m):
    return (x + m - 1) // m * m


def _pick_tiles(B, S, D, emb_itemsize, block_budget_bytes=6 << 20):
    """Pick (batch_tile, seq_tile)."""
    # Batch tile: multiple of 8 rows; aim for >= 2 grid steps (v7x shards the
    # "parallel" axis across its 2 TensorCores) while going up to 256 rows so
    # the pooled (tb,D)x(D,D) projection fills the 256-wide MXU on v6e/v7x.
    # (v5e's MXU is 128-wide; the bigger tile only costs VMEM, budgeted below.)
    if B <= 8:
        tb = 8
    else:
        tb = min(256, _round_up(pl.cdiv(B, 2), 8))
    # Sequence tile: keep the (tb, ts, D) embedding block a few MiB so it
    # double-buffers comfortably under every generation's scoped-VMEM defaults
    # (16 MiB v5e / 32 MiB v6e,v7x) and v7x's 64 MiB physical VMEM.
    row_bytes = tb * D * emb_itemsize
    ts_budget = max(8, block_budget_bytes // row_bytes)
    if S <= ts_budget:
        ts = S
    else:
        # Multiple of 128 keeps the 2-D (tb, ts) mask block lane-aligned.
        ts = max(128, (ts_budget // 128) * 128)
        ts = min(ts, S)
    return tb, ts


def _vmem_limit_bytes(tb, ts, D, emb_itemsize, mask_itemsize, w_buffers):
    """Scoped-VMEM request derived from the (layout-padded) block footprint."""
    emb_blk = tb * _round_up(ts, 8) * _round_up(D, 128) * emb_itemsize
    mask_blk = _round_up(tb, 8) * _round_up(ts, 128) * mask_itemsize
    w_blk = _round_up(D, 8) * _round_up(D, 128) * 2          # bf16 weight
    b_blk = 8 * _round_up(D, 128) * 4
    out_blk = _round_up(tb, 8) * _round_up(D, 128) * 4
    scratch = _round_up(tb, 8) * _round_up(D, 128) * 4 + _round_up(tb, 8) * 128 * 4
    total = (2 * (emb_blk + mask_blk)          # double-buffered streamed inputs
             + w_buffers * w_blk + 2 * b_blk
             + 2 * out_blk + scratch)
    total = int(total * 1.5) + (2 << 20)       # headroom for compiler scratch
    return max(32 << 20, min(total, 64 << 20))


def _build_call(B, S, D, emb_dtype, mask_dtype, tb, ts, single_buffer_params):
    n_b = pl.cdiv(B, tb)
    n_s = pl.cdiv(S, ts)
    ragged_s = (S % ts) != 0

    def kernel(emb_ref, mask_ref, w_ref, b_ref, out_ref, xsum_ref, msum_ref):
        s_idx = pl.program_id(1)

        @pl.when(s_idx == 0)
        def _init():
            xsum_ref[...] = jnp.zeros_like(xsum_ref)
            msum_ref[...] = jnp.zeros_like(msum_ref)

        # Up-cast on-chip (v5e has no bf16 VPU; v6e/v7x still accumulate f32).
        x = emb_ref[...].astype(jnp.float32)            # (tb, ts, D)
        m = mask_ref[...].astype(jnp.float32)           # (tb, ts)
        if ragged_s:
            # Last seq tile overhangs S: zero out-of-bounds contributions so
            # stale VMEM garbage cannot leak into valid rows.
            tok = s_idx * ts + lax.broadcasted_iota(jnp.int32, (tb, ts), 1)
            valid = tok < S
            m = jnp.where(valid, m, 0.0)
            x = jnp.where(valid[:, :, None], x, 0.0)

        xsum_ref[...] += jnp.sum(x * m[:, :, None], axis=1)        # (tb, D)
        msum_ref[...] += jnp.sum(m, axis=1, keepdims=True)         # (tb, 1)

        @pl.when(s_idx == n_s - 1)
        def _finalize():
            msum = msum_ref[...]                                   # (tb, 1)
            inv = 1.0 / jnp.maximum(msum, 1e-9)                    # torch.clamp(min=1e-9)
            pooled_x = xsum_ref[...] * inv                         # (tb, D)
            # Pool-first, then project (affine => exact, incl. fully-masked rows).
            proj = jnp.dot(pooled_x.astype(jnp.bfloat16), w_ref[...],
                           preferred_element_type=jnp.float32)     # MXU, f32 acc
            pooled = proj + b_ref[...] * (msum * inv)
            # F.normalize(p=2, dim=1): x / max(||x||, 1e-12)
            sumsq = jnp.sum(pooled * pooled, axis=1, keepdims=True)
            inv_norm = lax.rsqrt(jnp.maximum(sumsq, 1e-24))        # EUP slot
            out_ref[...] = (pooled * inv_norm).astype(out_ref.dtype)

    # Grid-invariant params: multi-buffering buys nothing for a constant
    # index_map; single-buffering frees VMEM (critical at llama-class D=4096+).
    wb_kwargs = dict(pipeline_mode=pl.Buffered(1)) if single_buffer_params else {}

    vmem_limit = _vmem_limit_bytes(tb, ts, D,
                                   jnp.dtype(emb_dtype).itemsize,
                                   jnp.dtype(mask_dtype).itemsize,
                                   w_buffers=1 if single_buffer_params else 2)

    return pl.pallas_call(
        kernel,
        out_shape=jax.ShapeDtypeStruct((B, D), jnp.float32),
        grid_spec=pltpu.PrefetchScalarGridSpec(
            num_scalar_prefetch=0,
            grid=(n_b, n_s),                           # reduction (seq) axis last
            in_specs=[
                pl.BlockSpec((tb, ts, D), lambda i, s: (i, s, 0)),        # embeddings
                pl.BlockSpec((tb, ts), lambda i, s: (i, s)),              # mask (lane-dense)
                pl.BlockSpec((D, D), lambda i, s: (0, 0), **wb_kwargs),   # weight (invariant)
                pl.BlockSpec((1, D), lambda i, s: (0, 0), **wb_kwargs),   # bias (invariant)
            ],
            out_specs=pl.BlockSpec((tb, D), lambda i, s: (i, 0)),
            scratch_shapes=[
                pltpu.VMEM((tb, D), jnp.float32),      # running sum(x * m)
                pltpu.VMEM((tb, 1), jnp.float32),      # running sum(m)
            ],
        ),
        compiler_params=pltpu.CompilerParams(
            dimension_semantics=("parallel", "arbitrary"),
            vmem_limit_bytes=vmem_limit,
        ),
    )


def llm_pool_project_forward(emb, mask, w, b):
    """emb: (B,S,D) last hidden states (bf16 preferred: half the HBM bytes),
    mask: (B,S), w: (D,D) projection weight (pre-cast to bf16 & cached by the
    caller), b: (D,).  Returns (B, D) f32 unit-norm embeddings."""
    B, S, D = emb.shape
    assert mask.shape == (B, S)

    if w.dtype != jnp.bfloat16:
        # TODO(synk): callers should cast/cache the bf16 weight once outside
        # the per-call path; this fallback cast costs an extra HBM pass.
        w = w.astype(jnp.bfloat16)
    b2 = jnp.asarray(b, jnp.float32).reshape(1, D)
    if mask.dtype == jnp.bool_:
        mask = mask.astype(jnp.int32)

    # Micro-batch only: pad a handful of rows so the MXU matmul and the 2-D
    # output/mask blocks get 8-row tiles.  For B >= 8 nothing is ever padded;
    # a ragged last batch tile relies on Pallas' masked boundary stores.
    B_eff = B
    if B < 8:
        pad = 8 - B
        emb = jnp.pad(emb, ((0, pad), (0, 0), (0, 0)))
        mask = jnp.pad(mask, ((0, pad), (0, 0)))
        B_eff = 8

    tb, ts = _pick_tiles(B_eff, S, D, jnp.dtype(emb.dtype).itemsize)

    try:
        call = _build_call(B_eff, S, D, emb.dtype, mask.dtype, tb, ts,
                           single_buffer_params=True)
        out = call(emb, mask, w, b2)
    except Exception:
        # Fallback if this JAX build rejects pipeline_mode on pallas_call specs.
        call = _build_call(B_eff, S, D, emb.dtype, mask.dtype, tb, ts,
                           single_buffer_params=False)
        out = call(emb, mask, w, b2)
    return out[:B] if B_eff != B else out


def _reference(emb_f32, mask, w, b):
    """Pure-JAX f32 reference mirroring PyTorch: project every token (backbone
    stand-in), then mean_pooling, then F.normalize(p=2, dim=1)."""
    h = jnp.einsum("bsd,de->bse", emb_f32, w) + b[None, None, :]
    m = mask[..., None].astype(jnp.float32)
    pooled = jnp.sum(h * m, axis=1) / jnp.clip(jnp.sum(m, axis=1), 1e-9)
    nrm = jnp.maximum(jnp.linalg.norm(pooled, axis=1, keepdims=True), 1e-12)
    return pooled / nrm


if __name__ == "__main__":
    # Small shapes consistent with the forward: batch=2, seq=8, hidden=768
    # (768 matches LLM_DIM_DICT['BERT'] and is lane-friendly: 6*128).
    B, S, D = 2, 8, 768
    VOCAB = 128

    key = jax.random.PRNGKey(0)
    k_ids, k_tab, k_w, k_b = jax.random.split(key, 4)

    # Deterministic synthetic "tokenized text".
    input_ids = jax.random.randint(k_ids, (B, S), 0, VOCAB, dtype=jnp.int32)
    # attention mask: first row fully attended, second row last 3 tokens padded.
    attention_mask = jnp.array([[1] * S, [1] * (S - 3) + [0] * 3], dtype=jnp.float32)

    # Deterministic synthetic backbone parameters.  Hidden states of a real
    # (bf16) backbone would be bf16 -> keep the table/hidden states bf16 so the
    # kernel's dominant HBM stream is half-width.
    embed_table = (jax.random.normal(k_tab, (VOCAB, D), dtype=jnp.float32)
                   * 0.02).astype(jnp.bfloat16)
    w = jax.random.normal(k_w, (D, D), dtype=jnp.float32) * (1.0 / jnp.sqrt(D))
    b = jax.random.normal(k_b, (D,), dtype=jnp.float32) * 0.01
    w_bf16 = w.astype(jnp.bfloat16)            # cast once, outside the per-call path

    # Glue (embedding gather) stays in plain JAX.
    token_embeddings = embed_table[input_ids]  # (B, S, D) bf16 "last hidden states"

    out = llm_pool_project_forward(token_embeddings, attention_mask, w_bf16, b)
    out = jax.block_until_ready(out)

    ref = _reference(token_embeddings.astype(jnp.float32), attention_mask, w, b)
    assert out.shape == (B, D)
    # Tolerance relaxed because the kernel runs the projection in bf16
    # (f32 accumulation); pooling / normalize are f32.
    assert jnp.allclose(out, ref, atol=1e-2, rtol=1e-2), "mismatch vs reference"
    # Output rows are unit-norm (F.normalize semantics).
    assert jnp.allclose(jnp.linalg.norm(out, axis=1), 1.0, atol=1e-4)

    print("KERNEL_OK")
</pallas_src>

<mosaic_0001>
module attributes {stable_mosaic.version = 11 : i64} {
  func.func @kernel(%arg0: i32, %arg1: i32, %arg2: memref<8x8x768xbf16, #tpu.memory_space<vmem>>, %arg3: memref<8x8xf32, #tpu.memory_space<vmem>>, %arg4: memref<768x768xbf16, #tpu.memory_space<vmem>>, %arg5: memref<1x768xf32, #tpu.memory_space<vmem>>, %arg6: memref<8x768xf32, #tpu.memory_space<vmem>>, %arg7: memref<8x768xf32, #tpu.memory_space<vmem>>, %arg8: memref<8x1xf32, #tpu.memory_space<vmem>>) attributes {dimension_semantics = [#tpu.dimension_semantics<parallel>, #tpu.dimension_semantics<arbitrary>], iteration_bounds = array<i64: 1, 1>, scalar_prefetch = 0 : i64, scratch_operands = 2 : i64, tpu.core_type = #tpu.core_type<tc>, window_params = [{transform_indices = @transform_0, window_bounds = array<i64: 8, 8, 768>}, {transform_indices = @transform_1, window_bounds = array<i64: 8, 8>}, {pipeline_mode = #tpu.pipeline_mode<synchronous>, transform_indices = @transform_2, window_bounds = array<i64: 768, 768>}, {pipeline_mode = #tpu.pipeline_mode<synchronous>, transform_indices = @transform_3, window_bounds = array<i64: 1, 768>}, {transform_indices = @transform_4, window_bounds = array<i64: 8, 768>}]} {
    %c0_i32 = arith.constant 0 : i32
    %0 = arith.cmpi eq, %arg1, %c0_i32 : i32
    %1 = arith.extui %0 : i1 to i32
    %c0_i32_0 = arith.constant 0 : i32
    %2 = arith.cmpi ne, %1, %c0_i32_0 : i32
    scf.if %2 {
      %cst_16 = arith.constant 0.000000e+00 : f32
      %21 = vector.broadcast %cst_16 : f32 to vector<8x768xf32>
      %c0_17 = arith.constant 0 : index
      %c0_18 = arith.constant 0 : index
      %22 = vector.load %arg7[%c0_17, %c0_18] : memref<8x768xf32, #tpu.memory_space<vmem>>, vector<8x768xf32>
      tpu.vector_store %arg7[%c0_17, %c0_18], %21 {strides = array<i32>} : memref<8x768xf32, #tpu.memory_space<vmem>>, vector<8x768xf32>,
      %cst_19 = arith.constant 0.000000e+00 : f32
      %23 = vector.broadcast %cst_19 : f32 to vector<8x1xf32>
      %c0_20 = arith.constant 0 : index
      %c0_21 = arith.constant 0 : index
      %24 = vector.load %arg8[%c0_20, %c0_21] : memref<8x1xf32, #tpu.memory_space<vmem>>, vector<8x1xf32>
      tpu.vector_store %arg8[%c0_20, %c0_21], %23 {strides = array<i32>} : memref<8x1xf32, #tpu.memory_space<vmem>>, vector<8x1xf32>,
    } else {
    }
    %c0 = arith.constant 0 : index
    %c0_1 = arith.constant 0 : index
    %c0_2 = arith.constant 0 : index
    %3 = vector.load %arg2[%c0, %c0_1, %c0_2] : memref<8x8x768xbf16, #tpu.memory_space<vmem>>, vector<8x8x768xbf16>
    %4 = arith.extf %3 : vector<8x8x768xbf16> to vector<8x8x768xf32>
    %c0_3 = arith.constant 0 : index
    %c0_4 = arith.constant 0 : index
    %5 = vector.load %arg3[%c0_3, %c0_4] : memref<8x8xf32, #tpu.memory_space<vmem>>, vector<8x8xf32>
    %c0_5 = arith.constant 0 : index
    %c0_6 = arith.constant 0 : index
    %6 = vector.load %arg7[%c0_5, %c0_6] : memref<8x768xf32, #tpu.memory_space<vmem>>, vector<8x768xf32>
    %7 = vector.shape_cast %5 : vector<8x8xf32> to vector<8x8x1xf32>
    %8 = vector.broadcast %7 : vector<8x8x1xf32> to vector<8x8x768xf32>
    %9 = arith.mulf %4, %8 : vector<8x8x768xf32>
    %cst = arith.constant dense<0.000000e+00> : vector<8x768xf32>
    %10 = vector.multi_reduction <add>, %9, %cst [1] : vector<8x8x768xf32> to vector<8x768xf32>
    %11 = arith.addf %6, %10 : vector<8x768xf32>
    %c0_7 = arith.constant 0 : index
    %c0_8 = arith.constant 0 : index
    %12 = vector.load %arg7[%c0_7, %c0_8] : memref<8x768xf32, #tpu.memory_space<vmem>>, vector<8x768xf32>
    tpu.vector_store %arg7[%c0_7, %c0_8], %11 {strides = array<i32>} : memref<8x768xf32, #tpu.memory_space<vmem>>, vector<8x768xf32>,
    %c0_9 = arith.constant 0 : index
    %c0_10 = arith.constant 0 : index
    %13 = vector.load %arg8[%c0_9, %c0_10] : memref<8x1xf32, #tpu.memory_space<vmem>>, vector<8x1xf32>
    %cst_11 = arith.constant dense<0.000000e+00> : vector<8xf32>
    %14 = vector.multi_reduction <add>, %5, %cst_11 [1] : vector<8x8xf32> to vector<8xf32>
    %15 = vector.shape_cast %14 : vector<8xf32> to vector<8x1xf32>
    %16 = arith.addf %13, %15 : vector<8x1xf32>
    %c0_12 = arith.constant 0 : index
    %c0_13 = arith.constant 0 : index
    %17 = vector.load %arg8[%c0_12, %c0_13] : memref<8x1xf32, #tpu.memory_space<vmem>>, vector<8x1xf32>
    tpu.vector_store %arg8[%c0_12, %c0_13], %16 {strides = array<i32>} : memref<8x1xf32, #tpu.memory_space<vmem>>, vector<8x1xf32>,
    %c0_i32_14 = arith.constant 0 : i32
    %18 = arith.cmpi eq, %arg1, %c0_i32_14 : i32
    %19 = arith.extui %18 : i1 to i32
    %c0_i32_15 = arith.constant 0 : i32
    %20 = arith.cmpi ne, %19, %c0_i32_15 : i32
    scf.if %20 {
      %c0_16 = arith.constant 0 : index
      %c0_17 = arith.constant 0 : index
      %21 = vector.load %arg8[%c0_16, %c0_17] : memref<8x1xf32, #tpu.memory_space<vmem>>, vector<8x1xf32>
      %cst_18 = arith.constant 9.99999971E-10 : f32
      %22 = vector.broadcast %cst_18 : f32 to vector<8x1xf32>
      %23 = arith.maximumf %21, %22 : vector<8x1xf32>
      %cst_19 = arith.constant 1.000000e+00 : f32
      %24 = vector.broadcast %cst_19 : f32 to vector<8x1xf32>
      %25 = arith.divf %24, %23 : vector<8x1xf32>
      %c0_20 = arith.constant 0 : index
      %c0_21 = arith.constant 0 : index
      %26 = vector.load %arg7[%c0_20, %c0_21] : memref<8x768xf32, #tpu.memory_space<vmem>>, vector<8x768xf32>
      %27 = vector.broadcast %25 : vector<8x1xf32> to vector<8x768xf32>
      %28 = arith.mulf %26, %27 : vector<8x768xf32>
      %29 = arith.truncf %28 : vector<8x768xf32> to vector<8x768xbf16>
      %c0_22 = arith.constant 0 : index
      %c0_23 = arith.constant 0 : index
      %30 = vector.load %arg4[%c0_22, %c0_23] : memref<768x768xbf16, #tpu.memory_space<vmem>>, vector<768x768xbf16>
      %cst_24 = arith.constant dense<0.000000e+00> : vector<8x768xf32>
      %31 = tpu.matmul %29, %30, %cst_24 {dimension_numbers = #tpu.dot_dimension_numbers<[1], [0], [0], [1], [0, 0, 1, 1], [], []>} : vector<8x768xbf16>, vector<768x768xbf16>, vector<8x768xf32> -> vector<8x768xf32>
      %c0_25 = arith.constant 0 : index
      %c0_26 = arith.constant 0 : index
      %32 = vector.load %arg5[%c0_25, %c0_26] : memref<1x768xf32, #tpu.memory_space<vmem>>, vector<1x768xf32>
      %33 = arith.mulf %21, %25 : vector<8x1xf32>
      %34 = vector.broadcast %32 : vector<1x768xf32> to vector<8x768xf32>
      %35 = vector.broadcast %33 : vector<8x1xf32> to vector<8x768xf32>
      %36 = arith.mulf %34, %35 : vector<8x768xf32>
      %37 = arith.addf %31, %36 : vector<8x768xf32>
      %38 = arith.mulf %37, %37 : vector<8x768xf32>
      %cst_27 = arith.constant dense<0.000000e+00> : vector<8xf32>
      %39 = vector.multi_reduction <add>, %38, %cst_27 [1] : vector<8x768xf32> to vector<8xf32>
      %40 = vector.shape_cast %39 : vector<8xf32> to vector<8x1xf32>
      %cst_28 = arith.constant 1.000000e-24 : f32
      %41 = vector.broadcast %cst_28 : f32 to vector<8x1xf32>
      %42 = arith.maximumf %40, %41 : vector<8x1xf32>
      %43 = math.rsqrt %42 : vector<8x1xf32>
      %44 = vector.broadcast %43 : vector<8x1xf32> to vector<8x768xf32>
      %45 = arith.mulf %37, %44 : vector<8x768xf32>
      %c0_29 = arith.constant 0 : index
      %c0_30 = arith.constant 0 : index
      %46 = vector.load %arg6[%c0_29, %c0_30] : memref<8x768xf32, #tpu.memory_space<vmem>>, vector<8x768xf32>
      tpu.vector_store %arg6[%c0_29, %c0_30], %45 {strides = array<i32>} : memref<8x768xf32, #tpu.memory_space<vmem>>, vector<8x768xf32>,
    } else {
    }
    return
  }
  func.func @transform_0(%arg0: i32, %arg1: i32) -> (i32, i32, i32) {
    %c0_i32 = arith.constant 0 : i32
    %c0_i32_0 = arith.constant 0 : i32
    return %arg0, %arg1, %c0_i32 : i32, i32, i32
  }
  func.func @transform_1(%arg0: i32, %arg1: i32) -> (i32, i32) {
    %c0_i32 = arith.constant 0 : i32
    return %arg0, %arg1 : i32, i32
  }
  func.func @transform_2(%arg0: i32, %arg1: i32) -> (i32, i32) {
    %c0_i32 = arith.constant 0 : i32
    %c0_i32_0 = arith.constant 0 : i32
    %c0_i32_1 = arith.constant 0 : i32
    return %c0_i32, %c0_i32_0 : i32, i32
  }
  func.func @transform_3(%arg0: i32, %arg1: i32) -> (i32, i32) {
    %c0_i32 = arith.constant 0 : i32
    %c0_i32_0 = arith.constant 0 : i32
    %c0_i32_1 = arith.constant 0 : i32
    return %c0_i32, %c0_i32_0 : i32, i32
  }
  func.func @transform_4(%arg0: i32, %arg1: i32) -> (i32, i32) {
    %c0_i32 = arith.constant 0 : i32
    %c0_i32_0 = arith.constant 0 : i32
    return %arg0, %c0_i32 : i32, i32
  }
}

module attributes {stable_mosaic.version = 11 : i64} {
  func.func @kernel(%arg0: i32, %arg1: i32, %arg2: memref<8x8x768xbf16, #tpu.memory_space<vmem>>, %arg3: memref<8x8xf32, #tpu.memory_space<vmem>>, %arg4: memref<768x768xbf16, #tpu.memory_space<vmem>>, %arg5: memref<1x768xf32, #tpu.memory_space<vmem>>, %arg6: memref<8x768xf32, #tpu.memory_space<vmem>>, %arg7: memref<8x768xf32, #tpu.memory_space<vmem>>, %arg8: memref<8x1xf32, #tpu.memory_space<vmem>>) attributes {dimension_semantics = [#tpu.dimension_semantics<parallel>, #tpu.dimension_semantics<arbitrary>], iteration_bounds = array<i64: 1, 1>, scalar_prefetch = 0 : i64, scratch_operands = 2 : i64, tpu.core_type = #tpu.core_type<tc>, window_params = [{transform_indices = @transform_0, window_bounds = array<i64: 8, 8, 768>}, {transform_indices = @transform_1, window_bounds = array<i64: 8, 8>}, {pipeline_mode = #tpu.pipeline_mode<synchronous>, transform_indices = @transform_2, window_bounds = array<i64: 768, 768>}, {pipeline_mode = #tpu.pipeline_mode<synchronous>, transform_indices = @transform_3, window_bounds = array<i64: 1, 768>}, {transform_indices = @transform_4, window_bounds = array<i64: 8, 768>}]} {
    %c0_i32 = arith.constant 0 : i32
    %0 = arith.cmpi eq, %arg1, %c0_i32 : i32
    %1 = arith.extui %0 : i1 to i32
    %c0_i32_0 = arith.constant 0 : i32
    %2 = arith.cmpi ne, %1, %c0_i32_0 : i32
    scf.if %2 {
      %cst_16 = arith.constant 0.000000e+00 : f32
      %21 = vector.broadcast %cst_16 : f32 to vector<8x768xf32>
      %c0_17 = arith.constant 0 : index
      %c0_18 = arith.constant 0 : index
      %22 = vector.load %arg7[%c0_17, %c0_18] : memref<8x768xf32, #tpu.memory_space<vmem>>, vector<8x768xf32>
      tpu.vector_store %arg7[%c0_17, %c0_18], %21 {strides = array<i32>} : memref<8x768xf32, #tpu.memory_space<vmem>>, vector<8x768xf32>,
      %cst_19 = arith.constant 0.000000e+00 : f32
      %23 = vector.broadcast %cst_19 : f32 to vector<8x1xf32>
      %c0_20 = arith.constant 0 : index
      %c0_21 = arith.constant 0 : index
      %24 = vector.load %arg8[%c0_20, %c0_21] : memref<8x1xf32, #tpu.memory_space<vmem>>, vector<8x1xf32>
      tpu.vector_store %arg8[%c0_20, %c0_21], %23 {strides = array<i32>} : memref<8x1xf32, #tpu.memory_space<vmem>>, vector<8x1xf32>,
    } else {
    }
    %c0 = arith.constant 0 : index
    %c0_1 = arith.constant 0 : index
    %c0_2 = arith.constant 0 : index
    %3 = vector.load %arg2[%c0, %c0_1, %c0_2] : memref<8x8x768xbf16, #tpu.memory_space<vmem>>, vector<8x8x768xbf16>
    %4 = arith.extf %3 : vector<8x8x768xbf16> to vector<8x8x768xf32>
    %c0_3 = arith.constant 0 : index
    %c0_4 = arith.constant 0 : index
    %5 = vector.load %arg3[%c0_3, %c0_4] : memref<8x8xf32, #tpu.memory_space<vmem>>, vector<8x8xf32>
    %c0_5 = arith.constant 0 : index
    %c0_6 = arith.constant 0 : index
    %6 = vector.load %arg7[%c0_5, %c0_6] : memref<8x768xf32, #tpu.memory_space<vmem>>, vector<8x768xf32>
    %7 = vector.shape_cast %5 : vector<8x8xf32> to vector<8x8x1xf32>
    %8 = vector.broadcast %7 : vector<8x8x1xf32> to vector<8x8x768xf32>
    %9 = arith.mulf %4, %8 : vector<8x8x768xf32>
    %cst = arith.constant dense<0.000000e+00> : vector<8x768xf32>
    %10 = vector.multi_reduction <add>, %9, %cst [1] : vector<8x8x768xf32> to vector<8x768xf32>
    %11 = arith.addf %6, %10 : vector<8x768xf32>
    %c0_7 = arith.constant 0 : index
    %c0_8 = arith.constant 0 : index
    %12 = vector.load %arg7[%c0_7, %c0_8] : memref<8x768xf32, #tpu.memory_space<vmem>>, vector<8x768xf32>
    tpu.vector_store %arg7[%c0_7, %c0_8], %11 {strides = array<i32>} : memref<8x768xf32, #tpu.memory_space<vmem>>, vector<8x768xf32>,
    %c0_9 = arith.constant 0 : index
    %c0_10 = arith.constant 0 : index
    %13 = vector.load %arg8[%c0_9, %c0_10] : memref<8x1xf32, #tpu.memory_space<vmem>>, vector<8x1xf32>
    %cst_11 = arith.constant dense<0.000000e+00> : vector<8xf32>
    %14 = vector.multi_reduction <add>, %5, %cst_11 [1] : vector<8x8xf32> to vector<8xf32>
    %15 = vector.shape_cast %14 : vector<8xf32> to vector<8x1xf32>
    %16 = arith.addf %13, %15 : vector<8x1xf32>
    %c0_12 = arith.constant 0 : index
    %c0_13 = arith.constant 0 : index
    %17 = vector.load %arg8[%c0_12, %c0_13] : memref<8x1xf32, #tpu.memory_space<vmem>>, vector<8x1xf32>
    tpu.vector_store %arg8[%c0_12, %c0_13], %16 {strides = array<i32>} : memref<8x1xf32, #tpu.memory_space<vmem>>, vector<8x1xf32>,
    %c0_i32_14 = arith.constant 0 : i32
    %18 = arith.cmpi eq, %arg1, %c0_i32_14 : i32
    %19 = arith.extui %18 : i1 to i32
    %c0_i32_15 = arith.constant 0 : i32
    %20 = arith.cmpi ne, %19, %c0_i32_15 : i32
    scf.if %20 {
      %c0_16 = arith.constant 0 : index
      %c0_17 = arith.constant 0 : index
      %21 = vector.load %arg8[%c0_16, %c0_17] : memref<8x1xf32, #tpu.memory_space<vmem>>, vector<8x1xf32>
      %cst_18 = arith.constant 9.99999971E-10 : f32
      %22 = vector.broadcast %cst_18 : f32 to vector<8x1xf32>
      %23 = arith.maximumf %21, %22 : vector<8x1xf32>
      %cst_19 = arith.constant 1.000000e+00 : f32
      %24 = vector.broadcast %cst_19 : f32 to vector<8x1xf32>
      %25 = arith.divf %24, %23 : vector<8x1xf32>
      %c0_20 = arith.constant 0 : index
      %c0_21 = arith.constant 0 : index
      %26 = vector.load %arg7[%c0_20, %c0_21] : memref<8x768xf32, #tpu.memory_space<vmem>>, vector<8x768xf32>
      %27 = vector.broadcast %25 : vector<8x1xf32> to vector<8x768xf32>
      %28 = arith.mulf %26, %27 : vector<8x768xf32>
      %29 = arith.truncf %28 : vector<8x768xf32> to vector<8x768xbf16>
      %c0_22 = arith.constant 0 : index
      %c0_23 = arith.constant 0 : index
      %30 = vector.load %arg4[%c0_22, %c0_23] : memref<768x768xbf16, #tpu.memory_space<vmem>>, vector<768x768xbf16>
      %cst_24 = arith.constant dense<0.000000e+00> : vector<8x768xf32>
      %31 = tpu.matmul %29, %30, %cst_24 {dimension_numbers = #tpu.dot_dimension_numbers<[1], [0], [0], [1], [0, 0, 1, 1], [], []>} : vector<8x768xbf16>, vector<768x768xbf16>, vector<8x768xf32> -> vector<8x768xf32>
      %c0_25 = arith.constant 0 : index
      %c0_26 = arith.constant 0 : index
      %32 = vector.load %arg5[%c0_25, %c0_26] : memref<1x768xf32, #tpu.memory_space<vmem>>, vector<1x768xf32>
      %33 = arith.mulf %21, %25 : vector<8x1xf32>
      %34 = vector.broadcast %32 : vector<1x768xf32> to vector<8x768xf32>
      %35 = vector.broadcast %33 : vector<8x1xf32> to vector<8x768xf32>
      %36 = arith.mulf %34, %35 : vector<8x768xf32>
      %37 = arith.addf %31, %36 : vector<8x768xf32>
      %38 = arith.mulf %37, %37 : vector<8x768xf32>
      %cst_27 = arith.constant dense<0.000000e+00> : vector<8xf32>
      %39 = vector.multi_reduction <add>, %38, %cst_27 [1] : vector<8x768xf32> to vector<8xf32>
      %40 = vector.shape_cast %39 : vector<8xf32> to vector<8x1xf32>
      %cst_28 = arith.constant 1.000000e-24 : f32
      %41 = vector.broadcast %cst_28 : f32 to vector<8x1xf32>
      %42 = arith.maximumf %40, %41 : vector<8x1xf32>
      %43 = math.rsqrt %42 : vector<8x1xf32>
      %44 = vector.broadcast %43 : vector<8x1xf32> to vector<8x768xf32>
      %45 = arith.mulf %37, %44 : vector<8x768xf32>
      %c0_29 = arith.constant 0 : index
      %c0_30 = arith.constant 0 : index
      %46 = vector.load %arg6[%c0_29, %c0_30] : memref<8x768xf32, #tpu.memory_space<vmem>>, vector<8x768xf32>
      tpu.vector_store %arg6[%c0_29, %c0_30], %45 {strides = array<i32>} : memref<8x768xf32, #tpu.memory_space<vmem>>, vector<8x768xf32>,
    } else {
    }
    return
  }
  func.func @transform_0(%arg0: i32, %arg1: i32) -> (i32, i32, i32) {
    %c0_i32 = arith.constant 0 : i32
    %c0_i32_0 = arith.constant 0 : i32
    return %arg0, %arg1, %c0_i32 : i32, i32, i32
  }
  func.func @transform_1(%arg0: i32, %arg1: i32) -> (i32, i32) {
    %c0_i32 = arith.constant 0 : i32
    return %arg0, %arg1 : i32, i32
  }
  func.func @transform_2(%arg0: i32, %arg1: i32) -> (i32, i32) {
    %c0_i32 = arith.constant 0 : i32
    %c0_i32_0 = arith.constant 0 : i32
    %c0_i32_1 = arith.constant 0 : i32
    return %c0_i32, %c0_i32_0 : i32, i32
  }
  func.func @transform_3(%arg0: i32, %arg1: i32) -> (i32, i32) {
    %c0_i32 = arith.constant 0 : i32
    %c0_i32_0 = arith.constant 0 : i32
    %c0_i32_1 = arith.constant 0 : i32
    return %c0_i32, %c0_i32_0 : i32, i32
  }
  func.func @transform_4(%arg0: i32, %arg1: i32) -> (i32, i32) {
    %c0_i32 = arith.constant 0 : i32
    %c0_i32_0 = arith.constant 0 : i32
    return %arg0, %c0_i32 : i32, i32
  }
}

</mosaic_0001>

<bundles_post_ra>
// kernel: tpu_custom_call.1
= control target key start
LH: loop header
LB: loop body
LE: loop exit
PB: predicated region body
PF: predicated region fallthrough
CT: control target
= control target key end

     0   :  { %9 = vsyncpa [#allocation5], 0  ;;  %s4331_s0 = inlined_call_operand.hbm [shape: bf16[8,8,768], index: 0, kind: input, shape index: {}]   ;;  %s4332_s1 = inlined_call_operand.hbm [shape: f32[8,8], index: 1, kind: input, shape index: {}]   ;;  %s4333_s2 = inlined_call_operand.hbm [shape: bf16[768,768], index: 2, kind: input, shape index: {}]   ;;  %s4334_s3 = inlined_call_operand.hbm [shape: f32[1,768], index: 3, kind: input, shape index: {}]   ;;  %s4335_s4 = inlined_call_operand.hbm [shape: f32[8,768], index: 4, kind: output, shape index: {}]  }
   0x1   :  { %10 = vsyncpa [#allocation8], 0 }
   0x2   :  { %11 = vsyncpa [#allocation11], 0 }
   0x3   :  { %12 = vsyncpa [#allocation6], 0  ;;  %s3771_s15 = smov [#allocation7]   ;;  %s3772_s17 = smov [#allocation4]  }
   0x4   :  { %s31_s16 = sshll.u32 %s3771_s15, 4  ;;  %s18_s18 = sshll.u32 %s3772_s17, 4  ;;  %s32_s16 = int_to_ptr.vmem [resolvable:$true] %s31_s16  ;;  %s3805_s18 = int_to_ptr.vmem [resolvable:$true] %s18_s18 }
   0x5   :  { %s3653_s21 = scalar_lea.hbm %s4332_s1, 128 }
   0x6   :  { %p3654_p0 = scmp.ne.s32.totalorder %s4332_s1, %s3653_s21  ;;  %p3657_p1 = scmp.lt.u32.totalorder %s3653_s21, %s4332_s1 }
   0x8   :  { %p3659_p2 = pnand %p3657_p1, %p3654_p0 }
   0xa   :  { %3662 = shalt.err (!%p3659_p2)
}
   0xb   :  { %s3663_s26 = scalar_lea.vmem %s32_s16, 128  ;;  %p3668_p4 = scmp.lt.s32.totalorder %s32_s16, %s32_s16 }
   0xc   :  { %p3664_p3 = scmp.ne.s32.totalorder %s32_s16, %s3663_s26  ;;  %p3669_p5 = scmp.lt.s32.totalorder %s3663_s26, %s3663_s26 }
   0xe   :  { %p3670_p6 = por %p3669_p5, %p3668_p4 }
  0x10   :  { %p3671_p7 = pnand %p3670_p6, %p3664_p3 }
  0x12   :  { %3674 = shalt.err (!%p3671_p7)
}
  0x13   :  { %34 = dma.hbm_to_vmem [thread:$0]  %s4332_s1, 128, %s32_s16, [#allocation8]  }
  0x14   :  { %s3675_s5 = scalar_lea.hbm %s4331_s0, 3072 }
  0x15   :  { %p3676_p8 = scmp.ne.s32.totalorder %s4331_s0, %s3675_s5  ;;  %p3679_p9 = scmp.lt.u32.totalorder %s3675_s5, %s4331_s0 }
  0x17   :  { %p3681_p10 = pnand %p3679_p9, %p3676_p8 }
  0x19   :  { %3684 = shalt.err (!%p3681_p10)
}
  0x1a   :  { %s3685_s10 = scalar_lea.vmem %s3805_s18, 3072  ;;  %p3690_p12 = scmp.lt.s32.totalorder %s3805_s18, %s3805_s18 }
  0x1b   :  { %p3686_p11 = scmp.ne.s32.totalorder %s3805_s18, %s3685_s10  ;;  %p3691_p13 = scmp.lt.s32.totalorder %s3685_s10, %s3685_s10 }
  0x1d   :  { %p3692_p0 = por %p3691_p13, %p3690_p12 }
  0x1f   :  { %p3693_p1 = pnand %p3692_p0, %p3686_p11 }
  0x21   :  { %3696 = shalt.err (!%p3693_p1)
}
  0x22   :  { %s3773_s1 = smov 384   ;;  %s3774_s11 = smov 24  }
  0x23   :  { %24 = dma.hbm_to_vmem [thread:$0]  %s4331_s0, 3072, %s3805_s18, [#allocation5], %s3773_s1, %s3773_s1, %s3774_s11  }
  0x24   :  { %s3775_s14 = smov [#allocation9]   ;;  %s3776_s16 = smov [#allocation10]  }
  0x25   :  { %s40_s15 = sshll.u32 %s3775_s14, 4  ;;  %s53_s17 = sshll.u32 %s3776_s16, 4  ;;  %s41_s15 = int_to_ptr.vmem [resolvable:$true] %s40_s15  ;;  %s54_s17 = int_to_ptr.vmem [resolvable:$true] %s53_s17 }
  0x26   :  { %s3697_s21 = scalar_lea.hbm %s4333_s2, 36864 }
  0x27   :  { %p3698_p2 = scmp.ne.s32.totalorder %s4333_s2, %s3697_s21  ;;  %p3701_p3 = scmp.lt.u32.totalorder %s3697_s21, %s4333_s2 }
  0x29   :  { %p3703_p4 = pnand %p3701_p3, %p3698_p2 }
  0x2b   :  { %3706 = shalt.err (!%p3703_p4)
}
  0x2c   :  { %s3707_s0 = scalar_lea.vmem %s41_s15, 36864  ;;  %p3712_p6 = scmp.lt.s32.totalorder %s41_s15, %s41_s15 }
  0x2d   :  { %p3708_p5 = scmp.ne.s32.totalorder %s41_s15, %s3707_s0  ;;  %p3713_p7 = scmp.lt.s32.totalorder %s3707_s0, %s3707_s0 }
  0x2f   :  { %p3714_p8 = por %p3713_p7, %p3712_p6 }
  0x31   :  { %p3715_p9 = pnand %p3714_p8, %p3708_p5 }
  0x33   :  { %3718 = shalt.err (!%p3715_p9)
}
  0x34   :  { %46 = dma.hbm_to_vmem [thread:$0]  %s4333_s2, 36864, %s41_s15, [#allocation8], %s3773_s1, %s3773_s1, %s3774_s11  }
  0x35   :  { %s3719_s29 = scalar_lea.hbm %s4334_s3, 96 }
  0x36   :  { %p3720_p10 = scmp.ne.s32.totalorder %s4334_s3, %s3719_s29  ;;  %p3723_p11 = scmp.lt.u32.totalorder %s3719_s29, %s4334_s3 }
  0x38   :  { %p3725_p12 = pnand %p3723_p11, %p3720_p10 }
  0x3a   :  { %3728 = shalt.err (!%p3725_p12)
}
  0x3b   :  { %s3729_s8 = scalar_lea.vmem %s54_s17, 96  ;;  %p3734_p0 = scmp.lt.s32.totalorder %s54_s17, %s54_s17 }
  0x3c   :  { %p3730_p13 = scmp.ne.s32.totalorder %s54_s17, %s3729_s8  ;;  %p3735_p1 = scmp.lt.s32.totalorder %s3729_s8, %s3729_s8 }
  0x3e   :  { %p3736_p2 = por %p3735_p1, %p3734_p0 }
  0x40   :  { %p3737_p3 = pnand %p3736_p2, %p3730_p13 }
  0x42   :  { %3740 = shalt.err (!%p3737_p3)
}
  0x43   :  { %56 = dma.hbm_to_vmem [thread:$0]  %s4334_s3, 96, %s54_s17, [#allocation11]  }
  0x44   :  { %3763 = dma.done.wait [#allocation5], 3072  }
  0x45   :  { %3764 = vsyncadd [#allocation5], 4294964224 }
  0x46   :  { %3765 = dma.done.wait [#allocation8], 36992  }
  0x47   :  { %3766 = vsyncadd [#allocation8], 4294930304 }
  0x48   :  { %3767 = dma.done.wait [#allocation11], 96  }
  0x49   :  { %3768 = vsyncadd [#allocation11], 4294967200  ;;  %v160_v0 = vlaneseq  ;;  %vm79_vm0 = vcmask 7168   ;;  %v3777_v1 = vmov 0.0   ;;  %vm668_vm1 = vcmask 64512   ;;  %v153_v5 = vld [vmem:[#allocation7] sm:$0xff] }
  0x4a   :  { %80 = vst.msk [vmem:[#allocation3] sm:$0xff] %vm79_vm0, %v3777_v1  ;;  %v669_v6 = vsel %vm668_vm1, %v153_v5, 0.0  ;;  %v3778_v19 = vmov 0   ;;  %v3217_v22 = vld [vmem:[#allocation9 + $0x4] ss:$24 sps:$4 sm:$0xff]   ;;  %vm600_vm2 = vcmask 1041409  }
  0x4b   :  { %v3861_v2 = vshrl.u32 %v160_v0, 7  ;;  %670 = vadd.xlane.f32.xlu0 %v669_v6  ;;  %3216 = vset.pattern.permute.xlu1 %v3778_v19  ;;  %v3219_v23 = vld [vmem:[#allocation9 + $0x304] ss:$24 sps:$4 sm:$0xff]   ;;  %v3221_v24 = vld [vmem:[#allocation9] ss:$24 sps:$4 sm:$0xff]   ;;  %vm602_vm3 = vcmask 1042434  }
  0x4c   :  { %3215 = vset.pattern.permute.xlu0 %v3778_v19  ;;  %2477 = vmatprep.subr.bf16.mxu1 %v3217_v22  ;;  %v3222_v25 = vld [vmem:[#allocation9 + $0x300] ss:$24 sps:$4 sm:$0xff]   ;;  %v3223_v26 = vld [vmem:[#allocation9 + $0x34] ss:$24 sps:$4 sm:$0xff]   ;;  %v3227_v28 = vld [vmem:[#allocation9 + $0x30] ss:$24 sps:$4 sm:$0xff]  }
  0x4d   :  { %4349 = vst [vmem:[#allocation17_spill] sm:$0xff] %v3861_v2  ;;  %v4341_v3 = vsub.s32 1, %v3861_v2  ;;  %v4339_v4 = vsub.s32 2, %v3861_v2  ;;  %v4338_v9 = vsub.s32 3, %v3861_v2  ;;  %v4337_v11 = vsub.s32 4, %v3861_v2  ;;  %2518 = vmatprep.subr.bf16.mxu0 %v3219_v23  ;;  %2478 = vmatpush1.bf16.msra.mxu1 %v3221_v24  ;;  %s3779_s3 = smov [#allocation12]  }
  0x4e   :  { %v4336_v13 = vsub.s32 5, %v3861_v2  ;;  %v204_v15 = vsub.s32 6, %v3861_v2  ;;  %v4340_v16 = vsub.s32 0, %v3861_v2  ;;  %v211_v18 = vsub.s32 7, %v3861_v2  ;;  %v3225_v27 = vld [vmem:[#allocation9 + $0x334] ss:$24 sps:$4 sm:$0xff]   ;;  %2519 = vmatpush1.bf16.msra.mxu0 %v3222_v25  ;;  %2479 = vmatprep.subr.bf16.mxu1 %v3223_v26 }
  0x4f   :  { %v170_v7 = vrot.slane %v153_v5, %v4341_v3  ;;  %v177_v8 = vrot.slane %v153_v5, %v4339_v4  ;;  %v184_v10 = vrot.slane %v153_v5, %v4338_v9  ;;  %v191_v12 = vrot.slane %v153_v5, %v4337_v11  ;;  %v3228_v29 = vld [vmem:[#allocation9 + $0x330] ss:$24 sps:$4 sm:$0xff]   ;;  %v3229_v30 = vld [vmem:[#allocation9 + $0x64] ss:$24 sps:$4 sm:$0xff]   ;;  %2520 = vmatprep.subr.bf16.mxu0 %v3225_v27  ;;  %v3233_v32 = vld [vmem:[#allocation9 + $0x60] ss:$24 sps:$4 sm:$0xff]  }
  0x50   :  { %v198_v14 = vrot.slane %v153_v5, %v4336_v13  ;;  %v205_v17 = vrot.slane %v153_v5, %v204_v15  ;;  %v163_v20 = vrot.slane %v153_v5, %v4340_v16  ;;  %v212_v21 = vrot.slane %v153_v5, %v211_v18  ;;  %v3231_v31 = vld [vmem:[#allocation9 + $0x364] ss:$24 sps:$4 sm:$0xff]   ;;  %v3234_v33 = vld [vmem:[#allocation9 + $0x360] ss:$24 sps:$4 sm:$0xff]   ;;  %v3235_v34 = vld [vmem:[#allocation9 + $0x94] ss:$24 sps:$4 sm:$0xff]  }
  0x51   :  { %172 = vbcast.lane.b32.xlu1 %v170_v7, 256  ;;  %2480 = vmatpush1.bf16.msra.mxu1 %v3227_v28  ;;  %v3237_v35 = vld [vmem:[#allocation9 + $0x394] ss:$24 sps:$4 sm:$0xff]   ;;  %v3239_v36 = vld [vmem:[#allocation9 + $0x90] ss:$24 sps:$4 sm:$0xff]   ;;  %v3884_v28 = vld [vmem:[#allocation4 + $0x28] sm:$0xff] }
  0x52   :  { %2521 = vmatpush1.bf16.msra.mxu0 %v3228_v29  ;;  %2481 = vmatprep.subr.bf16.mxu1 %v3229_v30  ;;  %v3240_v37 = vld [vmem:[#allocation9 + $0x390] ss:$24 sps:$4 sm:$0xff]   ;;  %v3241_v38 = vld [vmem:[#allocation9 + $0xc4] ss:$24 sps:$4 sm:$0xff]   ;;  %v3245_v40 = vld [vmem:[#allocation9 + $0xc0] ss:$24 sps:$4 sm:$0xff]   ;;  %v115_v29 = vunpack.c.l.bf16 %v3884_v28 }
  0x53   :  { %2522 = vmatprep.subr.bf16.mxu0 %v3231_v31  ;;  %v3243_v39 = vld [vmem:[#allocation9 + $0x3c4] ss:$24 sps:$4 sm:$0xff]   ;;  %v3246_v41 = vld [vmem:[#allocation9 + $0x3c0] ss:$24 sps:$4 sm:$0xff]   ;;  %v3247_v42 = vld [vmem:[#allocation9 + $0xf4] ss:$24 sps:$4 sm:$0xff]  }
  0x54   :  { %v3249_v43 = vld [vmem:[#allocation9 + $0x3f4] ss:$24 sps:$4 sm:$0xff]   ;;  %v3251_v44 = vld [vmem:[#allocation9 + $0xf0] ss:$24 sps:$4 sm:$0xff]   ;;  %v3253_v46 = vld [vmem:[#allocation9 + $0x124] ss:$24 sps:$4 sm:$0xff]  }
  0x55   :  { %179 = vbcast.lane.b32.xlu1 %v177_v8, 256  ;;  %2482 = vmatpush1.bf16.msra.mxu1 %v3233_v32  ;;  %v3252_v45 = vld [vmem:[#allocation9 + $0x3f0] ss:$24 sps:$4 sm:$0xff]   ;;  %v3255_v47 = vld [vmem:[#allocation9 + $0x424] ss:$24 sps:$4 sm:$0xff]   ;;  %vm604_vm4 = vcmask 1043459  }
  0x56   :  { %2523 = vmatpush1.bf16.msra.mxu0 %v3234_v33  ;;  %2483 = vmatprep.subr.bf16.mxu1 %v3235_v34  ;;  %v3257_v48 = vld [vmem:[#allocation9 + $0x120] ss:$24 sps:$4 sm:$0xff]   ;;  %v3259_v50 = vld [vmem:[#allocation9 + $0x154] ss:$24 sps:$4 sm:$0xff]   ;;  %v3263_v52 = vld [vmem:[#allocation9 + $0x150] ss:$24 sps:$4 sm:$0xff]  }
  0x57   :  { %2524 = vmatprep.subr.bf16.mxu0 %v3237_v35  ;;  %v3258_v49 = vld [vmem:[#allocation9 + $0x420] ss:$24 sps:$4 sm:$0xff]   ;;  %v3261_v51 = vld [vmem:[#allocation9 + $0x454] ss:$24 sps:$4 sm:$0xff]   ;;  %v3264_v53 = vld [vmem:[#allocation9 + $0x450] ss:$24 sps:$4 sm:$0xff]  }
  0x58   :  { %v3265_v54 = vld [vmem:[#allocation9 + $0x184] ss:$24 sps:$4 sm:$0xff]   ;;  %v3269_v56 = vld [vmem:[#allocation9 + $0x180] ss:$24 sps:$4 sm:$0xff]   ;;  %v3271_v58 = vld [vmem:[#allocation9 + $0x1b4] ss:$24 sps:$4 sm:$0xff]  }
  0x59   :  { %186 = vbcast.lane.b32.xlu1 %v184_v10, 256  ;;  %2484 = vmatpush1.bf16.msra.mxu1 %v3239_v36  ;;  %v3267_v55 = vld [vmem:[#allocation9 + $0x484] ss:$24 sps:$4 sm:$0xff]   ;;  %v3270_v57 = vld [vmem:[#allocation9 + $0x480] ss:$24 sps:$4 sm:$0xff]   ;;  %v667_v25 = vld [vmem:[#allocation3] sm:$0xff] }
  0x5a   :  { %2525 = vmatpush1.bf16.msra.mxu0 %v3240_v37  ;;  %2485 = vmatprep.subr.bf16.mxu1 %v3241_v38  ;;  %v3273_v59 = vld [vmem:[#allocation9 + $0x4b4] ss:$24 sps:$4 sm:$0xff]   ;;  %v3275_v60 = vld [vmem:[#allocation9 + $0x1b0] ss:$24 sps:$4 sm:$0xff]   ;;  %v3277_v62 = vld [vmem:[#allocation9 + $0x1e4] ss:$24 sps:$4 sm:$0xff]  }
  0x5b   :  { %2526 = vmatprep.subr.bf16.mxu0 %v3243_v39  ;;  %v3276_v61 = vld [vmem:[#allocation9 + $0x4b0] ss:$24 sps:$4 sm:$0xff]   ;;  %v3279_v63 = vld [vmem:[#allocation9 + $0x4e4] ss:$24 sps:$4 sm:$0xff]   ;;  %v3281_v0 = vld [vmem:[#allocation9 + $0x1e0] ss:$24 sps:$4 sm:$0xff]  }
  0x5c   :  { %v3282_v1 = vld [vmem:[#allocation9 + $0x4e0] ss:$24 sps:$4 sm:$0xff]   ;;  %v3283_v5 = vld [vmem:[#allocation9 + $0x214] ss:$24 sps:$4 sm:$0xff]   ;;  %v3287_v7 = vld [vmem:[#allocation9 + $0x210] ss:$24 sps:$4 sm:$0xff]  }
  0x5d   :  { %193 = vbcast.lane.b32.xlu1 %v191_v12, 256  ;;  %2486 = vmatpush1.bf16.msra.mxu1 %v3245_v40  ;;  %v3285_v6 = vld [vmem:[#allocation9 + $0x514] ss:$24 sps:$4 sm:$0xff]   ;;  %v3288_v8 = vld [vmem:[#allocation9 + $0x510] ss:$24 sps:$4 sm:$0xff]   ;;  %v3975_v4 = vld [vmem:[#allocation4] sm:$0xff] }
  0x5e   :  { %2527 = vmatpush1.bf16.msra.mxu0 %v3246_v41  ;;  %2487 = vmatprep.subr.bf16.mxu1 %v3247_v42  ;;  %v3289_v10 = vld [vmem:[#allocation9 + $0x244] ss:$24 sps:$4 sm:$0xff]   ;;  %v3294_v15 = vld [vmem:[#allocation9 + $0x540] ss:$24 sps:$4 sm:$0xff]   ;;  %v3297_v18 = vld [vmem:[#allocation9 + $0x574] ss:$24 sps:$4 sm:$0xff]  }
  0x5f   :  { %2528 = vmatprep.subr.bf16.mxu0 %v3249_v43  ;;  %v3291_v12 = vld [vmem:[#allocation9 + $0x544] ss:$24 sps:$4 sm:$0xff]   ;;  %v3299_v19 = vld [vmem:[#allocation9 + $0x270] ss:$24 sps:$4 sm:$0xff]   ;;  %v3305_v23 = vld [vmem:[#allocation9 + $0x2a0] ss:$24 sps:$4 sm:$0xff]  }
  0x60   :  { %v3303_v22 = vld [vmem:[#allocation9 + $0x5a4] ss:$24 sps:$4 sm:$0xff]   ;;  %v3306_v24 = vld [vmem:[#allocation9 + $0x5a0] ss:$24 sps:$4 sm:$0xff]   ;;  %v3892_v36 = vld [vmem:[#allocation4 + $0x10] sm:$0xff]  ;;  %vm606_vm5 = vcmask 1044484  }
  0x61   :  { %200 = vbcast.lane.b32.xlu1 %v198_v14, 256  ;;  %165 = vbcast.lane.b32.xlu0 %v163_v20, 256  ;;  %v3293_v14 = vld [vmem:[#allocation9 + $0x240] ss:$24 sps:$4 sm:$0xff]   ;;  %v3300_v20 = vld [vmem:[#allocation9 + $0x570] ss:$24 sps:$4 sm:$0xff]   ;;  %v109_v38 = vunpack.c.l.bf16 %v3892_v36 }
  0x62   :  { %2488 = vmatpush1.bf16.msra.mxu1 %v3251_v44  ;;  %2529 = vmatpush1.bf16.msra.mxu0 %v3252_v45  ;;  %v3307_v39 = vld [vmem:[#allocation9 + $0x2d4] ss:$24 sps:$4 sm:$0xff]   ;;  %v3311_v43 = vld [vmem:[#allocation9 + $0x2d0] ss:$24 sps:$4 sm:$0xff]   ;;  %vm608_vm6 = vcmask 1045509   ;;  %vm610_vm7 = vcmask 1046534  }
  0x63   :  { %2489 = vmatprep.subr.bf16.mxu1 %v3253_v46  ;;  %2530 = vmatprep.subr.bf16.mxu0 %v3255_v47  ;;  %v3309_v40 = vld [vmem:[#allocation9 + $0x5d4] ss:$24 sps:$4 sm:$0xff]   ;;  %v3312_v46 = vld [vmem:[#allocation9 + $0x5d0] ss:$24 sps:$4 sm:$0xff]   ;;  %vm612_vm8 = vcmask 1047559   ;;  %s2879_s10 = sshll.u32 %s3779_s3, 4  ;;  %s2880_s10 = int_to_ptr.vmem [resolvable:$true] %s2879_s10 }
  0x64   :  { %s3741_s1 = scalar_lea.vmem %s2880_s10, 768  ;;  %p3746_p5 = scmp.lt.s32.totalorder %s2880_s10, %s2880_s10 }
  0x65   :  { %207 = vbcast.lane.b32.xlu1 %v205_v17, 256  ;;  %v3295_v17 = vld [vmem:[#allocation9 + $0x274] ss:$24 sps:$4 sm:$0xff]   ;;  %p3742_p4 = scmp.ne.s32.totalorder %s2880_s10, %s3741_s1  ;;  %p3747_p6 = scmp.lt.s32.totalorder %s3741_s1, %s3741_s1 }
  0x66   :  { %2490 = vmatpush1.bf16.msra.mxu1 %v3257_v48  ;;  %2531 = vmatpush1.bf16.msra.mxu0 %v3258_v49  ;;  %v3315_v49 = vld [vmem:[#allocation9 + $0x604] ss:$24 sps:$4 sm:$0xff]  }
  0x67   :  { %2491 = vmatprep.subr.bf16.mxu1 %v3259_v50  ;;  %2532 = vmatprep.subr.bf16.mxu0 %v3261_v51  ;;  %v3318_v50 = vld [vmem:[#allocation9 + $0xc] ss:$24 sps:$4 sm:$0xff]   ;;  %p3748_p7 = por %p3747_p6, %p3746_p5 }
  0x69   :  { %214 = vbcast.lane.b32.xlu1 %v212_v21, 256  ;;  %v3301_v21 = vld [vmem:[#allocation9 + $0x2a4] ss:$24 sps:$4 sm:$0xff]   ;;  %p3749_p8 = pnand %p3748_p7, %p3742_p4 }
  0x6a   :  { %2492 = vmatpush1.bf16.msra.mxu1 %v3263_v52  ;;  %2533 = vmatpush1.bf16.msra.mxu0 %v3264_v53 }
  0x6b   :  { %2493 = vmatprep.subr.bf16.mxu1 %v3265_v54  ;;  %2534 = vmatprep.subr.bf16.mxu0 %v3267_v55 }
  0x6e   :  { %2494 = vmatpush1.bf16.msra.mxu1 %v3269_v56  ;;  %2535 = vmatpush1.bf16.msra.mxu0 %v3270_v57  ;;  %v3902_v57 = vld [vmem:[#allocation4 + $0x40] sm:$0xff] }
  0x6f   :  { %2495 = vmatprep.subr.bf16.mxu1 %v3271_v58  ;;  %2536 = vmatprep.subr.bf16.mxu0 %v3273_v59  ;;  %v3904_v59 = vld [vmem:[#allocation4 + $0x58] sm:$0xff] }
  0x72   :  { %2496 = vmatpush1.bf16.msra.mxu1 %v3275_v60  ;;  %2537 = vmatpush1.bf16.msra.mxu0 %v3276_v61  ;;  %v121_v61 = vunpack.c.l.bf16 %v3902_v57 }
  0x73   :  { %2497 = vmatprep.subr.bf16.mxu1 %v3277_v62  ;;  %2538 = vmatprep.subr.bf16.mxu0 %v3279_v63  ;;  %v3907_v62 = vld [vmem:[#allocation4 + $0x70] sm:$0xff] }
  0x76   :  { %2498 = vmatpush1.bf16.msra.mxu1 %v3281_v0  ;;  %2539 = vmatpush1.bf16.msra.mxu0 %v3282_v1  ;;  %v3911_v1 = vld [vmem:[#allocation4 + $0x88] sm:$0xff] }
  0x77   :  { %2499 = vmatprep.subr.bf16.mxu1 %v3283_v5  ;;  %2540 = vmatprep.subr.bf16.mxu0 %v3285_v6  ;;  %v127_v5 = vunpack.c.l.bf16 %v3904_v59 }
  0x7a   :  { %2500 = vmatpush1.bf16.msra.mxu1 %v3287_v7  ;;  %2541 = vmatpush1.bf16.msra.mxu0 %v3288_v8  ;;  %v133_v7 = vunpack.c.l.bf16 %v3907_v62 }
  0x7b   :  { %2501 = vmatprep.subr.bf16.mxu1 %v3289_v10  ;;  %2542 = vmatprep.subr.bf16.mxu0 %v3291_v12  ;;  %v139_v10 = vunpack.c.l.bf16 %v3911_v1 }
  0x7e   :  { %2502 = vmatpush1.bf16.msra.mxu1 %v3293_v14  ;;  %2543 = vmatpush1.bf16.msra.mxu0 %v3294_v15  ;;  %v3920_v14 = vld [vmem:[#allocation4 + $0xa0] sm:$0xff] }
  0x7f   :  { %2503 = vmatprep.subr.bf16.mxu1 %v3295_v17  ;;  %2544 = vmatprep.subr.bf16.mxu0 %v3297_v18  ;;  %4350 = vst [vmem:[#allocation18_spill] sm:$0xff] %v3920_v14 }
  0x82   :  { %2504 = vmatpush1.bf16.msra.mxu1 %v3299_v19  ;;  %2545 = vmatpush1.bf16.msra.mxu0 %v3300_v20  ;;  %v145_v19 = vunpack.c.l.bf16 %v3920_v14 }
  0x83   :  { %2505 = vmatprep.subr.bf16.mxu1 %v3301_v21  ;;  %2546 = vmatprep.subr.bf16.mxu0 %v3303_v22  ;;  %v3928_v22 = vld [vmem:[#allocation4 + $0xb8] sm:$0xff] }
  0x86   :  { %2506 = vmatpush1.bf16.msra.mxu1 %v3305_v23  ;;  %2547 = vmatpush1.bf16.msra.mxu0 %v3306_v24  ;;  %v3930_v24 = vld [vmem:[#allocation4 + $0x18] sm:$0xff] }
  0x87   :  { %2507 = vmatprep.subr.bf16.mxu1 %v3307_v39  ;;  %2548 = vmatprep.subr.bf16.mxu0 %v3309_v40  ;;  %v3943_v40 = vld [vmem:[#allocation4 + $0x38] sm:$0xff] }
  0x8a   :  { %2508 = vmatpush1.bf16.msra.mxu1 %v3311_v43  ;;  %2549 = vmatpush1.bf16.msra.mxu0 %v3312_v46  ;;  %v3949_v46 = vld [vmem:[#allocation4 + $0x50] sm:$0xff] }
  0x8b   :  { %2559 = vmatprep.subr.bf16.mxu0 %v3315_v49  ;;  %2600 = vmatprep.subr.bf16.mxu1 %v3318_v50 }
  0xc3   :  { %v3887_v32 = vpop.permute.xlu1 %172 }
  0xc4   :  { %v226_v33 = vmul.f32 %v3887_v32, %v115_v29 }
  0xc6   :  { %v324_v34 = vrot.slane %v226_v33, 4 }
  0xc7   :  { %v3890_v35 = vpop.permute.xlu1 %179 }
  0xc8   :  { %v325_v37 = vadd.f32 %v324_v34, %v226_v33  ;;  %v232_v8 = vmul.f32 %v3890_v35, %v121_v61  ;;  %v3936_v33 = vld [vmem:[#allocation4 + $0x30] sm:$0xff]  ;;  %v3957_v61 = vld [vmem:[#allocation4 + $0x60] sm:$0xff] }
  0xc9   :  { %v117_v50 = vunpack.c.l.bf16 %v3936_v33 }
  0xca   :  { %v326_v45 = vrot.slane %v325_v37, 2  ;;  %v360_v20 = vrot.slane %v232_v8, 4 }
  0xcb   :  { %v3897_v47 = vpop.permute.xlu1 %186 }
  0xcc   :  { %v327_v51 = vadd.f32 %v326_v45, %v325_v37  ;;  %v238_v15 = vmul.f32 %v3897_v47, %v127_v5  ;;  %v361_v29 = vadd.f32 %v360_v20, %v232_v8  ;;  %v111_v37 = vunpack.c.l.bf16 %v3930_v24  ;;  %v3947_v45 = vld [vmem:[#allocation4 + $0x48] sm:$0xff]  ;;  %v3968_v20 = vld [vmem:[#allocation4 + $0x80] sm:$0xff] }
  0xcd   :  { %v3962_v8 = vld [vmem:[#allocation4 + $0x68] sm:$0xff] }
  0xce   :  { %v328_v55 = vrot.slane %v327_v51, 1  ;;  %v396_v23 = vrot.slane %v238_v15, 4  ;;  %v222_v13 = vmul.f32 %v3887_v32, %v111_v37 }
  0xcf   :  { %v3900_v54 = vpop.permute.xlu1 %193 }
  0xd0   :  { %v329_v60 = vadd.f32 %v328_v55, %v327_v51  ;;  %v244_v17 = vmul.f32 %v3900_v54, %v133_v7  ;;  %v362_v51 = vrot.slane %v361_v29, 2  ;;  %v118_v55 = vunpack.c.h.bf16 %v3936_v33 }
  0xd3   :  { %v3909_v0 = vpop.permute.xlu1 %200 }
  0xd4   :  { %v250_v21 = vmul.f32 %v3909_v0, %v139_v10 }
  0xd7   :  { %v3924_v18 = vpop.permute.xlu1 %207 }
  0xd8   :  { %v671_v26 = vpop.xlane.xlu0 %670 }
  0xd9   :  { %v672_v27 = vadd.f32 %v671_v26, %v667_v25  ;;  %v3932_v25 = vld [vmem:[#allocation4 + $0x20] sm:$0xff]  ;;  %v432_v26 = vrot.slane %v244_v17, 4 }
  0xda   :  { %v113_v39 = vunpack.c.l.bf16 %v3932_v25  ;;  %v114_v43 = vunpack.c.h.bf16 %v3932_v25 }
  0xdb   :  { %674 = vst.msk [vmem:[#allocation3] sm:$0xff] %vm79_vm0, %v672_v27  ;;  %v256_v27 = vmul.f32 %v3924_v18, %v145_v19  ;;  %v3938_v34 = vpop.permute.xlu1 %214  ;;  %v3966_v19 = vld [vmem:[#allocation4 + $0x78] sm:$0xff] }
  0xdc   :  { %v3895_v42 = vpop.permute.xlu0 %165  ;;  %v225_v37 = vmul.f32 %v3887_v32, %v114_v43 }
  0xdd   :  { %v220_v48 = vmul.f32 %v3895_v42, %v109_v38  ;;  %v112_v38 = vunpack.c.h.bf16 %v3930_v24  ;;  %v504_v49 = vrot.slane %v256_v27, 4  ;;  %v3984_v24 = vld [vmem:[#allocation4 + $0x90] sm:$0xff] }
  0xdf   :  { %v288_v52 = vrot.slane %v220_v48, 4 }
  0xe1   :  { %v289_v53 = vadd.f32 %v288_v52, %v220_v48  ;;  %v433_v48 = vadd.f32 %v432_v26, %v244_v17 }
  0xe2   :  { %v678_v30 = vld [vmem:[#allocation3] sm:$0xff] }
  0xe3   :  { %v679_v31 = vmax.f32 %v678_v30, 1e-09  ;;  %v290_v56 = vrot.slane %v289_v53, 2  ;;  %v434_v17 = vrot.slane %v433_v48, 2 }
  0xe5   :  { %3649 = vrcp.f32 %v679_v31  ;;  %v291_v58 = vadd.f32 %v290_v56, %v289_v53  ;;  %v151_v31 = vunpack.c.l.bf16 %v3928_v22  ;;  %v119_v56 = vunpack.c.l.bf16 %v3943_v40 }
  0xe7   :  { %v292_v63 = vrot.slane %v291_v58, 1  ;;  %v262_v53 = vmul.f32 %v3938_v34, %v151_v31  ;;  %v223_v31 = vmul.f32 %v3887_v32, %v112_v38  ;;  %v318_v38 = vrot.slane %v225_v37, 4 }
  0xe9   :  { %v293_v6 = vadd.f32 %v292_v63, %v291_v58  ;;  %v120_v58 = vunpack.c.h.bf16 %v3943_v40  ;;  %v123_v63 = vunpack.c.l.bf16 %v3947_v45  ;;  %v4353_v40 = vunpack.c.l.bf16 %v3949_v46 }
  0xeb   :  { %v3918_v12 = vsel %vm600_vm2, %v329_v60, %v293_v6  ;;  %v122_v60 = vunpack.c.h.bf16 %v3902_v57  ;;  %v234_v33 = vmul.f32 %v3897_v47, %v123_v63 }
  0xef   :  { %v3650_v41 = vpop.eup %3649 }
  0xf0   :  { %690 = vperm.xlu0 %3215, %v3650_v41   ;;  %v994_v44 = vmul.f32 %v3650_v41, %v678_v30  ;;  %v468_v30 = vrot.slane %v250_v21, 4  ;;  %v397_v41 = vadd.f32 %v396_v23, %v238_v15  ;;  %v363_v23 = vadd.f32 %v362_v51, %v361_v29 }
  0xf1   :  { %v435_v51 = vadd.f32 %v434_v17, %v433_v48  ;;  %v3991_v17 = vld [vmem:[#allocation4 + $0x98] sm:$0xff] }
  0xf2   :  { %1028 = vperm.xlu1 %3216, %v994_v44   ;;  %v116_v44 = vunpack.c.h.bf16 %v3884_v28  ;;  %v469_v52 = vadd.f32 %v468_v30, %v250_v21  ;;  %v398_v7 = vrot.slane %v397_v41, 2  ;;  %v505_v21 = vadd.f32 %v504_v49, %v256_v27  ;;  %v3980_v49 = vld [vmem:[#allocation4 + $0x8] sm:$0xff] }
  0xf3   :  { %v540_v30 = vrot.slane %v262_v53, 4  ;;  %v364_v9 = vrot.slane %v363_v23, 1 }
  0xf4   :  { %v470_v26 = vrot.slane %v469_v52, 2  ;;  %v399_v16 = vadd.f32 %v398_v7, %v397_v41  ;;  %v506_v11 = vrot.slane %v505_v21, 2 }
  0xf5   :  { %v541_v7 = vadd.f32 %v540_v30, %v262_v53  ;;  %v436_v53 = vrot.slane %v435_v51, 1  ;;  %v365_v27 = vadd.f32 %v364_v9, %v363_v23 }
  0xf6   :  { %v471_v15 = vadd.f32 %v470_v26, %v469_v52  ;;  %v400_v10 = vrot.slane %v399_v16, 1  ;;  %v224_v26 = vmul.f32 %v3887_v32, %v113_v39  ;;  %v507_v41 = vadd.f32 %v506_v11, %v505_v21  ;;  %v4007_v21 = vld [vmem:[#allocation4 + $0xa8] sm:$0xff] }
  0xf7   :  { %v542_v48 = vrot.slane %v541_v7, 2  ;;  %v227_v39 = vmul.f32 %v3887_v32, %v116_v44  ;;  %v300_v52 = vrot.slane %v222_v13, 4  ;;  %v306_v11 = vrot.slane %v223_v31, 4 }
  0xf8   :  { %v472_v3 = vrot.slane %v471_v15, 1  ;;  %v401_v9 = vadd.f32 %v400_v10, %v399_v16  ;;  %v312_v23 = vrot.slane %v224_v26, 4  ;;  %v437_v29 = vadd.f32 %v436_v53, %v435_v51 }
  0xf9   :  { %v508_v25 = vrot.slane %v507_v41, 1  ;;  %v543_v43 = vadd.f32 %v542_v48, %v541_v7  ;;  %v636_v6 = vsel %vm602_vm3, %v365_v27, %v3918_v12  ;;  %v330_v44 = vrot.slane %v227_v39, 4 }
  0xfa   :  { %v473_v30 = vadd.f32 %v472_v3, %v471_v15  ;;  %v637_v10 = vsel %vm604_vm4, %v401_v9, %v636_v6  ;;  %v301_v5 = vadd.f32 %v300_v52, %v222_v13  ;;  %v228_v3 = vmul.f32 %v3890_v35, %v117_v50  ;;  %v4024_v6 = vld [vmem:[#allocation4 + $0xb0] sm:$0xff] }
  0xfb   :  { %v509_v32 = vadd.f32 %v508_v25, %v507_v41  ;;  %v544_v16 = vrot.slane %v543_v43, 1  ;;  %v638_v15 = vsel %vm606_vm5, %v437_v29, %v637_v10  ;;  %v307_v51 = vadd.f32 %v306_v11, %v223_v31 }
  0xfc   :  { %v313_v12 = vadd.f32 %v312_v23, %v224_v26  ;;  %v639_v7 = vsel %vm608_vm6, %v473_v30, %v638_v15  ;;  %v319_v48 = vadd.f32 %v318_v38, %v225_v37  ;;  %v229_v41 = vmul.f32 %v3890_v35, %v118_v55 }
  0xfd   :  { %v545_v27 = vadd.f32 %v544_v16, %v543_v43  ;;  %v230_v13 = vmul.f32 %v3890_v35, %v119_v56  ;;  %v640_v50 = vsel %vm610_vm7, %v509_v32, %v639_v7  ;;  %v231_v31 = vmul.f32 %v3890_v35, %v120_v58 }
  0xfe   :  { %v233_v29 = vmul.f32 %v3890_v35, %v122_v60  ;;  %v336_v56 = vrot.slane %v228_v3, 4  ;;  %v4352_v52 = vunpack.c.h.bf16 %v3947_v45  ;;  %v236_v58 = vmul.f32 %v3897_v47, %v4353_v40 }
  0xff   :  { %v4037_v55 = vsel %vm612_vm8, %v545_v27, %v640_v50  ;;  %v302_v53 = vrot.slane %v301_v5, 2  ;;  %v308_v35 = vrot.slane %v307_v51, 2  ;;  %v331_v60 = vadd.f32 %v330_v44, %v227_v39 }
 0x100   :  { %4351 = vst [vmem:[#allocation19_spill] sm:$0xff] %v4037_v55  ;;  %v235_v26 = vmul.f32 %v3897_v47, %v4352_v52  ;;  %v314_v63 = vrot.slane %v313_v12, 2  ;;  %v320_v37 = vrot.slane %v319_v48, 2  ;;  %v342_v38 = vrot.slane %v229_v41, 4 }
 0x101   :  { %v348_v11 = vrot.slane %v230_v13, 4  ;;  %v354_v9 = vrot.slane %v231_v31, 4  ;;  %v366_v23 = vrot.slane %v233_v29, 4  ;;  %v4354_v45 = vunpack.c.h.bf16 %v3949_v46 }
 0x102   :  { %v372_v43 = vrot.slane %v234_v33, 4  ;;  %v337_v32 = vadd.f32 %v336_v56, %v228_v3  ;;  %v4355_v16 = vunpack.c.h.bf16 %v3904_v59  ;;  %v378_v15 = vrot.slane %v235_v26, 4 }
 0x103   :  { %v237_v25 = vmul.f32 %v3897_v47, %v4354_v45  ;;  %v384_v39 = vrot.slane %v236_v58, 4  ;;  %v303_v44 = vadd.f32 %v302_v53, %v301_v5  ;;  %v309_v27 = vadd.f32 %v308_v35, %v307_v51 }
 0x104   :  { %v239_v10 = vmul.f32 %v3897_v47, %v4355_v16  ;;  %v332_v7 = vrot.slane %v331_v60, 2  ;;  %v315_v52 = vadd.f32 %v314_v63, %v313_v12  ;;  %v321_v40 = vadd.f32 %v320_v37, %v319_v48 }
 0x105   :  { %v343_v30 = vadd.f32 %v342_v38, %v229_v41  ;;  %v349_v28 = vadd.f32 %v348_v11, %v230_v13  ;;  %v355_v46 = vadd.f32 %v354_v9, %v231_v31  ;;  %v367_v57 = vadd.f32 %v366_v23, %v233_v29 }
 0x106   :  { %v373_v45 = vadd.f32 %v372_v43, %v234_v33  ;;  %v390_v2 = vrot.slane %v237_v25, 4  ;;  %v338_v3 = vrot.slane %v337_v32, 2  ;;  %v379_v56 = vadd.f32 %v378_v15, %v235_v26 }
 0x107   :  { %v385_v59 = vadd.f32 %v384_v39, %v236_v58  ;;  %v402_v55 = vrot.slane %v239_v10, 4  ;;  %v304_v47 = vrot.slane %v303_v44, 1  ;;  %v310_v16 = vrot.slane %v309_v27, 1 }
 0x108   :  { %v333_v14 = vadd.f32 %v332_v7, %v331_v60  ;;  %v316_v51 = vrot.slane %v315_v52, 1  ;;  %v322_v53 = vrot.slane %v321_v40, 1  ;;  %v344_v35 = vrot.slane %v343_v30, 2 }
 0x109   :  { %v350_v12 = vrot.slane %v349_v28, 2  ;;  %v356_v48 = vrot.slane %v355_v46, 2  ;;  %v368_v41 = vrot.slane %v367_v57, 2  ;;  %v374_v13 = vrot.slane %v373_v45, 2 }
 0x10a   :  { %v391_v31 = vadd.f32 %v390_v2, %v237_v25  ;;  %v339_v29 = vadd.f32 %v338_v3, %v337_v32  ;;  %v380_v33 = vrot.slane %v379_v56, 2  ;;  %v386_v63 = vrot.slane %v385_v59, 2 }
 0x10b   :  { %v403_v37 = vadd.f32 %v402_v55, %v239_v10  ;;  %v4055_v26 = vadd.f32 %v304_v47, %v303_v44  ;;  %v4057_v58 = vadd.f32 %v310_v16, %v309_v27  ;;  %v334_v38 = vrot.slane %v333_v14, 1 }
 0x10c   :  { %v4356_v60 = vunpack.c.l.bf16 %v3957_v61  ;;  %v4062_v9 = vadd.f32 %v316_v51, %v315_v52  ;;  %v4064_v23 = vadd.f32 %v322_v53, %v321_v40  ;;  %v345_v43 = vadd.f32 %v344_v35, %v343_v30 }
 0x10d   :  { %v351_v15 = vadd.f32 %v350_v12, %v349_v28  ;;  %v357_v2 = vadd.f32 %v356_v48, %v355_v46  ;;  %v369_v25 = vadd.f32 %v368_v41, %v367_v57  ;;  %v375_v32 = vadd.f32 %v374_v13, %v373_v45 }
 0x10e   :  { %v240_v11 = vmul.f32 %v3900_v54, %v4356_v60  ;;  %v392_v39 = vrot.slane %v391_v31, 2  ;;  %v340_v55 = vrot.slane %v339_v29, 1  ;;  %v381_v10 = vadd.f32 %v380_v33, %v379_v56 }
 0x10f   :  { %v387_v44 = vadd.f32 %v386_v63, %v385_v59  ;;  %v404_v27 = vrot.slane %v403_v37, 2  ;;  %v4066_v7 = vadd.f32 %v334_v38, %v333_v14  ;;  %v4357_v3 = vunpack.c.h.bf16 %v3957_v61 }
 0x110   :  { %v4358_v52 = vunpack.c.l.bf16 %v3962_v8  ;;  %v408_v30 = vrot.slane %v240_v11, 4  ;;  %v346_v28 = vrot.slane %v345_v43, 1  ;;  %v352_v46 = vrot.slane %v351_v15, 1 }
 0x111   :  { %v241_v47 = vmul.f32 %v3900_v54, %v4357_v3  ;;  %v4359_v57 = vunpack.c.h.bf16 %v3962_v8  ;;  %v4360_v56 = vunpack.c.h.bf16 %v3907_v62  ;;  %v358_v59 = vrot.slane %v357_v2, 1 }
 0x112   :  { %v242_v40 = vmul.f32 %v3900_v54, %v4358_v52  ;;  %v370_v16 = vrot.slane %v369_v25, 1  ;;  %v376_v61 = vrot.slane %v375_v32, 1  ;;  %v393_v51 = vadd.f32 %v392_v39, %v391_v31 }
 0x113   :  { %v243_v45 = vmul.f32 %v3900_v54, %v4359_v57  ;;  %v245_v14 = vmul.f32 %v3900_v54, %v4360_v56  ;;  %v4080_v53 = vadd.f32 %v340_v55, %v339_v29  ;;  %v382_v35 = vrot.slane %v381_v10, 1 }
 0x114   :  { %v388_v12 = vrot.slane %v387_v44, 1  ;;  %v405_v48 = vadd.f32 %v404_v27, %v403_v37  ;;  %v409_v41 = vadd.f32 %v408_v30, %v240_v11  ;;  %v414_v13 = vrot.slane %v241_v47, 4 }
 0x115   :  { %v420_v33 = vrot.slane %v242_v40, 4  ;;  %v4361_v8 = vunpack.c.h.bf16 %v3975_v4  ;;  %v4085_v38 = vadd.f32 %v346_v28, %v345_v43  ;;  %v4087_v62 = vadd.f32 %v352_v46, %v351_v15 }
 0x116   :  { %v426_v54 = vrot.slane %v243_v45, 4  ;;  %v438_v60 = vrot.slane %v245_v14, 4  ;;  %v4089_v3 = vadd.f32 %v358_v59, %v357_v2  ;;  %v4091_v31 = vadd.f32 %v370_v16, %v369_v25 }
 0x117   :  { %v217_v63 = vmul.f32 %v3895_v42, %v4361_v8  ;;  %v4093_v29 = vadd.f32 %v376_v61, %v375_v32  ;;  %v394_v37 = vrot.slane %v393_v51, 1  ;;  %v4095_v11 = vadd.f32 %v382_v35, %v381_v10 }
 0x118   :  { %v4097_v39 = vadd.f32 %v388_v12, %v387_v44  ;;  %v406_v55 = vrot.slane %v405_v48, 1  ;;  %v4363_v27 = vunpack.c.l.bf16 %v3966_v19  ;;  %v410_v15 = vrot.slane %v409_v41, 2 }
 0x119   :  { %v415_v52 = vadd.f32 %v414_v13, %v241_v47  ;;  %v421_v30 = vadd.f32 %v420_v33, %v242_v40  ;;  %v270_v28 = vrot.slane %v217_v63, 4  ;;  %v427_v2 = vadd.f32 %v426_v54, %v243_v45 }
 0x11a   :  { %4362 = vst [vmem:[#allocation20_spill] sm:$0xff] %v4097_v39  ;;  %v246_v43 = vmul.f32 %v3909_v0, %v4363_v27  ;;  %v439_v46 = vadd.f32 %v438_v60, %v245_v14  ;;  %v4364_v25 = vunpack.c.l.bf16 %v3975_v4  ;;  %v4365_v10 = vunpack.c.l.bf16 %v3980_v49 }
 0x11b   :  { %v4108_v57 = vadd.f32 %v394_v37, %v393_v51  ;;  %v4366_v56 = vunpack.c.h.bf16 %v3966_v19  ;;  %v4367_v47 = vunpack.c.l.bf16 %v3968_v20  ;;  %v4368_v45 = vunpack.c.h.bf16 %v3980_v49 }
 0x11c   :  { %v216_v32 = vmul.f32 %v3895_v42, %v4364_v25  ;;  %v218_v44 = vmul.f32 %v3895_v42, %v4365_v10  ;;  %v4119_v14 = vadd.f32 %v406_v55, %v405_v48  ;;  %v4370_v16 = vunpack.c.h.bf16 %v3968_v20 }
 0x11d   :  { %v247_v59 = vmul.f32 %v3909_v0, %v4366_v56  ;;  %v248_v40 = vmul.f32 %v3909_v0, %v4367_v47  ;;  %v219_v4 = vmul.f32 %v3895_v42, %v4368_v45  ;;  %v444_v51 = vrot.slane %v246_v43, 4 }
 0x11e   :  { %4369 = vst [vmem:[#allocation21_spill] sm:$0xff] %v4119_v14  ;;  %v249_v61 = vmul.f32 %v3909_v0, %v4370_v16  ;;  %v4371_v35 = vunpack.c.h.bf16 %v3892_v36  ;;  %v4127_v12 = vadd.f32 %v410_v15, %v409_v41  ;;  %v416_v13 = vrot.slane %v415_v52, 2 }
 0x11f   :  { %v422_v33 = vrot.slane %v421_v30, 2  ;;  %v271_v8 = vadd.f32 %v270_v28, %v217_v63  ;;  %v428_v54 = vrot.slane %v427_v2, 2  ;;  %v440_v49 = vrot.slane %v439_v46, 2 }
 0x120   :  { %v221_v19 = vmul.f32 %v3895_v42, %v4371_v35  ;;  %v264_v60 = vrot.slane %v216_v32, 4  ;;  %v276_v37 = vrot.slane %v218_v44, 4  ;;  %v4372_v48 = vunpack.c.h.bf16 %v3911_v1 }
 0x121   :  { %v450_v55 = vrot.slane %v247_v59, 4  ;;  %v456_v27 = vrot.slane %v248_v40, 4  ;;  %v282_v25 = vrot.slane %v219_v4, 4  ;;  %v445_v10 = vadd.f32 %v444_v51, %v246_v43 }
 0x122   :  { %v251_v20 = vmul.f32 %v3909_v0, %v4372_v48  ;;  %v462_v36 = vrot.slane %v249_v61, 4  ;;  %v294_v56 = vrot.slane %v221_v19, 4  ;;  %v4373_v42 = vunpack.c.h.bf16 %v3984_v24 }
 0x123   :  { %v4136_v15 = vadd.f32 %v416_v13, %v415_v52  ;;  %v4138_v28 = vadd.f32 %v422_v33, %v421_v30  ;;  %v272_v47 = vrot.slane %v271_v8, 2  ;;  %v4140_v1 = vadd.f32 %v428_v54, %v427_v2 }
 0x124   :  { %v253_v41 = vmul.f32 %v3924_v18, %v4373_v42  ;;  %v4142_v0 = vadd.f32 %v440_v49, %v439_v46  ;;  %v265_v45 = vadd.f32 %v264_v60, %v216_v32  ;;  %v277_v16 = vadd.f32 %v276_v37, %v218_v44 }
 0x125   :  { %4374 = vst [vmem:[#allocation22_spill] sm:$0xff] %v4138_v28  ;;  %v451_v43 = vadd.f32 %v450_v55, %v247_v59  ;;  %v457_v51 = vadd.f32 %v456_v27, %v248_v40  ;;  %v474_v35 = vrot.slane %v251_v20, 4  ;;  %v283_v48 = vadd.f32 %v282_v25, %v219_v4 }
 0x126   :  { %4375 = vst [vmem:[#allocation23_spill] sm:$0xff] %v4142_v0  ;;  %v446_v5 = vrot.slane %v445_v10, 2  ;;  %v463_v50 = vadd.f32 %v462_v36, %v249_v61  ;;  %v295_v42 = vadd.f32 %v294_v56, %v221_v19  ;;  %v486_v14 = vrot.slane %v253_v41, 4 }
 0x127   :  { %v273_v13 = vadd.f32 %v272_v47, %v271_v8  ;;  %v4376_v2 = vunpack.c.h.bf16 %v4007_v21  ;;  %v266_v59 = vrot.slane %v265_v45, 2  ;;  %v278_v40 = vrot.slane %v277_v16, 2 }
 0x128   :  { %v452_v4 = vrot.slane %v451_v43, 2  ;;  %v458_v33 = vrot.slane %v457_v51, 2  ;;  %v475_v61 = vadd.f32 %v474_v35, %v251_v20  ;;  %v284_v19 = vrot.slane %v283_v48, 2 }
 0x129   :  { %v259_v46 = vmul.f32 %v3938_v34, %v4376_v2  ;;  %v4151_v54 = vadd.f32 %v446_v5, %v445_v10  ;;  %v464_v49 = vrot.slane %v463_v50, 2  ;;  %v296_v60 = vrot.slane %v295_v42, 2  ;;  %v4380_v10 = vld [vmem:[#allocation18_spill] sm:$0xff] }
 0x12a   :  { %v487_v37 = vadd.f32 %v486_v14, %v253_v41  ;;  %v274_v8 = vrot.slane %v273_v13, 1  ;;  %v4377_v55 = vunpack.c.l.bf16 %v3984_v24  ;;  %v4378_v25 = vunpack.c.h.bf16 %v3991_v17 }
 0x12b   :  { %v522_v56 = vrot.slane %v259_v46, 4  ;;  %v267_v47 = vadd.f32 %v266_v59, %v265_v45  ;;  %v279_v2 = vadd.f32 %v278_v40, %v277_v16  ;;  %v4379_v20 = vunpack.c.l.bf16 %v3991_v17 }
 0x12c   :  { %v252_v27 = vmul.f32 %v3924_v18, %v4377_v55  ;;  %v255_v36 = vmul.f32 %v3924_v18, %v4378_v25  ;;  %v4381_v35 = vunpack.c.h.bf16 %v4380_v10  ;;  %v453_v41 = vadd.f32 %v452_v4, %v451_v43 }
 0x12d   :  { %v254_v5 = vmul.f32 %v3924_v18, %v4379_v20  ;;  %v476_v44 = vrot.slane %v475_v61, 2  ;;  %v285_v24 = vadd.f32 %v284_v19, %v283_v48  ;;  %v4382_v55 = vunpack.c.h.bf16 %v4024_v6 }
 0x12e   :  { %v257_v14 = vmul.f32 %v3924_v18, %v4381_v35  ;;  %v4168_v63 = vadd.f32 %v458_v33, %v457_v51  ;;  %v465_v25 = vadd.f32 %v464_v49, %v463_v50  ;;  %v297_v45 = vadd.f32 %v296_v60, %v295_v42 }
 0x12f   :  { %v261_v30 = vmul.f32 %v3938_v34, %v4382_v55  ;;  %v488_v16 = vrot.slane %v487_v37, 2  ;;  %v275_v59 = vadd.f32 %v274_v8, %v273_v13  ;;  %v480_v17 = vrot.slane %v252_v27, 4 }
 0x130   :  { %v498_v40 = vrot.slane %v255_v36, 4  ;;  %v523_v20 = vadd.f32 %v522_v56, %v259_v46  ;;  %v268_v32 = vrot.slane %v267_v47, 1  ;;  %v280_v10 = vrot.slane %v279_v2, 1 }
 0x131   :  { %v492_v52 = vrot.slane %v254_v5, 4  ;;  %v510_v18 = vrot.slane %v257_v14, 4  ;;  %v286_v43 = vrot.slane %v285_v24, 1  ;;  %v4383_v48 = vunpack.c.l.bf16 %v4007_v21 }
 0x132   :  { %v4384_v19 = vunpack.c.l.bf16 %v4024_v6  ;;  %v534_v50 = vrot.slane %v261_v30, 4  ;;  %v4176_v42 = vadd.f32 %v476_v44, %v475_v61  ;;  %v298_v13 = vrot.slane %v297_v45, 1 }
 0x133   :  { %v258_v4 = vmul.f32 %v3938_v34, %v4383_v48  ;;  %v4385_v33 = vunpack.c.h.bf16 %v3928_v22  ;;  %v489_v49 = vadd.f32 %v488_v16, %v487_v37  ;;  %v481_v60 = vadd.f32 %v480_v17, %v252_v27 }
 0x134   :  { %v260_v51 = vmul.f32 %v3938_v34, %v4384_v19  ;;  %v499_v8 = vadd.f32 %v498_v40, %v255_v36  ;;  %v524_v56 = vrot.slane %v523_v20, 2  ;;  %v614_v21 = vsel %vm600_vm2, %v4057_v58, %v275_v59 }
 0x135   :  { %v263_v46 = vmul.f32 %v3938_v34, %v4385_v33  ;;  %v269_v35 = vadd.f32 %v268_v32, %v267_v47  ;;  %v281_v55 = vadd.f32 %v280_v10, %v279_v2  ;;  %v493_v6 = vadd.f32 %v492_v52, %v254_v5 }
 0x136   :  { %v511_v48 = vadd.f32 %v510_v18, %v257_v14  ;;  %v287_v19 = vadd.f32 %v286_v43, %v285_v24  ;;  %v516_v39 = vrot.slane %v258_v4, 4  ;;  %v528_v44 = vrot.slane %v260_v51, 4 }
 0x137   :  { %v535_v61 = vadd.f32 %v534_v50, %v261_v30  ;;  %v546_v0 = vrot.slane %v263_v46, 4  ;;  %v454_v28 = vrot.slane %v453_v41, 1  ;;  %v490_v22 = vrot.slane %v489_v49, 1 }
 0x138   :  { %v615_v34 = vsel %vm602_vm3, %v4085_v38, %v614_v21  ;;  %v299_v37 = vadd.f32 %v298_v13, %v297_v45  ;;  %v482_v27 = vrot.slane %v481_v60, 2  ;;  %v500_v36 = vrot.slane %v499_v8, 2  ;;  %v4391_v21 = vld [vmem:[#allocation23_spill] sm:$0xff] }
 0x139   :  { %v4185_v16 = vadd.f32 %v524_v56, %v523_v20  ;;  %v494_v58 = vrot.slane %v493_v6, 2  ;;  %v512_v32 = vrot.slane %v511_v48, 2  ;;  %v4386_v52 = vrot.slane %v4136_v15, 1 }
 0x13a   :  { %v466_v2 = vrot.slane %v465_v25, 1  ;;  %v517_v5 = vadd.f32 %v516_v39, %v258_v4  ;;  %v529_v30 = vadd.f32 %v528_v44, %v260_v51  ;;  %v616_v14 = vsel %vm604_vm4, %v4095_v11, %v615_v34 }
 0x13b   :  { %v419_v47 = vadd.f32 %v4386_v52, %v4136_v15  ;;  %v536_v24 = vrot.slane %v535_v61, 2  ;;  %v547_v59 = vadd.f32 %v546_v0, %v263_v46  ;;  %v455_v38 = vadd.f32 %v454_v28, %v453_v41 }
 0x13c   :  { %v491_v45 = vadd.f32 %v490_v22, %v489_v49  ;;  %v628_v17 = vsel %vm600_vm2, %v4064_v23, %v287_v19  ;;  %v526_v40 = vrot.slane %v4185_v16, 1  ;;  %v4387_v20 = vrot.slane %v4140_v1, 1  ;;  %v4394_v19 = vld [vmem:[#allocation21_spill] sm:$0xff] }
 0x13d   :  { %v501_v15 = vadd.f32 %v500_v36, %v499_v8  ;;  %v601_v39 = vsel %vm600_vm2, %v4055_v26, %v269_v35  ;;  %v617_v18 = vsel %vm606_vm5, %v419_v47, %v616_v14  ;;  %v467_v11 = vadd.f32 %v466_v2, %v465_v25  ;;  %v4389_v8 = vld [vmem:[#allocation22_spill] sm:$0xff] }
 0x13e   :  { %v431_v10 = vadd.f32 %v4387_v20, %v4140_v1  ;;  %v621_v28 = vsel %vm600_vm2, %v4062_v9, %v281_v55  ;;  %v642_v0 = vsel %vm600_vm2, %v4066_v7, %v299_v37  ;;  %v537_v23 = vadd.f32 %v536_v24, %v535_v61 }
 0x13f   :  { %v629_v41 = vsel %vm602_vm3, %v4089_v3, %v628_v17  ;;  %v4388_v1 = vrot.slane %v4127_v12, 1  ;;  %v518_v4 = vrot.slane %v517_v5, 2  ;;  %v483_v51 = vadd.f32 %v482_v27, %v481_v60 }
 0x140   :  { %v603_v26 = vsel %vm602_vm3, %v4080_v53, %v601_v39  ;;  %v530_v25 = vrot.slane %v529_v30, 2  ;;  %v548_v50 = vrot.slane %v547_v59, 2  ;;  %v495_v13 = vadd.f32 %v494_v58, %v493_v6 }
 0x141   :  { %v413_v43 = vadd.f32 %v4388_v1, %v4127_v12  ;;  %v622_v9 = vsel %vm602_vm3, %v4087_v62, %v621_v28  ;;  %v513_v7 = vadd.f32 %v512_v32, %v511_v48  ;;  %v643_v33 = vsel %vm602_vm3, %v4091_v31, %v642_v0 }
 0x142   :  { %v630_v3 = vsel %vm604_vm4, %v4108_v57, %v629_v41  ;;  %v448_v12 = vrot.slane %v4151_v54, 1  ;;  %v460_v46 = vrot.slane %v4168_v63, 1  ;;  %v478_v49 = vrot.slane %v4176_v42, 1  ;;  %v4393_v57 = vld [vmem:[#allocation20_spill] sm:$0xff] }
 0x143   :  { %v519_v53 = vadd.f32 %v518_v4, %v517_v5  ;;  %v605_v60 = vsel %vm604_vm4, %v4093_v29, %v603_v26  ;;  %v4390_v62 = vrot.slane %v4389_v8, 1  ;;  %v4392_v31 = vrot.slane %v4391_v21, 1 }
 0x144   :  { %v531_v55 = vadd.f32 %v530_v25, %v529_v30  ;;  %v623_v6 = vsel %vm604_vm4, %v4393_v57, %v622_v9  ;;  %v549_v48 = vadd.f32 %v548_v50, %v547_v59  ;;  %v644_v44 = vsel %vm604_vm4, %v4394_v19, %v643_v33  ;;  %v4395_v33 = vld [vmem:[#allocation19_spill] sm:$0xff] }
 0x145   :  { %v425_v56 = vadd.f32 %v4390_v62, %v4389_v8  ;;  %v443_v35 = vadd.f32 %v4392_v31, %v4391_v21  ;;  %v502_v61 = vrot.slane %v501_v15, 1  ;;  %v484_v22 = vrot.slane %v483_v51, 1  ;;  %v3321_v62 = vld [vmem:[#allocation9 + $0x634] ss:$24 sps:$4 sm:$0xff]   ;;  %v3319_v31 = vld [vmem:[#allocation9 + $0x630] ss:$24 sps:$4 sm:$0xff]  }
 0x146   :  { %v496_v34 = vrot.slane %v495_v13, 1  ;;  %v514_v29 = vrot.slane %v513_v7, 1  ;;  %v618_v37 = vsel %vm608_vm6, %v455_v38, %v617_v18  ;;  %v449_v27 = vadd.f32 %v448_v12, %v4151_v54  ;;  %v3330_v57 = vld [vmem:[#allocation9 + $0x6c] ss:$24 sps:$4 sm:$0xff]  }
 0x147   :  { %v461_v36 = vadd.f32 %v460_v46, %v4168_v63  ;;  %v479_v58 = vadd.f32 %v478_v49, %v4176_v42  ;;  %v631_v32 = vsel %vm606_vm5, %v431_v10, %v630_v3  ;;  %v607_v52 = vsel %vm606_vm5, %v413_v43, %v605_v60  ;;  %v3313_v49 = vld [vmem:[#allocation9 + $0x600] ss:$24 sps:$4 sm:$0xff]   ;;  %v3333_v19 = vld [vmem:[#allocation9 + $0x694] ss:$24 sps:$4 sm:$0xff]  }
 0x148   :  { %v624_v47 = vsel %vm606_vm5, %v425_v56, %v623_v6  ;;  %v645_v2 = vsel %vm606_vm5, %v443_v35, %v644_v44  ;;  %v538_v5 = vrot.slane %v537_v23, 1  ;;  %v520_v30 = vrot.slane %v519_v53, 1  ;;  %v3324_v56 = vld [vmem:[#allocation9 + $0x3c] ss:$24 sps:$4 sm:$0xff]   ;;  %v3322_v35 = vld [vmem:[#allocation9 + $0x38] ss:$24 sps:$4 sm:$0xff]  }
 0x149   :  { %v532_v14 = vrot.slane %v531_v55, 1  ;;  %v550_v24 = vrot.slane %v549_v48, 1  ;;  %v503_v59 = vadd.f32 %v502_v61, %v501_v15  ;;  %v485_v38 = vadd.f32 %v484_v22, %v483_v51  ;;  %v3325_v6 = vld [vmem:[#allocation9 + $0x660] ss:$24 sps:$4 sm:$0xff]   ;;  %v3336_v44 = vld [vmem:[#allocation9 + $0x9c] ss:$24 sps:$4 sm:$0xff]  }
 0x14a   :  { %v497_v17 = vadd.f32 %v496_v34, %v495_v13  ;;  %v515_v54 = vadd.f32 %v514_v29, %v513_v7  ;;  %v632_v63 = vsel %vm608_vm6, %v467_v11, %v631_v32  ;;  %v609_v42 = vsel %vm608_vm6, %v449_v27, %v607_v52  ;;  %v3331_v61 = vld [vmem:[#allocation9 + $0x690] ss:$24 sps:$4 sm:$0xff]   ;;  %v3339_v34 = vld [vmem:[#allocation9 + $0x6c4] ss:$24 sps:$4 sm:$0xff]  }
 0x14b   :  { %v625_v20 = vsel %vm608_vm6, %v461_v36, %v624_v47  ;;  %v646_v10 = vsel %vm608_vm6, %v479_v58, %v645_v2  ;;  %v527_v39 = vadd.f32 %v526_v40, %v4185_v16  ;;  %v619_v18 = vsel %vm610_vm7, %v491_v45, %v618_v37  ;;  %v3334_v22 = vld [vmem:[#allocation9 + $0x98] ss:$24 sps:$4 sm:$0xff]   ;;  %v3342_v29 = vld [vmem:[#allocation9 + $0xcc] ss:$24 sps:$4 sm:$0xff]   ;;  %v3340_v27 = vld [vmem:[#allocation9 + $0xc8] ss:$24 sps:$4 sm:$0xff]  }
 0x14c   :  { %v539_v28 = vadd.f32 %v538_v5, %v537_v23  ;;  %v521_v0 = vadd.f32 %v520_v30, %v519_v53  ;;  %v533_v41 = vadd.f32 %v532_v14, %v531_v55  ;;  %v551_v1 = vadd.f32 %v550_v24, %v549_v48  ;;  %v3316_v53 = vld [vmem:[#allocation9 + $0x8] ss:$24 sps:$4 sm:$0xff]   ;;  %v3327_v55 = vld [vmem:[#allocation9 + $0x664] ss:$24 sps:$4 sm:$0xff]   ;;  %v3345_v36 = vld [vmem:[#allocation9 + $0x6f4] ss:$24 sps:$4 sm:$0xff]  }
 0x14d   :  { %v633_v15 = vsel %vm610_vm7, %v503_v59, %v632_v63  ;;  %v611_v43 = vsel %vm610_vm7, %v485_v38, %v609_v42  ;;  %v626_v11 = vsel %vm610_vm7, %v497_v17, %v625_v20  ;;  %v647_v4 = vsel %vm610_vm7, %v515_v54, %v646_v10  ;;  %v3328_v48 = vld [vmem:[#allocation9 + $0x68] ss:$24 sps:$4 sm:$0xff]   ;;  %v3348_v58 = vld [vmem:[#allocation9 + $0xfc] ss:$24 sps:$4 sm:$0xff]   ;;  %v3346_v52 = vld [vmem:[#allocation9 + $0xf8] ss:$24 sps:$4 sm:$0xff]  }
 0x14e   :  { %v620_v51 = vsel %vm612_vm8, %v527_v39, %v619_v18  ;;  %v634_v25 = vsel %vm612_vm8, %v539_v28, %v633_v15  ;;  %v613_v16 = vsel %vm612_vm8, %v521_v0, %v611_v43  ;;  %v627_v45 = vsel %vm612_vm8, %v533_v41, %v626_v11  ;;  %v3337_v37 = vld [vmem:[#allocation9 + $0x6c0] ss:$24 sps:$4 sm:$0xff]   ;;  %v3343_v32 = vld [vmem:[#allocation9 + $0x6f0] ss:$24 sps:$4 sm:$0xff]   ;;  %v3351_v47 = vld [vmem:[#allocation9 + $0x724] ss:$24 sps:$4 sm:$0xff]  }
 0x14f   :  { %v648_v40 = vsel %vm612_vm8, %v551_v1, %v647_v4  ;;  %v3354_v2 = vld [vmem:[#allocation9 + $0x12c] ss:$24 sps:$4 sm:$0xff]   ;;  %v3349_v5 = vld [vmem:[#allocation9 + $0x720] ss:$24 sps:$4 sm:$0xff]   ;;  %v3360_v24 = vld [vmem:[#allocation9 + $0x15c] ss:$24 sps:$4 sm:$0xff]  }
 0x150   :  { %v3352_v30 = vld [vmem:[#allocation9 + $0x128] ss:$24 sps:$4 sm:$0xff]   ;;  %v3357_v14 = vld [vmem:[#allocation9 + $0x754] ss:$24 sps:$4 sm:$0xff]   ;;  %v3358_v38 = vld [vmem:[#allocation9 + $0x158] ss:$24 sps:$4 sm:$0xff]  }
 0x151   :  { %v3355_v59 = vld [vmem:[#allocation9 + $0x750] ss:$24 sps:$4 sm:$0xff]   ;;  %v3363_v17 = vld [vmem:[#allocation9 + $0x784] ss:$24 sps:$4 sm:$0xff]   ;;  %v3361_v63 = vld [vmem:[#allocation9 + $0x780] ss:$24 sps:$4 sm:$0xff]  }
 0x152   :  { %v3366_v54 = vld [vmem:[#allocation9 + $0x18c] ss:$24 sps:$4 sm:$0xff]   ;;  %v3364_v42 = vld [vmem:[#allocation9 + $0x188] ss:$24 sps:$4 sm:$0xff]   ;;  %v3372_v10 = vld [vmem:[#allocation9 + $0x1bc] ss:$24 sps:$4 sm:$0xff]  }
 0x153   :  { %v3369_v20 = vld [vmem:[#allocation9 + $0x7b4] ss:$24 sps:$4 sm:$0xff]   ;;  %v3367_v39 = vld [vmem:[#allocation9 + $0x7b0] ss:$24 sps:$4 sm:$0xff]   ;;  %v3375_v28 = vld [vmem:[#allocation9 + $0x7e4] ss:$24 sps:$4 sm:$0xff]  }
 0x154   :  { %v3370_v18 = vld [vmem:[#allocation9 + $0x1b8] ss:$24 sps:$4 sm:$0xff]   ;;  %v3378_v0 = vld [vmem:[#allocation9 + $0x1ec] ss:$24 sps:$4 sm:$0xff]   ;;  %v3376_v1 = vld [vmem:[#allocation9 + $0x1e8] ss:$24 sps:$4 sm:$0xff]  }
 0x155   :  { %v3373_v41 = vld [vmem:[#allocation9 + $0x7e0] ss:$24 sps:$4 sm:$0xff]   ;;  %v3381_v15 = vld [vmem:[#allocation9 + $0x814] ss:$24 sps:$4 sm:$0xff]   ;;  %v3379_v11 = vld [vmem:[#allocation9 + $0x810] ss:$24 sps:$4 sm:$0xff]  }
 0x156   :  { %v3384_v43 = vld [vmem:[#allocation9 + $0x21c] ss:$24 sps:$4 sm:$0xff]   ;;  %v3382_v4 = vld [vmem:[#allocation9 + $0x218] ss:$24 sps:$4 sm:$0xff]  }
 0x16f   :  { %v691_v26 = vpop.permute.xlu0 %690 }
 0x170   :  { %v694_v23 = vmul.f32 %v691_v26, %v620_v51  ;;  %v696_v50 = vmul.f32 %v691_v26, %v634_v25  ;;  %v693_v13 = vmul.f32 %v691_v26, %v613_v16  ;;  %v695_v9 = vmul.f32 %v691_v26, %v627_v45  ;;  %v3387_v51 = vld [vmem:[#allocation9 + $0x844] ss:$24 sps:$4 sm:$0xff]   ;;  %v3385_v25 = vld [vmem:[#allocation9 + $0x840] ss:$24 sps:$4 sm:$0xff]   ;;  %v3393_v45 = vld [vmem:[#allocation9 + $0x874] ss:$24 sps:$4 sm:$0xff]  }
 0x171   :  { %v698_v7 = vmul.f32 %v691_v26, %v648_v40  ;;  %v4257_v3 = vmul.f32 %v691_v26, %v4395_v33  ;;  %v3390_v26 = vld [vmem:[#allocation9 + $0x24c] ss:$24 sps:$4 sm:$0xff]   ;;  %v3388_v16 = vld [vmem:[#allocation9 + $0x248] ss:$24 sps:$4 sm:$0xff]   ;;  %v3396_v40 = vld [vmem:[#allocation9 + $0x27c] ss:$24 sps:$4 sm:$0xff]  }
 0x172   :  { %v4259_v12 = vpack.c.bf16 %v694_v23, %v694_v23  ;;  %v4261_v46 = vpack.c.bf16 %v696_v50, %v696_v50  ;;  %v4263_v60 = vpack.c.bf16 %v693_v13, %v693_v13  ;;  %v4265_v8 = vpack.c.bf16 %v695_v9, %v695_v9  ;;  %v3391_v23 = vld [vmem:[#allocation9 + $0x870] ss:$24 sps:$4 sm:$0xff]   ;;  %v3399_v13 = vld [vmem:[#allocation9 + $0x8a4] ss:$24 sps:$4 sm:$0xff]  }
 0x173   :  { %v4271_v21 = vpack.c.bf16 %v698_v7, %v698_v7  ;;  %v3394_v50 = vld [vmem:[#allocation9 + $0x278] ss:$24 sps:$4 sm:$0xff]   ;;  %v3402_v9 = vld [vmem:[#allocation9 + $0x2ac] ss:$24 sps:$4 sm:$0xff]   ;;  %v3400_v33 = vld [vmem:[#allocation9 + $0x2a8] ss:$24 sps:$4 sm:$0xff]  }
 0x174   :  { %2509 = vmatprep.mubr.bf16.mxu1 %v4259_v12  ;;  %2550 = vmatprep.mubr.bf16.mxu0 %v4261_v46  ;;  %v3397_v7 = vld [vmem:[#allocation9 + $0x8a0] ss:$24 sps:$4 sm:$0xff]  }
 0x175   :  { %2510 = vmatmul.mubr.bf16.vlgmr.msra.gmra.mrb[0].mxu1 %v4263_v60  ;;  %2551 = vmatmul.mubr.bf16.vlgmr.msra.gmra.mrb[0].mxu0 %v4265_v8 }
 0x176   :  { %2560 = vmatpush1.bf16.msra.mxu0 %v3313_v49  ;;  %2601 = vmatpush1.bf16.msra.mxu1 %v3316_v53  ;;  %v3405_v49 = vld [vmem:[#allocation9 + $0x8d4] ss:$24 sps:$4 sm:$0xff]  }
 0x177   :  { %2591 = vmatprep.mubr.bf16.mxu0 %v4271_v21  ;;  %2632 = vmatprep.mubr.bf16.mxu1 %v4259_v12  ;;  %v3408_v53 = vld [vmem:[#allocation9 + $0x2dc] ss:$24 sps:$4 sm:$0xff]  }
 0x178   :  { %2561 = vmatprep.subr.bf16.mxu0 %v3321_v62  ;;  %2602 = vmatprep.subr.bf16.mxu1 %v3324_v56  ;;  %v3403_v62 = vld [vmem:[#allocation9 + $0x8d0] ss:$24 sps:$4 sm:$0xff]  }
 0x179   :  { %v3406_v56 = vld [vmem:[#allocation9 + $0x2d8] ss:$24 sps:$4 sm:$0xff]  }
 0x17a   :  { %2562 = vmatpush1.bf16.msra.mxu0 %v3319_v31  ;;  %2603 = vmatpush1.bf16.msra.mxu1 %v3322_v35  ;;  %v3411_v31 = vld [vmem:[#allocation9 + $0x30c] ss:$24 sps:$4 sm:$0xff]  }
 0x17b   :  { %2563 = vmatprep.subr.bf16.mxu0 %v3327_v55  ;;  %2604 = vmatprep.subr.bf16.mxu1 %v3330_v57  ;;  %v3414_v35 = vld [vmem:[#allocation9 + $0x14] ss:$24 sps:$4 sm:$0xff]   ;;  %v3409_v55 = vld [vmem:[#allocation9 + $0x308] ss:$24 sps:$4 sm:$0xff]   ;;  %v4277_v57 = vpack.c.bf16 %v4257_v3, %v4257_v3 }
 0x17c   :  { %v3426_v3 = vld [vmem:[#allocation9 + $0x74] ss:$24 sps:$4 sm:$0xff]  }
 0x17e   :  { %2564 = vmatpush1.bf16.msra.mxu0 %v3325_v6  ;;  %2605 = vmatpush1.bf16.msra.mxu1 %v3328_v48  ;;  %v3412_v6 = vld [vmem:[#allocation9 + $0x10] ss:$24 sps:$4 sm:$0xff]   ;;  %v3417_v48 = vld [vmem:[#allocation9 + $0x33c] ss:$24 sps:$4 sm:$0xff]  }
 0x17f   :  { %2565 = vmatprep.subr.bf16.mxu0 %v3333_v19  ;;  %2606 = vmatprep.subr.bf16.mxu1 %v3336_v44  ;;  %v3420_v19 = vld [vmem:[#allocation9 + $0x44] ss:$24 sps:$4 sm:$0xff]   ;;  %v3415_v44 = vld [vmem:[#allocation9 + $0x338] ss:$24 sps:$4 sm:$0xff]  }
 0x182   :  { %2566 = vmatpush1.bf16.msra.mxu0 %v3331_v61  ;;  %2607 = vmatpush1.bf16.msra.mxu1 %v3334_v22  ;;  %v3418_v61 = vld [vmem:[#allocation9 + $0x40] ss:$24 sps:$4 sm:$0xff]   ;;  %v3423_v22 = vld [vmem:[#allocation9 + $0x36c] ss:$24 sps:$4 sm:$0xff]  }
 0x183   :  { %2567 = vmatprep.subr.bf16.mxu0 %v3339_v34  ;;  %2608 = vmatprep.subr.bf16.mxu1 %v3342_v29  ;;  %v3421_v34 = vld [vmem:[#allocation9 + $0x368] ss:$24 sps:$4 sm:$0xff]  }
 0x184   :  { %v3424_v29 = vld [vmem:[#allocation9 + $0x70] ss:$24 sps:$4 sm:$0xff]  }
 0x186   :  { %2568 = vmatpush1.bf16.msra.mxu0 %v3337_v37  ;;  %2609 = vmatpush1.bf16.msra.mxu1 %v3340_v27  ;;  %v3429_v37 = vld [vmem:[#allocation9 + $0x39c] ss:$24 sps:$4 sm:$0xff]  }
 0x187   :  { %2569 = vmatprep.subr.bf16.mxu0 %v3345_v36  ;;  %2610 = vmatprep.subr.bf16.mxu1 %v3348_v58  ;;  %v3432_v27 = vld [vmem:[#allocation9 + $0xa4] ss:$24 sps:$4 sm:$0xff]   ;;  %v3427_v36 = vld [vmem:[#allocation9 + $0x398] ss:$24 sps:$4 sm:$0xff]  }
 0x188   :  { %v3430_v58 = vld [vmem:[#allocation9 + $0xa0] ss:$24 sps:$4 sm:$0xff]  }
 0x18a   :  { %2570 = vmatpush1.bf16.msra.mxu0 %v3343_v32  ;;  %2611 = vmatpush1.bf16.msra.mxu1 %v3346_v52  ;;  %v3435_v32 = vld [vmem:[#allocation9 + $0x3cc] ss:$24 sps:$4 sm:$0xff]   ;;  %v3433_v52 = vld [vmem:[#allocation9 + $0x3c8] ss:$24 sps:$4 sm:$0xff]  }
 0x18b   :  { %2571 = vmatprep.subr.bf16.mxu0 %v3351_v47  ;;  %2612 = vmatprep.subr.bf16.mxu1 %v3354_v2  ;;  %v3436_v47 = vld [vmem:[#allocation9 + $0xd0] ss:$24 sps:$4 sm:$0xff]   ;;  %v3441_v2 = vld [vmem:[#allocation9 + $0x3fc] ss:$24 sps:$4 sm:$0xff]  }
 0x18e   :  { %2572 = vmatpush1.bf16.msra.mxu0 %v3349_v5  ;;  %2613 = vmatpush1.bf16.msra.mxu1 %v3352_v30  ;;  %v3444_v5 = vld [vmem:[#allocation9 + $0x104] ss:$24 sps:$4 sm:$0xff]   ;;  %v3439_v30 = vld [vmem:[#allocation9 + $0x3f8] ss:$24 sps:$4 sm:$0xff]  }
 0x18f   :  { %2573 = vmatprep.subr.bf16.mxu0 %v3357_v14  ;;  %2614 = vmatprep.subr.bf16.mxu1 %v3360_v24  ;;  %v3442_v14 = vld [vmem:[#allocation9 + $0x100] ss:$24 sps:$4 sm:$0xff]   ;;  %v3447_v24 = vld [vmem:[#allocation9 + $0x42c] ss:$24 sps:$4 sm:$0xff]  }
 0x192   :  { %2574 = vmatpush1.bf16.msra.mxu0 %v3355_v59  ;;  %2615 = vmatpush1.bf16.msra.mxu1 %v3358_v38  ;;  %v3450_v59 = vld [vmem:[#allocation9 + $0x134] ss:$24 sps:$4 sm:$0xff]   ;;  %v3445_v38 = vld [vmem:[#allocation9 + $0x428] ss:$24 sps:$4 sm:$0xff]  }
 0x193   :  { %2575 = vmatprep.subr.bf16.mxu0 %v3363_v17  ;;  %2616 = vmatprep.subr.bf16.mxu1 %v3366_v54  ;;  %v3448_v17 = vld [vmem:[#allocation9 + $0x130] ss:$24 sps:$4 sm:$0xff]   ;;  %v3453_v54 = vld [vmem:[#allocation9 + $0x45c] ss:$24 sps:$4 sm:$0xff]  }
 0x196   :  { %2576 = vmatpush1.bf16.msra.mxu0 %v3361_v63  ;;  %2617 = vmatpush1.bf16.msra.mxu1 %v3364_v42  ;;  %v3456_v63 = vld [vmem:[#allocation9 + $0x164] ss:$24 sps:$4 sm:$0xff]   ;;  %v3451_v42 = vld [vmem:[#allocation9 + $0x458] ss:$24 sps:$4 sm:$0xff]  }
 0x197   :  { %2577 = vmatprep.subr.bf16.mxu0 %v3369_v20  ;;  %2618 = vmatprep.subr.bf16.mxu1 %v3372_v10  ;;  %v3454_v20 = vld [vmem:[#allocation9 + $0x160] ss:$24 sps:$4 sm:$0xff]   ;;  %v3459_v10 = vld [vmem:[#allocation9 + $0x48c] ss:$24 sps:$4 sm:$0xff]  }
 0x19a   :  { %2578 = vmatpush1.bf16.msra.mxu0 %v3367_v39  ;;  %2619 = vmatpush1.bf16.msra.mxu1 %v3370_v18  ;;  %v3462_v39 = vld [vmem:[#allocation9 + $0x194] ss:$24 sps:$4 sm:$0xff]   ;;  %v3457_v18 = vld [vmem:[#allocation9 + $0x488] ss:$24 sps:$4 sm:$0xff]  }
 0x19b   :  { %2579 = vmatprep.subr.bf16.mxu0 %v3375_v28  ;;  %2620 = vmatprep.subr.bf16.mxu1 %v3378_v0  ;;  %v3460_v28 = vld [vmem:[#allocation9 + $0x190] ss:$24 sps:$4 sm:$0xff]   ;;  %v3465_v0 = vld [vmem:[#allocation9 + $0x4bc] ss:$24 sps:$4 sm:$0xff]  }
 0x19e   :  { %2580 = vmatpush1.bf16.msra.mxu0 %v3373_v41  ;;  %2621 = vmatpush1.bf16.msra.mxu1 %v3376_v1  ;;  %v3468_v41 = vld [vmem:[#allocation9 + $0x1c4] ss:$24 sps:$4 sm:$0xff]   ;;  %v3463_v1 = vld [vmem:[#allocation9 + $0x4b8] ss:$24 sps:$4 sm:$0xff]  }
 0x19f   :  { %2581 = vmatprep.subr.bf16.mxu0 %v3381_v15  ;;  %2622 = vmatprep.subr.bf16.mxu1 %v3384_v43  ;;  %v3466_v15 = vld [vmem:[#allocation9 + $0x1c0] ss:$24 sps:$4 sm:$0xff]   ;;  %v3471_v43 = vld [vmem:[#allocation9 + $0x4ec] ss:$24 sps:$4 sm:$0xff]  }
 0x1a2   :  { %2582 = vmatpush1.bf16.msra.mxu0 %v3379_v11  ;;  %2623 = vmatpush1.bf16.msra.mxu1 %v3382_v4  ;;  %v3474_v11 = vld [vmem:[#allocation9 + $0x1f4] ss:$24 sps:$4 sm:$0xff]   ;;  %v3469_v4 = vld [vmem:[#allocation9 + $0x4e8] ss:$24 sps:$4 sm:$0xff]  }
 0x1a3   :  { %2583 = vmatprep.subr.bf16.mxu0 %v3387_v51  ;;  %2624 = vmatprep.subr.bf16.mxu1 %v3390_v26  ;;  %v3472_v51 = vld [vmem:[#allocation9 + $0x1f0] ss:$24 sps:$4 sm:$0xff]   ;;  %v3477_v26 = vld [vmem:[#allocation9 + $0x51c] ss:$24 sps:$4 sm:$0xff]  }
 0x1a6   :  { %2584 = vmatpush1.bf16.msra.mxu0 %v3385_v25  ;;  %2625 = vmatpush1.bf16.msra.mxu1 %v3388_v16  ;;  %v3480_v25 = vld [vmem:[#allocation9 + $0x224] ss:$24 sps:$4 sm:$0xff]   ;;  %v3475_v16 = vld [vmem:[#allocation9 + $0x518] ss:$24 sps:$4 sm:$0xff]  }
 0x1a7   :  { %2585 = vmatprep.subr.bf16.mxu0 %v3393_v45  ;;  %2626 = vmatprep.subr.bf16.mxu1 %v3396_v40  ;;  %v3478_v45 = vld [vmem:[#allocation9 + $0x220] ss:$24 sps:$4 sm:$0xff]   ;;  %v3483_v40 = vld [vmem:[#allocation9 + $0x54c] ss:$24 sps:$4 sm:$0xff]  }
 0x1aa   :  { %2586 = vmatpush1.bf16.msra.mxu0 %v3391_v23  ;;  %2627 = vmatpush1.bf16.msra.mxu1 %v3394_v50  ;;  %v3486_v23 = vld [vmem:[#allocation9 + $0x254] ss:$24 sps:$4 sm:$0xff]   ;;  %v3481_v50 = vld [vmem:[#allocation9 + $0x548] ss:$24 sps:$4 sm:$0xff]  }
 0x1ab   :  { %2587 = vmatprep.subr.bf16.mxu0 %v3399_v13  ;;  %2628 = vmatprep.subr.bf16.mxu1 %v3402_v9  ;;  %v3484_v13 = vld [vmem:[#allocation9 + $0x250] ss:$24 sps:$4 sm:$0xff]   ;;  %v3489_v9 = vld [vmem:[#allocation9 + $0x57c] ss:$24 sps:$4 sm:$0xff]  }
 0x1ae   :  { %2588 = vmatpush1.bf16.msra.mxu0 %v3397_v7  ;;  %2629 = vmatpush1.bf16.msra.mxu1 %v3400_v33  ;;  %v3492_v7 = vld [vmem:[#allocation9 + $0x284] ss:$24 sps:$4 sm:$0xff]   ;;  %v3487_v33 = vld [vmem:[#allocation9 + $0x578] ss:$24 sps:$4 sm:$0xff]  }
 0x1af   :  { %2589 = vmatprep.subr.bf16.mxu0 %v3405_v49  ;;  %2630 = vmatprep.subr.bf16.mxu1 %v3408_v53  ;;  %v3490_v49 = vld [vmem:[#allocation9 + $0x280] ss:$24 sps:$4 sm:$0xff]   ;;  %v3495_v53 = vld [vmem:[#allocation9 + $0x5ac] ss:$24 sps:$4 sm:$0xff]  }
 0x1b2   :  { %2590 = vmatpush1.bf16.msra.mxu0 %v3403_v62  ;;  %2631 = vmatpush1.bf16.msra.mxu1 %v3406_v56  ;;  %v3498_v62 = vld [vmem:[#allocation9 + $0x2b4] ss:$24 sps:$4 sm:$0xff]   ;;  %v3493_v56 = vld [vmem:[#allocation9 + $0x5a8] ss:$24 sps:$4 sm:$0xff]  }
 0x1b3   :  { %2641 = vmatprep.subr.bf16.mxu1 %v3411_v31  ;;  %2723 = vmatprep.subr.bf16.mxu0 %v3414_v35  ;;  %v3496_v31 = vld [vmem:[#allocation9 + $0x2b0] ss:$24 sps:$4 sm:$0xff]   ;;  %v3501_v35 = vld [vmem:[#allocation9 + $0x5dc] ss:$24 sps:$4 sm:$0xff]  }
 0x1b5   :  { %2592 = vmatmul.mubr.bf16.vlgmr.msra.gmra.mrb[0].mxu0 %v4277_v57  ;;  %2633 = vmatmul.mubr.bf16.vlgmr.msra.gmra.mrb[4].mxu1 %v4263_v60 }
 0x1b6   :  { %2642 = vmatpush1.bf16.msra.mxu1 %v3409_v55  ;;  %2673 = vmatprep.mubr.bf16.mxu1 %v4261_v46  ;;  %v3504_v55 = vld [vmem:[#allocation9 + $0x2e4] ss:$24 sps:$4 sm:$0xff]  }
 0x1b7   :  { %2724 = vmatpush1.bf16.msra.mxu0 %v3412_v6  ;;  %2755 = vmatprep.mubr.bf16.mxu0 %v4259_v12  ;;  %v3438_v12 = vld [vmem:[#allocation9 + $0xd4] ss:$24 sps:$4 sm:$0xff]   ;;  %v3499_v6 = vld [vmem:[#allocation9 + $0x5d8] ss:$24 sps:$4 sm:$0xff]  }
 0x1b8   :  { %2643 = vmatprep.subr.bf16.mxu1 %v3417_v48  ;;  %2725 = vmatprep.subr.bf16.mxu0 %v3420_v19  ;;  %v3502_v48 = vld [vmem:[#allocation9 + $0x2e0] ss:$24 sps:$4 sm:$0xff]   ;;  %v3507_v19 = vld [vmem:[#allocation9 + $0x60c] ss:$24 sps:$4 sm:$0xff]  }
 0x1ba   :  { %2644 = vmatpush1.bf16.msra.mxu1 %v3415_v44  ;;  %v3510_v44 = vld [vmem:[#allocation9 + $0x314] ss:$24 sps:$4 sm:$0xff]  }
 0x1bb   :  { %2726 = vmatpush1.bf16.msra.mxu0 %v3418_v61  ;;  %2645 = vmatprep.subr.bf16.mxu1 %v3423_v22  ;;  %v3505_v61 = vld [vmem:[#allocation9 + $0x608] ss:$24 sps:$4 sm:$0xff]  }
 0x1bc   :  { %2727 = vmatprep.subr.bf16.mxu0 %v3426_v3  ;;  %v3508_v22 = vld [vmem:[#allocation9 + $0x310] ss:$24 sps:$4 sm:$0xff]   ;;  %v3513_v3 = vld [vmem:[#allocation9 + $0x63c] ss:$24 sps:$4 sm:$0xff]  }
 0x1be   :  { %2646 = vmatpush1.bf16.msra.mxu1 %v3421_v34  ;;  %v3516_v34 = vld [vmem:[#allocation9 + $0x344] ss:$24 sps:$4 sm:$0xff]  }
 0x1bf   :  { %2728 = vmatpush1.bf16.msra.mxu0 %v3424_v29  ;;  %2647 = vmatprep.subr.bf16.mxu1 %v3429_v37  ;;  %v3511_v29 = vld [vmem:[#allocation9 + $0x638] ss:$24 sps:$4 sm:$0xff]  }
 0x1c0   :  { %2729 = vmatprep.subr.bf16.mxu0 %v3432_v27  ;;  %v3514_v37 = vld [vmem:[#allocation9 + $0x340] ss:$24 sps:$4 sm:$0xff]   ;;  %v3519_v27 = vld [vmem:[#allocation9 + $0x66c] ss:$24 sps:$4 sm:$0xff]  }
 0x1c2   :  { %2648 = vmatpush1.bf16.msra.mxu1 %v3427_v36  ;;  %v3522_v36 = vld [vmem:[#allocation9 + $0x374] ss:$24 sps:$4 sm:$0xff]  }
 0x1c3   :  { %2730 = vmatpush1.bf16.msra.mxu0 %v3430_v58  ;;  %2649 = vmatprep.subr.bf16.mxu1 %v3435_v32  ;;  %v3517_v58 = vld [vmem:[#allocation9 + $0x668] ss:$24 sps:$4 sm:$0xff]  }
 0x1c4   :  { %2731 = vmatprep.subr.bf16.mxu0 %v3438_v12  ;;  %v3520_v32 = vld [vmem:[#allocation9 + $0x370] ss:$24 sps:$4 sm:$0xff]   ;;  %v3525_v12 = vld [vmem:[#allocation9 + $0x69c] ss:$24 sps:$4 sm:$0xff]  }
 0x1c6   :  { %2650 = vmatpush1.bf16.msra.mxu1 %v3433_v52  ;;  %v3523_v52 = vld [vmem:[#allocation9 + $0x698] ss:$24 sps:$4 sm:$0xff]  }
 0x1c7   :  { %2732 = vmatpush1.bf16.msra.mxu0 %v3436_v47  ;;  %2651 = vmatprep.subr.bf16.mxu1 %v3441_v2  ;;  %v3526_v47 = vld [vmem:[#allocation9 + $0x3a0] ss:$24 sps:$4 sm:$0xff]   ;;  %v3531_v2 = vld [vmem:[#allocation9 + $0x6cc] ss:$24 sps:$4 sm:$0xff]  }
 0x1c8   :  { %2733 = vmatprep.subr.bf16.mxu0 %v3444_v5  ;;  %v3534_v5 = vld [vmem:[#allocation9 + $0x3d4] ss:$24 sps:$4 sm:$0xff]  }
 0x1ca   :  { %2652 = vmatpush1.bf16.msra.mxu1 %v3439_v30  ;;  %v3532_v30 = vld [vmem:[#allocation9 + $0x3d0] ss:$24 sps:$4 sm:$0xff]  }
 0x1cb   :  { %2734 = vmatpush1.bf16.msra.mxu0 %v3442_v14  ;;  %2653 = vmatprep.subr.bf16.mxu1 %v3447_v24  ;;  %v3537_v14 = vld [vmem:[#allocation9 + $0x6fc] ss:$24 sps:$4 sm:$0xff]  }
 0x1cc   :  { %2735 = vmatprep.subr.bf16.mxu0 %v3450_v59  ;;  %v3540_v24 = vld [vmem:[#allocation9 + $0x404] ss:$24 sps:$4 sm:$0xff]   ;;  %v3535_v59 = vld [vmem:[#allocation9 + $0x6f8] ss:$24 sps:$4 sm:$0xff]  }
 0x1ce   :  { %2654 = vmatpush1.bf16.msra.mxu1 %v3445_v38  ;;  %v3538_v38 = vld [vmem:[#allocation9 + $0x400] ss:$24 sps:$4 sm:$0xff]  }
 0x1cf   :  { %2736 = vmatpush1.bf16.msra.mxu0 %v3448_v17  ;;  %2655 = vmatprep.subr.bf16.mxu1 %v3453_v54  ;;  %v3543_v17 = vld [vmem:[#allocation9 + $0x72c] ss:$24 sps:$4 sm:$0xff]  }
 0x1d0   :  { %2737 = vmatprep.subr.bf16.mxu0 %v3456_v63  ;;  %v3546_v54 = vld [vmem:[#allocation9 + $0x434] ss:$24 sps:$4 sm:$0xff]   ;;  %v3541_v63 = vld [vmem:[#allocation9 + $0x728] ss:$24 sps:$4 sm:$0xff]  }
 0x1d2   :  { %2656 = vmatpush1.bf16.msra.mxu1 %v3451_v42  ;;  %v3544_v42 = vld [vmem:[#allocation9 + $0x430] ss:$24 sps:$4 sm:$0xff]  }
 0x1d3   :  { %2738 = vmatpush1.bf16.msra.mxu0 %v3454_v20  ;;  %2657 = vmatprep.subr.bf16.mxu1 %v3459_v10  ;;  %v3549_v20 = vld [vmem:[#allocation9 + $0x75c] ss:$24 sps:$4 sm:$0xff]  }
 0x1d4   :  { %2739 = vmatprep.subr.bf16.mxu0 %v3462_v39  ;;  %v3552_v10 = vld [vmem:[#allocation9 + $0x464] ss:$24 sps:$4 sm:$0xff]   ;;  %v3547_v39 = vld [vmem:[#allocation9 + $0x758] ss:$24 sps:$4 sm:$0xff]  }
 0x1d6   :  { %2658 = vmatpush1.bf16.msra.mxu1 %v3457_v18  ;;  %v3550_v18 = vld [vmem:[#allocation9 + $0x460] ss:$24 sps:$4 sm:$0xff]  }
 0x1d7   :  { %2740 = vmatpush1.bf16.msra.mxu0 %v3460_v28  ;;  %2659 = vmatprep.subr.bf16.mxu1 %v3465_v0  ;;  %v3555_v28 = vld [vmem:[#allocation9 + $0x78c] ss:$24 sps:$4 sm:$0xff]  }
 0x1d8   :  { %2741 = vmatprep.subr.bf16.mxu0 %v3468_v41  ;;  %v3558_v0 = vld [vmem:[#allocation9 + $0x494] ss:$24 sps:$4 sm:$0xff]   ;;  %v3553_v41 = vld [vmem:[#allocation9 + $0x788] ss:$24 sps:$4 sm:$0xff]  }
 0x1da   :  { %2660 = vmatpush1.bf16.msra.mxu1 %v3463_v1  ;;  %v3556_v1 = vld [vmem:[#allocation9 + $0x490] ss:$24 sps:$4 sm:$0xff]  }
 0x1db   :  { %2742 = vmatpush1.bf16.msra.mxu0 %v3466_v15  ;;  %2661 = vmatprep.subr.bf16.mxu1 %v3471_v43  ;;  %v3561_v15 = vld [vmem:[#allocation9 + $0x7bc] ss:$24 sps:$4 sm:$0xff]  }
 0x1dc   :  { %2743 = vmatprep.subr.bf16.mxu0 %v3474_v11  ;;  %v3564_v43 = vld [vmem:[#allocation9 + $0x4c4] ss:$24 sps:$4 sm:$0xff]   ;;  %v3559_v11 = vld [vmem:[#allocation9 + $0x7b8] ss:$24 sps:$4 sm:$0xff]  }
 0x1de   :  { %2662 = vmatpush1.bf16.msra.mxu1 %v3469_v4  ;;  %v3562_v4 = vld [vmem:[#allocation9 + $0x4c0] ss:$24 sps:$4 sm:$0xff]  }
 0x1df   :  { %2744 = vmatpush1.bf16.msra.mxu0 %v3472_v51  ;;  %2663 = vmatprep.subr.bf16.mxu1 %v3477_v26  ;;  %v3567_v51 = vld [vmem:[#allocation9 + $0x7ec] ss:$24 sps:$4 sm:$0xff]  }
 0x1e0   :  { %2745 = vmatprep.subr.bf16.mxu0 %v3480_v25  ;;  %v3570_v26 = vld [vmem:[#allocation9 + $0x4f4] ss:$24 sps:$4 sm:$0xff]   ;;  %v3565_v25 = vld [vmem:[#allocation9 + $0x7e8] ss:$24 sps:$4 sm:$0xff]  }
 0x1e2   :  { %2664 = vmatpush1.bf16.msra.mxu1 %v3475_v16  ;;  %v3568_v16 = vld [vmem:[#allocation9 + $0x4f0] ss:$24 sps:$4 sm:$0xff]  }
 0x1e3   :  { %2746 = vmatpush1.bf16.msra.mxu0 %v3478_v45  ;;  %2665 = vmatprep.subr.bf16.mxu1 %v3483_v40  ;;  %v3573_v45 = vld [vmem:[#allocation9 + $0x81c] ss:$24 sps:$4 sm:$0xff]  }
 0x1e4   :  { %2747 = vmatprep.subr.bf16.mxu0 %v3486_v23  ;;  %v3576_v40 = vld [vmem:[#allocation9 + $0x524] ss:$24 sps:$4 sm:$0xff]   ;;  %v3571_v23 = vld [vmem:[#allocation9 + $0x818] ss:$24 sps:$4 sm:$0xff]  }
 0x1e6   :  { %2666 = vmatpush1.bf16.msra.mxu1 %v3481_v50  ;;  %v3574_v50 = vld [vmem:[#allocation9 + $0x520] ss:$24 sps:$4 sm:$0xff]  }
 0x1e7   :  { %2748 = vmatpush1.bf16.msra.mxu0 %v3484_v13  ;;  %2667 = vmatprep.subr.bf16.mxu1 %v3489_v9  ;;  %v3579_v13 = vld [vmem:[#allocation9 + $0x84c] ss:$24 sps:$4 sm:$0xff]  }
 0x1e8   :  { %2749 = vmatprep.subr.bf16.mxu0 %v3492_v7  ;;  %v3582_v9 = vld [vmem:[#allocation9 + $0x554] ss:$24 sps:$4 sm:$0xff]   ;;  %v3577_v7 = vld [vmem:[#allocation9 + $0x848] ss:$24 sps:$4 sm:$0xff]  }
 0x1ea   :  { %2668 = vmatpush1.bf16.msra.mxu1 %v3487_v33  ;;  %v3580_v33 = vld [vmem:[#allocation9 + $0x550] ss:$24 sps:$4 sm:$0xff]  }
 0x1eb   :  { %2750 = vmatpush1.bf16.msra.mxu0 %v3490_v49  ;;  %2669 = vmatprep.subr.bf16.mxu1 %v3495_v53  ;;  %v3585_v49 = vld [vmem:[#allocation9 + $0x87c] ss:$24 sps:$4 sm:$0xff]  }
 0x1ec   :  { %2751 = vmatprep.subr.bf16.mxu0 %v3498_v62  ;;  %v3588_v53 = vld [vmem:[#allocation9 + $0x584] ss:$24 sps:$4 sm:$0xff]   ;;  %v3583_v62 = vld [vmem:[#allocation9 + $0x878] ss:$24 sps:$4 sm:$0xff]  }
 0x1ee   :  { %2670 = vmatpush1.bf16.msra.mxu1 %v3493_v56  ;;  %v3586_v56 = vld [vmem:[#allocation9 + $0x580] ss:$24 sps:$4 sm:$0xff]  }
 0x1ef   :  { %2752 = vmatpush1.bf16.msra.mxu0 %v3496_v31  ;;  %2671 = vmatprep.subr.bf16.mxu1 %v3501_v35  ;;  %v3591_v31 = vld [vmem:[#allocation9 + $0x8ac] ss:$24 sps:$4 sm:$0xff]  }
 0x1f0   :  { %2753 = vmatprep.subr.bf16.mxu0 %v3504_v55  ;;  %v3594_v35 = vld [vmem:[#allocation9 + $0x5b4] ss:$24 sps:$4 sm:$0xff]   ;;  %v3589_v55 = vld [vmem:[#allocation9 + $0x8a8] ss:$24 sps:$4 sm:$0xff]  }
 0x1f2   :  { %2672 = vmatpush1.bf16.msra.mxu1 %v3499_v6  ;;  %v3592_v6 = vld [vmem:[#allocation9 + $0x5b0] ss:$24 sps:$4 sm:$0xff]  }
 0x1f3   :  { %2754 = vmatpush1.bf16.msra.mxu0 %v3502_v48  ;;  %2682 = vmatprep.subr.bf16.mxu1 %v3507_v19  ;;  %v3597_v48 = vld [vmem:[#allocation9 + $0x8dc] ss:$24 sps:$4 sm:$0xff]  }
 0x1f4   :  { %2764 = vmatprep.subr.bf16.mxu0 %v3510_v44  ;;  %v3600_v19 = vld [vmem:[#allocation9 + $0x5e4] ss:$24 sps:$4 sm:$0xff]   ;;  %v3595_v44 = vld [vmem:[#allocation9 + $0x8d8] ss:$24 sps:$4 sm:$0xff]  }
 0x1f5   :  { %2674 = vmatmul.mubr.bf16.vlgmr.msra.gmra.mrb[4].mxu1 %v4265_v8 }
 0x1f6   :  { %2756 = vmatmul.mubr.bf16.vlgmr.msra.gmra.mrb[4].mxu0 %v4263_v60  ;;  %2683 = vmatpush1.bf16.msra.mxu1 %v3505_v61  ;;  %v3528_v60 = vld [vmem:[#allocation9 + $0x3a4] ss:$24 sps:$4 sm:$0xff]   ;;  %v3598_v61 = vld [vmem:[#allocation9 + $0x5e0] ss:$24 sps:$4 sm:$0xff]  }
 0x1f7   :  { %2714 = vmatprep.mubr.bf16.mxu1 %v4271_v21  ;;  %2765 = vmatpush1.bf16.msra.mxu0 %v3508_v22  ;;  %v3603_v22 = vld [vmem:[#allocation9 + $0x614] ss:$24 sps:$4 sm:$0xff]  }
 0x1f8   :  { %2796 = vmatprep.mubr.bf16.mxu0 %v4261_v46  ;;  %2684 = vmatprep.subr.bf16.mxu1 %v3513_v3  ;;  %v3529_v46 = vld [vmem:[#allocation9 + $0x6c8] ss:$24 sps:$4 sm:$0xff]  }
 0x1f9   :  { %2766 = vmatprep.subr.bf16.mxu0 %v3516_v34  ;;  %v3601_v3 = vld [vmem:[#allocation9 + $0x610] ss:$24 sps:$4 sm:$0xff]   ;;  %v3606_v34 = vld [vmem:[#allocation9 + $0x644] ss:$24 sps:$4 sm:$0xff]  }
 0x1fa   :  { %2685 = vmatpush1.bf16.msra.mxu1 %v3511_v29  ;;  %v3604_v29 = vld [vmem:[#allocation9 + $0x640] ss:$24 sps:$4 sm:$0xff]  }
 0x1fb   :  { %2767 = vmatpush1.bf16.msra.mxu0 %v3514_v37  ;;  %2686 = vmatprep.subr.bf16.mxu1 %v3519_v27  ;;  %v3609_v37 = vld [vmem:[#allocation9 + $0x674] ss:$24 sps:$4 sm:$0xff]   ;;  %v3607_v27 = vld [vmem:[#allocation9 + $0x670] ss:$24 sps:$4 sm:$0xff]  }
 0x1fc   :  { %2768 = vmatprep.subr.bf16.mxu0 %v3522_v36  ;;  %v3612_v36 = vld [vmem:[#allocation9 + $0x6a4] ss:$24 sps:$4 sm:$0xff]  }
 0x1fe   :  { %2687 = vmatpush1.bf16.msra.mxu1 %v3517_v58  ;;  %v3610_v58 = vld [vmem:[#allocation9 + $0x6a0] ss:$24 sps:$4 sm:$0xff]  }
 0x1ff   :  { %2769 = vmatpush1.bf16.msra.mxu0 %v3520_v32  ;;  %2688 = vmatprep.subr.bf16.mxu1 %v3525_v12  ;;  %v3615_v32 = vld [vmem:[#allocation9 + $0x6d4] ss:$24 sps:$4 sm:$0xff]   ;;  %v4290_v12 = vld [vmem:[#allocation10] sm:$0x3f] }
 0x200   :  { %2770 = vmatprep.subr.bf16.mxu0 %v3528_v60  ;;  %v3613_v60 = vld [vmem:[#allocation9 + $0x6d0] ss:$24 sps:$4 sm:$0xff]  }
 0x202   :  { %2689 = vmatpush1.bf16.msra.mxu1 %v3523_v52  ;;  %v4396_v52 = vld [vmem:[#allocation17_spill] sm:$0xff] }
 0x203   :  { %2771 = vmatpush1.bf16.msra.mxu0 %v3526_v47  ;;  %2690 = vmatprep.subr.bf16.mxu1 %v3531_v2  ;;  %v4295_v2 = vpop.permute.xlu1 %1028 }
 0x204   :  { %2772 = vmatprep.subr.bf16.mxu0 %v3534_v5  ;;  %v3616_v5 = vld [vmem:[#allocation9 + $0x700] ss:$24 sps:$4 sm:$0xff]  }
 0x206   :  { %2691 = vmatpush1.bf16.msra.mxu1 %v3529_v46 }
 0x207   :  { %2773 = vmatpush1.bf16.msra.mxu0 %v3532_v30  ;;  %2692 = vmatprep.subr.bf16.mxu1 %v3537_v14  ;;  %v3621_v14 = vld [vmem:[#allocation9 + $0x734] ss:$24 sps:$4 sm:$0xff]  }
 0x208   :  { %2774 = vmatprep.subr.bf16.mxu0 %v3540_v24 }
 0x20a   :  { %2693 = vmatpush1.bf16.msra.mxu1 %v3535_v59 }
 0x20b   :  { %2775 = vmatpush1.bf16.msra.mxu0 %v3538_v38  ;;  %2694 = vmatprep.subr.bf16.mxu1 %v3543_v17 }
 0x20c   :  { %2776 = vmatprep.subr.bf16.mxu0 %v3546_v54  ;;  %v3619_v54 = vld [vmem:[#allocation9 + $0x730] ss:$24 sps:$4 sm:$0xff]  }
 0x20e   :  { %2695 = vmatpush1.bf16.msra.mxu1 %v3541_v63  ;;  %v3624_v63 = vld [vmem:[#allocation9 + $0x764] ss:$24 sps:$4 sm:$0xff]  }
 0x20f   :  { %2777 = vmatpush1.bf16.msra.mxu0 %v3544_v42  ;;  %2696 = vmatprep.subr.bf16.mxu1 %v3549_v20  ;;  %v3622_v42 = vld [vmem:[#allocation9 + $0x760] ss:$24 sps:$4 sm:$0xff]   ;;  %v3627_v20 = vld [vmem:[#allocation9 + $0x794] ss:$24 sps:$4 sm:$0xff]  }
 0x210   :  { %2778 = vmatprep.subr.bf16.mxu0 %v3552_v10  ;;  %v3625_v10 = vld [vmem:[#allocation9 + $0x790] ss:$24 sps:$4 sm:$0xff]  }
 0x212   :  { %2697 = vmatpush1.bf16.msra.mxu1 %v3547_v39  ;;  %v3630_v39 = vld [vmem:[#allocation9 + $0x7c4] ss:$24 sps:$4 sm:$0xff]  }
 0x213   :  { %2779 = vmatpush1.bf16.msra.mxu0 %v3550_v18  ;;  %2698 = vmatprep.subr.bf16.mxu1 %v3555_v28  ;;  %v3628_v18 = vld [vmem:[#allocation9 + $0x7c0] ss:$24 sps:$4 sm:$0xff]   ;;  %v3633_v28 = vld [vmem:[#allocation9 + $0x7f4] ss:$24 sps:$4 sm:$0xff]  }
 0x214   :  { %2780 = vmatprep.subr.bf16.mxu0 %v3558_v0  ;;  %v3631_v0 = vld [vmem:[#allocation9 + $0x7f0] ss:$24 sps:$4 sm:$0xff]  }
 0x216   :  { %2699 = vmatpush1.bf16.msra.mxu1 %v3553_v41  ;;  %v3636_v41 = vld [vmem:[#allocation9 + $0x824] ss:$24 sps:$4 sm:$0xff]  }
 0x217   :  { %2781 = vmatpush1.bf16.msra.mxu0 %v3556_v1  ;;  %2700 = vmatprep.subr.bf16.mxu1 %v3561_v15  ;;  %v3634_v1 = vld [vmem:[#allocation9 + $0x820] ss:$24 sps:$4 sm:$0xff]   ;;  %v3639_v15 = vld [vmem:[#allocation9 + $0x854] ss:$24 sps:$4 sm:$0xff]  }
 0x218   :  { %2782 = vmatprep.subr.bf16.mxu0 %v3564_v43  ;;  %v3637_v43 = vld [vmem:[#allocation9 + $0x850] ss:$24 sps:$4 sm:$0xff]  }
 0x21a   :  { %2701 = vmatpush1.bf16.msra.mxu1 %v3559_v11  ;;  %v3642_v11 = vld [vmem:[#allocation9 + $0x884] ss:$24 sps:$4 sm:$0xff]  }
 0x21b   :  { %2783 = vmatpush1.bf16.msra.mxu0 %v3562_v4  ;;  %2702 = vmatprep.subr.bf16.mxu1 %v3567_v51  ;;  %v3640_v4 = vld [vmem:[#allocation9 + $0x880] ss:$24 sps:$4 sm:$0xff]   ;;  %v3645_v51 = vld [vmem:[#allocation9 + $0x8b4] ss:$24 sps:$4 sm:$0xff]  }
 0x21c   :  { %2784 = vmatprep.subr.bf16.mxu0 %v3570_v26  ;;  %v3643_v26 = vld [vmem:[#allocation9 + $0x8b0] ss:$24 sps:$4 sm:$0xff]  }
 0x21e   :  { %2703 = vmatpush1.bf16.msra.mxu1 %v3565_v25  ;;  %v3648_v25 = vld [vmem:[#allocation9 + $0x8e4] ss:$24 sps:$4 sm:$0xff]  }
 0x21f   :  { %2785 = vmatpush1.bf16.msra.mxu0 %v3568_v16  ;;  %2704 = vmatprep.subr.bf16.mxu1 %v3573_v45  ;;  %v3646_v16 = vld [vmem:[#allocation9 + $0x8e0] ss:$24 sps:$4 sm:$0xff]   ;;  %v4398_v45 = vsub.s32 0, %v4396_v52 }
 0x220   :  { %2786 = vmatprep.subr.bf16.mxu0 %v3576_v40 }
 0x221   :  { %v999_v40 = vrot.slane %v4290_v12, %v4398_v45 }
 0x222   :  { %2705 = vmatpush1.bf16.msra.mxu1 %v3571_v23 }
 0x223   :  { %2787 = vmatpush1.bf16.msra.mxu0 %v3574_v50  ;;  %2706 = vmatprep.subr.bf16.mxu1 %v3579_v13  ;;  %v1031_v23 = vmul.f32 %v4295_v2, %v999_v40 }
 0x224   :  { %2788 = vmatprep.subr.bf16.mxu0 %v3582_v9 }
 0x226   :  { %2707 = vmatpush1.bf16.msra.mxu1 %v3577_v7 }
 0x227   :  { %2789 = vmatpush1.bf16.msra.mxu0 %v3580_v33  ;;  %2708 = vmatprep.subr.bf16.mxu1 %v3585_v49 }
 0x228   :  { %2790 = vmatprep.subr.bf16.mxu0 %v3588_v53 }
 0x22a   :  { %2709 = vmatpush1.bf16.msra.mxu1 %v3583_v62 }
 0x22b   :  { %2791 = vmatpush1.bf16.msra.mxu0 %v3586_v56  ;;  %2710 = vmatprep.subr.bf16.mxu1 %v3591_v31 }
 0x22c   :  { %2792 = vmatprep.subr.bf16.mxu0 %v3594_v35 }
 0x22e   :  { %2711 = vmatpush1.bf16.msra.mxu1 %v3589_v55  ;;  %v4399_v55 = vsub.s32 2, %v4396_v52 }
 0x22f   :  { %2793 = vmatpush1.bf16.msra.mxu0 %v3592_v6  ;;  %2712 = vmatprep.subr.bf16.mxu1 %v3597_v48  ;;  %v4400_v48 = vsub.s32 3, %v4396_v52 }
 0x230   :  { %2794 = vmatprep.subr.bf16.mxu0 %v3600_v19 }
 0x231   :  { %v1011_v19 = vrot.slane %v4290_v12, %v4400_v48 }
 0x232   :  { %2713 = vmatpush1.bf16.msra.mxu1 %v3595_v44 }
 0x233   :  { %2795 = vmatpush1.bf16.msra.mxu0 %v3598_v61 }
 0x234   :  { %2805 = vmatprep.subr.bf16.mxu0 %v3603_v22 }
 0x235   :  { %2715 = vmatmul.mubr.bf16.vlgmr.msra.gmra.mrb[4].mxu1 %v4277_v57 }
 0x236   :  { %2797 = vmatmul.mubr.bf16.vlgmr.msra.gmra.mrb[4].mxu0 %v4265_v8  ;;  %v4397_v8 = vsub.s32 1, %v4396_v52 }
 0x237   :  { %2806 = vmatpush1.bf16.msra.mxu0 %v3601_v3  ;;  %2837 = vmatprep.mubr.bf16.mxu0 %v4271_v21  ;;  %v3618_v21 = vld [vmem:[#allocation9 + $0x704] ss:$24 sps:$4 sm:$0xff]   ;;  %v1034_v3 = vmul.f32 %v4295_v2, %v1011_v19 }
 0x238   :  { %2807 = vmatprep.subr.bf16.mxu0 %v3606_v34  ;;  %v1003_v47 = vrot.slane %v4290_v12, %v4397_v8 }
 0x23a   :  { %v1032_v30 = vmul.f32 %v4295_v2, %v1003_v47 }
 0x23b   :  { %2808 = vmatpush1.bf16.msra.mxu0 %v3604_v29 }
 0x23c   :  { %2809 = vmatprep.subr.bf16.mxu0 %v3609_v37  ;;  %v4401_v37 = vsub.s32 4, %v4396_v52 }
 0x23f   :  { %2810 = vmatpush1.bf16.msra.mxu0 %v3607_v27  ;;  %v1015_v27 = vrot.slane %v4290_v12, %v4401_v37 }
 0x240   :  { %2811 = vmatprep.subr.bf16.mxu0 %v3612_v36  ;;  %v4402_v36 = vsub.s32 5, %v4396_v52 }
 0x241   :  { %v1035_v47 = vmul.f32 %v4295_v2, %v1015_v27 }
 0x243   :  { %2812 = vmatpush1.bf16.msra.mxu0 %v3610_v58  ;;  %v1019_v58 = vrot.slane %v4290_v12, %v4402_v36 }
 0x244   :  { %2813 = vmatprep.subr.bf16.mxu0 %v3615_v32 }
 0x247   :  { %2814 = vmatpush1.bf16.msra.mxu0 %v3613_v60 }
 0x248   :  { %v2511_v46 = vpop.f32.mrb[0].mxu1  ;;  %2815 = vmatprep.subr.bf16.mxu0 %v3618_v21 }
 0x249   :  { %v2513_v24 = vpop.f32.mrb[1].mxu1  ;;  %v2512_v50 = vadd.f32 %v2511_v46, %v1031_v23 }
 0x24a   :  { %v2514_v59 = vadd.f32 %v2513_v24, %v1032_v30  ;;  %v2515_v38 = vpop.f32.mrb[2].mxu1 }
 0x24b   :  { %2816 = vmatpush1.bf16.msra.mxu0 %v3616_v5  ;;  %v2516_v17 = vpop.f32.mrb[3].mxu1  ;;  %v1036_v5 = vmul.f32 %v4295_v2, %v1019_v58 }
 0x24c   :  { %2817 = vmatprep.subr.bf16.mxu0 %v3621_v14 }
 0x24f   :  { %2818 = vmatpush1.bf16.msra.mxu0 %v3619_v54 }
 0x250   :  { %2819 = vmatprep.subr.bf16.mxu0 %v3624_v63 }
 0x253   :  { %2820 = vmatpush1.bf16.msra.mxu0 %v3622_v42 }
 0x254   :  { %2821 = vmatprep.subr.bf16.mxu0 %v3627_v20 }
 0x257   :  { %2822 = vmatpush1.bf16.msra.mxu0 %v3625_v10 }
 0x258   :  { %2823 = vmatprep.subr.bf16.mxu0 %v3630_v39 }
 0x25b   :  { %2824 = vmatpush1.bf16.msra.mxu0 %v3628_v18 }
 0x25c   :  { %2825 = vmatprep.subr.bf16.mxu0 %v3633_v28 }
 0x25f   :  { %2826 = vmatpush1.bf16.msra.mxu0 %v3631_v0 }
 0x260   :  { %2827 = vmatprep.subr.bf16.mxu0 %v3636_v41 }
 0x263   :  { %2828 = vmatpush1.bf16.msra.mxu0 %v3634_v1 }
 0x264   :  { %2829 = vmatprep.subr.bf16.mxu0 %v3639_v15 }
 0x267   :  { %2830 = vmatpush1.bf16.msra.mxu0 %v3637_v43 }
 0x268   :  { %2831 = vmatprep.subr.bf16.mxu0 %v3642_v11 }
 0x26b   :  { %2832 = vmatpush1.bf16.msra.mxu0 %v3640_v4 }
 0x26c   :  { %2833 = vmatprep.subr.bf16.mxu0 %v3645_v51 }
 0x26f   :  { %2834 = vmatpush1.bf16.msra.mxu0 %v3643_v26 }
 0x270   :  { %2835 = vmatprep.subr.bf16.mxu0 %v3648_v25 }
 0x273   :  { %2836 = vmatpush1.bf16.msra.mxu0 %v3646_v16 }
 0x276   :  { %2838 = vmatmul.mubr.bf16.vlgmr.msra.gmra.mrb[4].mxu0 %v4277_v57  ;;  %v1007_v57 = vrot.slane %v4290_v12, %v4399_v55 }
 0x278   :  { %v1033_v6 = vmul.f32 %v4295_v2, %v1007_v57 }
 0x288   :  { %v2593_v13 = vpop.f32.mrb[0].mxu0 }
 0x289   :  { %v3179_v9 = vadd.f32 %v2593_v13, %v2512_v50  ;;  %v2595_v7 = vpop.f32.mrb[1].mxu0 }
 0x28a   :  { %v3181_v33 = vadd.f32 %v2595_v7, %v2514_v59  ;;  %v2597_v49 = vpop.f32.mrb[2].mxu0 }
 0x28b   :  { %v2598_v53 = vpop.f32.mrb[3].mxu0  ;;  %v2846_v61 = vmul.f32 %v3179_v9, %v3179_v9 }
 0x28c   :  { %v2847_v22 = vmul.f32 %v3181_v33, %v3181_v33 }
 0x28e   :  { %v2852_v32 = vadd.f32 %v2847_v22, %v2846_v61 }
 0x308   :  { %v2716_v62 = vpop.f32.mrb[4].mxu1 }
 0x309   :  { %v2718_v56 = vpop.f32.mrb[5].mxu1  ;;  %v3182_v44 = vadd.f32 %v2716_v62, %v1033_v6 }
 0x30a   :  { %v2720_v31 = vpop.f32.mrb[6].mxu1  ;;  %v3183_v29 = vadd.f32 %v2718_v56, %v1034_v3 }
 0x30b   :  { %v2721_v35 = vpop.f32.mrb[7].mxu1  ;;  %v2848_v34 = vmul.f32 %v3182_v44, %v3182_v44 }
 0x30c   :  { %v2849_v8 = vmul.f32 %v3183_v29, %v3183_v29 }
 0x30d   :  { %v2853_v60 = vadd.f32 %v2852_v32, %v2848_v34 }
 0x30f   :  { %v2854_v59 = vadd.f32 %v2853_v60, %v2849_v8 }
 0x349   :  { %v2839_v21 = vpop.f32.mrb[4].mxu0 }
 0x34a   :  { %v3184_v46 = vadd.f32 %v2839_v21, %v1035_v47  ;;  %v2841_v30 = vpop.f32.mrb[5].mxu0 }
 0x34b   :  { %v3185_v14 = vadd.f32 %v2841_v30, %v1036_v5  ;;  %v2843_v24 = vpop.f32.mrb[6].mxu0 }
 0x34c   :  { %v2850_v38 = vmul.f32 %v3184_v46, %v3184_v46  ;;  %v2844_v17 = vpop.f32.mrb[7].mxu0 }
 0x34d   :  { %v2851_v54 = vmul.f32 %v3185_v14, %v3185_v14 }
 0x34e   :  { %v2855_v63 = vadd.f32 %v2854_v59, %v2850_v38 }
 0x350   :  { %v2856_v52 = vadd.f32 %v2855_v63, %v2851_v54 }
 0x352   :  { %2857 = vadd.xlane.f32.xlu1 %v2856_v52 }
 0x3df   :  { %v2858_v12 = vpop.xlane.xlu1 %2857 }
 0x3e0   :  { %v2859_v42 = vmax.f32 %v2858_v12, 1e-24 }
 0x3e2   :  { %3651 = vrsqrt.f32 %v2859_v42 }
 0x3ec   :  { %v3652_v20 = vpop.eup %3651 }
 0x3ed   :  { %v2861_v10 = vmul.f32 %v3652_v20, %v3179_v9  ;;  %v2862_v39 = vmul.f32 %v3652_v20, %v3181_v33  ;;  %v2863_v2 = vmul.f32 %v3652_v20, %v3182_v44  ;;  %v2864_v18 = vmul.f32 %v3652_v20, %v3183_v29 }
 0x3ee   :  { %v2865_v28 = vmul.f32 %v3652_v20, %v3184_v46  ;;  %v2866_v0 = vmul.f32 %v3652_v20, %v3185_v14 }
 0x3ef   :  { %2867 = vst [vmem:[#allocation12] sm:$0xff] %v2861_v10  ;;  %2868 = vst [vmem:[#allocation12 + $0x8] sm:$0xff] %v2862_v39 }
 0x3f0   :  { %2869 = vst [vmem:[#allocation12 + $0x10] sm:$0xff] %v2863_v2  ;;  %2870 = vst [vmem:[#allocation12 + $0x18] sm:$0xff] %v2864_v18 }
 0x3f1   :  { %2871 = vst [vmem:[#allocation12 + $0x20] sm:$0xff] %v2865_v28  ;;  %2872 = vst [vmem:[#allocation12 + $0x28] sm:$0xff] %v2866_v0 }
 0x3f2   :  { %3752 = shalt.err (!%p3749_p8)
}
 0x3f3   :  { %s3753_s13 = scalar_lea.hbm %s4335_s4, 768 }
 0x3f4   :  { %p3754_p9 = scmp.ne.s32.totalorder %s4335_s4, %s3753_s13  ;;  %p3757_p10 = scmp.lt.u32.totalorder %s3753_s13, %s4335_s4 }
 0x3f6   :  { %p3759_p11 = pnand %p3757_p10, %p3754_p9 }
 0x3f8   :  { %3762 = shalt.err (!%p3759_p11)
}
 0x3f9   :  { %2882 = dma.vmem_to_hbm [thread:$0]  %s2880_s10, 768, %s4335_s4, [#allocation6]  }
 0x3fa   :  { %3769 = dma.done.wait [#allocation6], 768  }
 0x3fb   :  { %3770 = vsyncadd [#allocation6], 4294966528 }
 0x3fc   :  { %2886 = vsyncpa [#allocation5], 1 }
 0x3fd   :  { %2887 = vsyncpa [#allocation8], 1 }
 0x3fe   :  { %2888 = vsyncpa [#allocation11], 1 }
 0x3ff   :  { %2889 = vsyncpa [#allocation6], 1 }

// kernel: tpu_custom_call.1
= control target key start
LH: loop header
LB: loop body
LE: loop exit
PB: predicated region body
PF: predicated region fallthrough
CT: control target
= control target key end

     0   :  { %9 = vsyncpa [#allocation5], 0  ;;  %s4331_s0 = inlined_call_operand.hbm [shape: bf16[8,8,768], index: 0, kind: input, shape index: {}]   ;;  %s4332_s1 = inlined_call_operand.hbm [shape: f32[8,8], index: 1, kind: input, shape index: {}]   ;;  %s4333_s2 = inlined_call_operand.hbm [shape: bf16[768,768], index: 2, kind: input, shape index: {}]   ;;  %s4334_s3 = inlined_call_operand.hbm [shape: f32[1,768], index: 3, kind: input, shape index: {}]   ;;  %s4335_s4 = inlined_call_operand.hbm [shape: f32[8,768], index: 4, kind: output, shape index: {}]  }
   0x1   :  { %10 = vsyncpa [#allocation8], 0 }
   0x2   :  { %11 = vsyncpa [#allocation11], 0 }
   0x3   :  { %12 = vsyncpa [#allocation6], 0  ;;  %s3771_s15 = smov [#allocation7]   ;;  %s3772_s17 = smov [#allocation4]  }
   0x4   :  { %s31_s16 = sshll.u32 %s3771_s15, 4  ;;  %s18_s18 = sshll.u32 %s3772_s17, 4  ;;  %s32_s16 = int_to_ptr.vmem [resolvable:$true] %s31_s16  ;;  %s3805_s18 = int_to_ptr.vmem [resolvable:$true] %s18_s18 }
   0x5   :  { %s3653_s21 = scalar_lea.hbm %s4332_s1, 128 }
   0x6   :  { %p3654_p0 = scmp.ne.s32.totalorder %s4332_s1, %s3653_s21  ;;  %p3657_p1 = scmp.lt.u32.totalorder %s3653_s21, %s4332_s1 }
   0x8   :  { %p3659_p2 = pnand %p3657_p1, %p3654_p0 }
   0xa   :  { %3662 = shalt.err (!%p3659_p2)
}
   0xb   :  { %s3663_s26 = scalar_lea.vmem %s32_s16, 128  ;;  %p3668_p4 = scmp.lt.s32.totalorder %s32_s16, %s32_s16 }
   0xc   :  { %p3664_p3 = scmp.ne.s32.totalorder %s32_s16, %s3663_s26  ;;  %p3669_p5 = scmp.lt.s32.totalorder %s3663_s26, %s3663_s26 }
   0xe   :  { %p3670_p6 = por %p3669_p5, %p3668_p4 }
  0x10   :  { %p3671_p7 = pnand %p3670_p6, %p3664_p3 }
  0x12   :  { %3674 = shalt.err (!%p3671_p7)
}
  0x13   :  { %34 = dma.hbm_to_vmem [thread:$0]  %s4332_s1, 128, %s32_s16, [#allocation8]  }
  0x14   :  { %s3675_s5 = scalar_lea.hbm %s4331_s0, 3072 }
  0x15   :  { %p3676_p8 = scmp.ne.s32.totalorder %s4331_s0, %s3675_s5  ;;  %p3679_p9 = scmp.lt.u32.totalorder %s3675_s5, %s4331_s0 }
  0x17   :  { %p3681_p10 = pnand %p3679_p9, %p3676_p8 }
  0x19   :  { %3684 = shalt.err (!%p3681_p10)
}
  0x1a   :  { %s3685_s10 = scalar_lea.vmem %s3805_s18, 3072  ;;  %p3690_p12 = scmp.lt.s32.totalorder %s3805_s18, %s3805_s18 }
  0x1b   :  { %p3686_p11 = scmp.ne.s32.totalorder %s3805_s18, %s3685_s10  ;;  %p3691_p13 = scmp.lt.s32.totalorder %s3685_s10, %s3685_s10 }
  0x1d   :  { %p3692_p0 = por %p3691_p13, %p3690_p12 }
  0x1f   :  { %p3693_p1 = pnand %p3692_p0, %p3686_p11 }
  0x21   :  { %3696 = shalt.err (!%p3693_p1)
}
  0x22   :  { %s3773_s1 = smov 384   ;;  %s3774_s11 = smov 24  }
  0x23   :  { %24 = dma.hbm_to_vmem [thread:$0]  %s4331_s0, 3072, %s3805_s18, [#allocation5], %s3773_s1, %s3773_s1, %s3774_s11  }
  0x24   :  { %s3775_s14 = smov [#allocation9]   ;;  %s3776_s16 = smov [#allocation10]  }
  0x25   :  { %s40_s15 = sshll.u32 %s3775_s14, 4  ;;  %s53_s17 = sshll.u32 %s3776_s16, 4  ;;  %s41_s15 = int_to_ptr.vmem [resolvable:$true] %s40_s15  ;;  %s54_s17 = int_to_ptr.vmem [resolvable:$true] %s53_s17 }
  0x26   :  { %s3697_s21 = scalar_lea.hbm %s4333_s2, 36864 }
  0x27   :  { %p3698_p2 = scmp.ne.s32.totalorder %s4333_s2, %s3697_s21  ;;  %p3701_p3 = scmp.lt.u32.totalorder %s3697_s21, %s4333_s2 }
  0x29   :  { %p3703_p4 = pnand %p3701_p3, %p3698_p2 }
  0x2b   :  { %3706 = shalt.err (!%p3703_p4)
}
  0x2c   :  { %s3707_s0 = scalar_lea.vmem %s41_s15, 36864  ;;  %p3712_p6 = scmp.lt.s32.totalorder %s41_s15, %s41_s15 }
  0x2d   :  { %p3708_p5 = scmp.ne.s32.totalorder %s41_s15, %s3707_s0  ;;  %p3713_p7 = scmp.lt.s32.totalorder %s3707_s0, %s3707_s0 }
  0x2f   :  { %p3714_p8 = por %p3713_p7, %p3712_p6 }
  0x31   :  { %p3715_p9 = pnand %p3714_p8, %p3708_p5 }
  0x33   :  { %3718 = shalt.err (!%p3715_p9)
}
  0x34   :  { %46 = dma.hbm_to_vmem [thread:$0]  %s4333_s2, 36864, %s41_s15, [#allocation8], %s3773_s1, %s3773_s1, %s3774_s11  }
  0x35   :  { %s3719_s29 = scalar_lea.hbm %s4334_s3, 96 }
  0x36   :  { %p3720_p10 = scmp.ne.s32.totalorder %s4334_s3, %s3719_s29  ;;  %p3723_p11 = scmp.lt.u32.totalorder %s3719_s29, %s4334_s3 }
  0x38   :  { %p3725_p12 = pnand %p3723_p11, %p3720_p10 }
  0x3a   :  { %3728 = shalt.err (!%p3725_p12)
}
  0x3b   :  { %s3729_s8 = scalar_lea.vmem %s54_s17, 96  ;;  %p3734_p0 = scmp.lt.s32.totalorder %s54_s17, %s54_s17 }
  0x3c   :  { %p3730_p13 = scmp.ne.s32.totalorder %s54_s17, %s3729_s8  ;;  %p3735_p1 = scmp.lt.s32.totalorder %s3729_s8, %s3729_s8 }
  0x3e   :  { %p3736_p2 = por %p3735_p1, %p3734_p0 }
  0x40   :  { %p3737_p3 = pnand %p3736_p2, %p3730_p13 }
  0x42   :  { %3740 = shalt.err (!%p3737_p3)
}
  0x43   :  { %56 = dma.hbm_to_vmem [thread:$0]  %s4334_s3, 96, %s54_s17, [#allocation11]  }
  0x44   :  { %3763 = dma.done.wait [#allocation5], 3072  }
  0x45   :  { %3764 = vsyncadd [#allocation5], 4294964224 }
  0x46   :  { %3765 = dma.done.wait [#allocation8], 36992  }
  0x47   :  { %3766 = vsyncadd [#allocation8], 4294930304 }
  0x48   :  { %3767 = dma.done.wait [#allocation11], 96  }
  0x49   :  { %3768 = vsyncadd [#allocation11], 4294967200  ;;  %v160_v0 = vlaneseq  ;;  %vm79_vm0 = vcmask 7168   ;;  %v3777_v1 = vmov 0.0   ;;  %vm668_vm1 = vcmask 64512   ;;  %v153_v5 = vld [vmem:[#allocation7] sm:$0xff] }
  0x4a   :  { %80 = vst.msk [vmem:[#allocation3] sm:$0xff] %vm79_vm0, %v3777_v1  ;;  %v669_v6 = vsel %vm668_vm1, %v153_v5, 0.0  ;;  %v3778_v19 = vmov 0   ;;  %v3217_v22 = vld [vmem:[#allocation9 + $0x4] ss:$24 sps:$4 sm:$0xff]   ;;  %vm600_vm2 = vcmask 1041409  }
  0x4b   :  { %v3861_v2 = vshrl.u32 %v160_v0, 7  ;;  %670 = vadd.xlane.f32.xlu0 %v669_v6  ;;  %3216 = vset.pattern.permute.xlu1 %v3778_v19  ;;  %v3219_v23 = vld [vmem:[#allocation9 + $0x304] ss:$24 sps:$4 sm:$0xff]   ;;  %v3221_v24 = vld [vmem:[#allocation9] ss:$24 sps:$4 sm:$0xff]   ;;  %vm602_vm3 = vcmask 1042434  }
  0x4c   :  { %3215 = vset.pattern.permute.xlu0 %v3778_v19  ;;  %2477 = vmatprep.subr.bf16.mxu1 %v3217_v22  ;;  %v3222_v25 = vld [vmem:[#allocation9 + $0x300] ss:$24 sps:$4 sm:$0xff]   ;;  %v3223_v26 = vld [vmem:[#allocation9 + $0x34] ss:$24 sps:$4 sm:$0xff]   ;;  %v3227_v28 = vld [vmem:[#allocation9 + $0x30] ss:$24 sps:$4 sm:$0xff]  }
  0x4d   :  { %4349 = vst [vmem:[#allocation17_spill] sm:$0xff] %v3861_v2  ;;  %v4341_v3 = vsub.s32 1, %v3861_v2  ;;  %v4339_v4 = vsub.s32 2, %v3861_v2  ;;  %v4338_v9 = vsub.s32 3, %v3861_v2  ;;  %v4337_v11 = vsub.s32 4, %v3861_v2  ;;  %2518 = vmatprep.subr.bf16.mxu0 %v3219_v23  ;;  %2478 = vmatpush1.bf16.msra.mxu1 %v3221_v24  ;;  %s3779_s3 = smov [#allocation12]  }
  0x4e   :  { %v4336_v13 = vsub.s32 5, %v3861_v2  ;;  %v204_v15 = vsub.s32 6, %v3861_v2  ;;  %v4340_v16 = vsub.s32 0, %v3861_v2  ;;  %v211_v18 = vsub.s32 7, %v3861_v2  ;;  %v3225_v27 = vld [vmem:[#allocation9 + $0x334] ss:$24 sps:$4 sm:$0xff]   ;;  %2519 = vmatpush1.bf16.msra.mxu0 %v3222_v25  ;;  %2479 = vmatprep.subr.bf16.mxu1 %v3223_v26 }
  0x4f   :  { %v170_v7 = vrot.slane %v153_v5, %v4341_v3  ;;  %v177_v8 = vrot.slane %v153_v5, %v4339_v4  ;;  %v184_v10 = vrot.slane %v153_v5, %v4338_v9  ;;  %v191_v12 = vrot.slane %v153_v5, %v4337_v11  ;;  %v3228_v29 = vld [vmem:[#allocation9 + $0x330] ss:$24 sps:$4 sm:$0xff]   ;;  %v3229_v30 = vld [vmem:[#allocation9 + $0x64] ss:$24 sps:$4 sm:$0xff]   ;;  %2520 = vmatprep.subr.bf16.mxu0 %v3225_v27  ;;  %v3233_v32 = vld [vmem:[#allocation9 + $0x60] ss:$24 sps:$4 sm:$0xff]  }
  0x50   :  { %v198_v14 = vrot.slane %v153_v5, %v4336_v13  ;;  %v205_v17 = vrot.slane %v153_v5, %v204_v15  ;;  %v163_v20 = vrot.slane %v153_v5, %v4340_v16  ;;  %v212_v21 = vrot.slane %v153_v5, %v211_v18  ;;  %v3231_v31 = vld [vmem:[#allocation9 + $0x364] ss:$24 sps:$4 sm:$0xff]   ;;  %v3234_v33 = vld [vmem:[#allocation9 + $0x360] ss:$24 sps:$4 sm:$0xff]   ;;  %v3235_v34 = vld [vmem:[#allocation9 + $0x94] ss:$24 sps:$4 sm:$0xff]  }
  0x51   :  { %172 = vbcast.lane.b32.xlu1 %v170_v7, 256  ;;  %2480 = vmatpush1.bf16.msra.mxu1 %v3227_v28  ;;  %v3237_v35 = vld [vmem:[#allocation9 + $0x394] ss:$24 sps:$4 sm:$0xff]   ;;  %v3239_v36 = vld [vmem:[#allocation9 + $0x90] ss:$24 sps:$4 sm:$0xff]   ;;  %v3884_v28 = vld [vmem:[#allocation4 + $0x28] sm:$0xff] }
  0x52   :  { %2521 = vmatpush1.bf16.msra.mxu0 %v3228_v29  ;;  %2481 = vmatprep.subr.bf16.mxu1 %v3229_v30  ;;  %v3240_v37 = vld [vmem:[#allocation9 + $0x390] ss:$24 sps:$4 sm:$0xff]   ;;  %v3241_v38 = vld [vmem:[#allocation9 + $0xc4] ss:$24 sps:$4 sm:$0xff]   ;;  %v3245_v40 = vld [vmem:[#allocation9 + $0xc0] ss:$24 sps:$4 sm:$0xff]   ;;  %v115_v29 = vunpack.c.l.bf16 %v3884_v28 }
  0x53   :  { %2522 = vmatprep.subr.bf16.mxu0 %v3231_v31  ;;  %v3243_v39 = vld [vmem:[#allocation9 + $0x3c4] ss:$24 sps:$4 sm:$0xff]   ;;  %v3246_v41 = vld [vmem:[#allocation9 + $0x3c0] ss:$24 sps:$4 sm:$0xff]   ;;  %v3247_v42 = vld [vmem:[#allocation9 + $0xf4] ss:$24 sps:$4 sm:$0xff]  }
  0x54   :  { %v3249_v43 = vld [vmem:[#allocation9 + $0x3f4] ss:$24 sps:$4 sm:$0xff]   ;;  %v3251_v44 = vld [vmem:[#allocation9 + $0xf0] ss:$24 sps:$4 sm:$0xff]   ;;  %v3253_v46 = vld [vmem:[#allocation9 + $0x124] ss:$24 sps:$4 sm:$0xff]  }
  0x55   :  { %179 = vbcast.lane.b32.xlu1 %v177_v8, 256  ;;  %2482 = vmatpush1.bf16.msra.mxu1 %v3233_v32  ;;  %v3252_v45 = vld [vmem:[#allocation9 + $0x3f0] ss:$24 sps:$4 sm:$0xff]   ;;  %v3255_v47 = vld [vmem:[#allocation9 + $0x424] ss:$24 sps:$4 sm:$0xff]   ;;  %vm604_vm4 = vcmask 1043459  }
  0x56   :  { %2523 = vmatpush1.bf16.msra.mxu0 %v3234_v33  ;;  %2483 = vmatprep.subr.bf16.mxu1 %v3235_v34  ;;  %v3257_v48 = vld [vmem:[#allocation9 + $0x120] ss:$24 sps:$4 sm:$0xff]   ;;  %v3259_v50 = vld [vmem:[#allocation9 + $0x154] ss:$24 sps:$4 sm:$0xff]   ;;  %v3263_v52 = vld [vmem:[#allocation9 + $0x150] ss:$24 sps:$4 sm:$0xff]  }
  0x57   :  { %2524 = vmatprep.subr.bf16.mxu0 %v3237_v35  ;;  %v3258_v49 = vld [vmem:[#allocation9 + $0x420] ss:$24 sps:$4 sm:$0xff]   ;;  %v3261_v51 = vld [vmem:[#allocation9 + $0x454] ss:$24 sps:$4 sm:$0xff]   ;;  %v3264_v53 = vld [vmem:[#allocation9 + $0x450] ss:$24 sps:$4 sm:$0xff]  }
  0x58   :  { %v3265_v54 = vld [vmem:[#allocation9 + $0x184] ss:$24 sps:$4 sm:$0xff]   ;;  %v3269_v56 = vld [vmem:[#allocation9 + $0x180] ss:$24 sps:$4 sm:$0xff]   ;;  %v3271_v58 = vld [vmem:[#allocation9 + $0x1b4] ss:$24 sps:$4 sm:$0xff]  }
  0x59   :  { %186 = vbcast.lane.b32.xlu1 %v184_v10, 256  ;;  %2484 = vmatpush1.bf16.msra.mxu1 %v3239_v36  ;;  %v3267_v55 = vld [vmem:[#allocation9 + $0x484] ss:$24 sps:$4 sm:$0xff]   ;;  %v3270_v57 = vld [vmem:[#allocation9 + $0x480] ss:$24 sps:$4 sm:$0xff]   ;;  %v667_v25 = vld [vmem:[#allocation3] sm:$0xff] }
  0x5a   :  { %2525 = vmatpush1.bf16.msra.mxu0 %v3240_v37  ;;  %2485 = vmatprep.subr.bf16.mxu1 %v3241_v38  ;;  %v3273_v59 = vld [vmem:[#allocation9 + $0x4b4] ss:$24 sps:$4 sm:$0xff]   ;;  %v3275_v60 = vld [vmem:[#allocation9 + $0x1b0] ss:$24 sps:$4 sm:$0xff]   ;;  %v3277_v62 = vld [vmem:[#allocation9 + $0x1e4] ss:$24 sps:$4 sm:$0xff]  }
  0x5b   :  { %2526 = vmatprep.subr.bf16.mxu0 %v3243_v39  ;;  %v3276_v61 = vld [vmem:[#allocation9 + $0x4b0] ss:$24 sps:$4 sm:$0xff]   ;;  %v3279_v63 = vld [vmem:[#allocation9 + $0x4e4] ss:$24 sps:$4 sm:$0xff]   ;;  %v3281_v0 = vld [vmem:[#allocation9 + $0x1e0] ss:$24 sps:$4 sm:$0xff]  }
  0x5c   :  { %v3282_v1 = vld [vmem:[#allocation9 + $0x4e0] ss:$24 sps:$4 sm:$0xff]   ;;  %v3283_v5 = vld [vmem:[#allocation9 + $0x214] ss:$24 sps:$4 sm:$0xff]   ;;  %v3287_v7 = vld [vmem:[#allocation9 + $0x210] ss:$24 sps:$4 sm:$0xff]  }
  0x5d   :  { %193 = vbcast.lane.b32.xlu1 %v191_v12, 256  ;;  %2486 = vmatpush1.bf16.msra.mxu1 %v3245_v40  ;;  %v3285_v6 = vld [vmem:[#allocation9 + $0x514] ss:$24 sps:$4 sm:$0xff]   ;;  %v3288_v8 = vld [vmem:[#allocation9 + $0x510] ss:$24 sps:$4 sm:$0xff]   ;;  %v3975_v4 = vld [vmem:[#allocation4] sm:$0xff] }
  0x5e   :  { %2527 = vmatpush1.bf16.msra.mxu0 %v3246_v41  ;;  %2487 = vmatprep.subr.bf16.mxu1 %v3247_v42  ;;  %v3289_v10 = vld [vmem:[#allocation9 + $0x244] ss:$24 sps:$4 sm:$0xff]   ;;  %v3294_v15 = vld [vmem:[#allocation9 + $0x540] ss:$24 sps:$4 sm:$0xff]   ;;  %v3297_v18 = vld [vmem:[#allocation9 + $0x574] ss:$24 sps:$4 sm:$0xff]  }
  0x5f   :  { %2528 = vmatprep.subr.bf16.mxu0 %v3249_v43  ;;  %v3291_v12 = vld [vmem:[#allocation9 + $0x544] ss:$24 sps:$4 sm:$0xff]   ;;  %v3299_v19 = vld [vmem:[#allocation9 + $0x270] ss:$24 sps:$4 sm:$0xff]   ;;  %v3305_v23 = vld [vmem:[#allocation9 + $0x2a0] ss:$24 sps:$4 sm:$0xff]  }
  0x60   :  { %v3303_v22 = vld [vmem:[#allocation9 + $0x5a4] ss:$24 sps:$4 sm:$0xff]   ;;  %v3306_v24 = vld [vmem:[#allocation9 + $0x5a0] ss:$24 sps:$4 sm:$0xff]   ;;  %v3892_v36 = vld [vmem:[#allocation4 + $0x10] sm:$0xff]  ;;  %vm606_vm5 = vcmask 1044484  }
  0x61   :  { %200 = vbcast.lane.b32.xlu1 %v198_v14, 256  ;;  %165 = vbcast.lane.b32.xlu0 %v163_v20, 256  ;;  %v3293_v14 = vld [vmem:[#allocation9 + $0x240] ss:$24 sps:$4 sm:$0xff]   ;;  %v3300_v20 = vld [vmem:[#allocation9 + $0x570] ss:$24 sps:$4 sm:$0xff]   ;;  %v109_v38 = vunpack.c.l.bf16 %v3892_v36 }
  0x62   :  { %2488 = vmatpush1.bf16.msra.mxu1 %v3251_v44  ;;  %2529 = vmatpush1.bf16.msra.mxu0 %v3252_v45  ;;  %v3307_v39 = vld [vmem:[#allocation9 + $0x2d4] ss:$24 sps:$4 sm:$0xff]   ;;  %v3311_v43 = vld [vmem:[#allocation9 + $0x2d0] ss:$24 sps:$4 sm:$0xff]   ;;  %vm608_vm6 = vcmask 1045509   ;;  %vm610_vm7 = vcmask 1046534  }
  0x63   :  { %2489 = vmatprep.subr.bf16.mxu1 %v3253_v46  ;;  %2530 = vmatprep.subr.bf16.mxu0 %v3255_v47  ;;  %v3309_v40 = vld [vmem:[#allocation9 + $0x5d4] ss:$24 sps:$4 sm:$0xff]   ;;  %v3312_v46 = vld [vmem:[#allocation9 + $0x5d0] ss:$24 sps:$4 sm:$0xff]   ;;  %vm612_vm8 = vcmask 1047559   ;;  %s2879_s10 = sshll.u32 %s3779_s3, 4  ;;  %s2880_s10 = int_to_ptr.vmem [resolvable:$true] %s2879_s10 }
  0x64   :  { %s3741_s1 = scalar_lea.vmem %s2880_s10, 768  ;;  %p3746_p5 = scmp.lt.s32.totalorder %s2880_s10, %s2880_s10 }
  0x65   :  { %207 = vbcast.lane.b32.xlu1 %v205_v17, 256  ;;  %v3295_v17 = vld [vmem:[#allocation9 + $0x274] ss:$24 sps:$4 sm:$0xff]   ;;  %p3742_p4 = scmp.ne.s32.totalorder %s2880_s10, %s3741_s1  ;;  %p3747_p6 = scmp.lt.s32.totalorder %s3741_s1, %s3741_s1 }
  0x66   :  { %2490 = vmatpush1.bf16.msra.mxu1 %v3257_v48  ;;  %2531 = vmatpush1.bf16.msra.mxu0 %v3258_v49  ;;  %v3315_v49 = vld [vmem:[#allocation9 + $0x604] ss:$24 sps:$4 sm:$0xff]  }
  0x67   :  { %2491 = vmatprep.subr.bf16.mxu1 %v3259_v50  ;;  %2532 = vmatprep.subr.bf16.mxu0 %v3261_v51  ;;  %v3318_v50 = vld [vmem:[#allocation9 + $0xc] ss:$24 sps:$4 sm:$0xff]   ;;  %p3748_p7 = por %p3747_p6, %p3746_p5 }
  0x69   :  { %214 = vbcast.lane.b32.xlu1 %v212_v21, 256  ;;  %v3301_v21 = vld [vmem:[#allocation9 + $0x2a4] ss:$24 sps:$4 sm:$0xff]   ;;  %p3749_p8 = pnand %p3748_p7, %p3742_p4 }
  0x6a   :  { %2492 = vmatpush1.bf16.msra.mxu1 %v3263_v52  ;;  %2533 = vmatpush1.bf16.msra.mxu0 %v3264_v53 }
  0x6b   :  { %2493 = vmatprep.subr.bf16.mxu1 %v3265_v54  ;;  %2534 = vmatprep.subr.bf16.mxu0 %v3267_v55 }
  0x6e   :  { %2494 = vmatpush1.bf16.msra.mxu1 %v3269_v56  ;;  %2535 = vmatpush1.bf16.msra.mxu0 %v3270_v57  ;;  %v3902_v57 = vld [vmem:[#allocation4 + $0x40] sm:$0xff] }
  0x6f   :  { %2495 = vmatprep.subr.bf16.mxu1 %v3271_v58  ;;  %2536 = vmatprep.subr.bf16.mxu0 %v3273_v59  ;;  %v3904_v59 = vld [vmem:[#allocation4 + $0x58] sm:$0xff] }
  0x72   :  { %2496 = vmatpush1.bf16.msra.mxu1 %v3275_v60  ;;  %2537 = vmatpush1.bf16.msra.mxu0 %v3276_v61  ;;  %v121_v61 = vunpack.c.l.bf16 %v3902_v57 }
  0x73   :  { %2497 = vmatprep.subr.bf16.mxu1 %v3277_v62  ;;  %2538 = vmatprep.subr.bf16.mxu0 %v3279_v63  ;;  %v3907_v62 = vld [vmem:[#allocation4 + $0x70] sm:$0xff] }
  0x76   :  { %2498 = vmatpush1.bf16.msra.mxu1 %v3281_v0  ;;  %2539 = vmatpush1.bf16.msra.mxu0 %v3282_v1  ;;  %v3911_v1 = vld [vmem:[#allocation4 + $0x88] sm:$0xff] }
  0x77   :  { %2499 = vmatprep.subr.bf16.mxu1 %v3283_v5  ;;  %2540 = vmatprep.subr.bf16.mxu0 %v3285_v6  ;;  %v127_v5 = vunpack.c.l.bf16 %v3904_v59 }
  0x7a   :  { %2500 = vmatpush1.bf16.msra.mxu1 %v3287_v7  ;;  %2541 = vmatpush1.bf16.msra.mxu0 %v3288_v8  ;;  %v133_v7 = vunpack.c.l.bf16 %v3907_v62 }
  0x7b   :  { %2501 = vmatprep.subr.bf16.mxu1 %v3289_v10  ;;  %2542 = vmatprep.subr.bf16.mxu0 %v3291_v12  ;;  %v139_v10 = vunpack.c.l.bf16 %v3911_v1 }
  0x7e   :  { %2502 = vmatpush1.bf16.msra.mxu1 %v3293_v14  ;;  %2543 = vmatpush1.bf16.msra.mxu0 %v3294_v15  ;;  %v3920_v14 = vld [vmem:[#allocation4 + $0xa0] sm:$0xff] }
  0x7f   :  { %2503 = vmatprep.subr.bf16.mxu1 %v3295_v17  ;;  %2544 = vmatprep.subr.bf16.mxu0 %v3297_v18  ;;  %4350 = vst [vmem:[#allocation18_spill] sm:$0xff] %v3920_v14 }
  0x82   :  { %2504 = vmatpush1.bf16.msra.mxu1 %v3299_v19  ;;  %2545 = vmatpush1.bf16.msra.mxu0 %v3300_v20  ;;  %v145_v19 = vunpack.c.l.bf16 %v3920_v14 }
  0x83   :  { %2505 = vmatprep.subr.bf16.mxu1 %v3301_v21  ;;  %2546 = vmatprep.subr.bf16.mxu0 %v3303_v22  ;;  %v3928_v22 = vld [vmem:[#allocation4 + $0xb8] sm:$0xff] }
  0x86   :  { %2506 = vmatpush1.bf16.msra.mxu1 %v3305_v23  ;;  %2547 = vmatpush1.bf16.msra.mxu0 %v3306_v24  ;;  %v3930_v24 = vld [vmem:[#allocation4 + $0x18] sm:$0xff] }
  0x87   :  { %2507 = vmatprep.subr.bf16.mxu1 %v3307_v39  ;;  %2548 = vmatprep.subr.bf16.mxu0 %v3309_v40  ;;  %v3943_v40 = vld [vmem:[#allocation4 + $0x38] sm:$0xff] }
  0x8a   :  { %2508 = vmatpush1.bf16.msra.mxu1 %v3311_v43  ;;  %2549 = vmatpush1.bf16.msra.mxu0 %v3312_v46  ;;  %v3949_v46 = vld [vmem:[#allocation4 + $0x50] sm:$0xff] }
  0x8b   :  { %2559 = vmatprep.subr.bf16.mxu0 %v3315_v49  ;;  %2600 = vmatprep.subr.bf16.mxu1 %v3318_v50 }
  0xc3   :  { %v3887_v32 = vpop.permute.xlu1 %172 }
  0xc4   :  { %v226_v33 = vmul.f32 %v3887_v32, %v115_v29 }
  0xc6   :  { %v324_v34 = vrot.slane %v226_v33, 4 }
  0xc7   :  { %v3890_v35 = vpop.permute.xlu1 %179 }
  0xc8   :  { %v325_v37 = vadd.f32 %v324_v34, %v226_v33  ;;  %v232_v8 = vmul.f32 %v3890_v35, %v121_v61  ;;  %v3936_v33 = vld [vmem:[#allocation4 + $0x30] sm:$0xff]  ;;  %v3957_v61 = vld [vmem:[#allocation4 + $0x60] sm:$0xff] }
  0xc9   :  { %v117_v50 = vunpack.c.l.bf16 %v3936_v33 }
  0xca   :  { %v326_v45 = vrot.slane %v325_v37, 2  ;;  %v360_v20 = vrot.slane %v232_v8, 4 }
  0xcb   :  { %v3897_v47 = vpop.permute.xlu1 %186 }
  0xcc   :  { %v327_v51 = vadd.f32 %v326_v45, %v325_v37  ;;  %v238_v15 = vmul.f32 %v3897_v47, %v127_v5  ;;  %v361_v29 = vadd.f32 %v360_v20, %v232_v8  ;;  %v111_v37 = vunpack.c.l.bf16 %v3930_v24  ;;  %v3947_v45 = vld [vmem:[#allocation4 + $0x48] sm:$0xff]  ;;  %v3968_v20 = vld [vmem:[#allocation4 + $0x80] sm:$0xff] }
  0xcd   :  { %v3962_v8 = vld [vmem:[#allocation4 + $0x68] sm:$0xff] }
  0xce   :  { %v328_v55 = vrot.slane %v327_v51, 1  ;;  %v396_v23 = vrot.slane %v238_v15, 4  ;;  %v222_v13 = vmul.f32 %v3887_v32, %v111_v37 }
  0xcf   :  { %v3900_v54 = vpop.permute.xlu1 %193 }
  0xd0   :  { %v329_v60 = vadd.f32 %v328_v55, %v327_v51  ;;  %v244_v17 = vmul.f32 %v3900_v54, %v133_v7  ;;  %v362_v51 = vrot.slane %v361_v29, 2  ;;  %v118_v55 = vunpack.c.h.bf16 %v3936_v33 }
  0xd3   :  { %v3909_v0 = vpop.permute.xlu1 %200 }
  0xd4   :  { %v250_v21 = vmul.f32 %v3909_v0, %v139_v10 }
  0xd7   :  { %v3924_v18 = vpop.permute.xlu1 %207 }
  0xd8   :  { %v671_v26 = vpop.xlane.xlu0 %670 }
  0xd9   :  { %v672_v27 = vadd.f32 %v671_v26, %v667_v25  ;;  %v3932_v25 = vld [vmem:[#allocation4 + $0x20] sm:$0xff]  ;;  %v432_v26 = vrot.slane %v244_v17, 4 }
  0xda   :  { %v113_v39 = vunpack.c.l.bf16 %v3932_v25  ;;  %v114_v43 = vunpack.c.h.bf16 %v3932_v25 }
  0xdb   :  { %674 = vst.msk [vmem:[#allocation3] sm:$0xff] %vm79_vm0, %v672_v27  ;;  %v256_v27 = vmul.f32 %v3924_v18, %v145_v19  ;;  %v3938_v34 = vpop.permute.xlu1 %214  ;;  %v3966_v19 = vld [vmem:[#allocation4 + $0x78] sm:$0xff] }
  0xdc   :  { %v3895_v42 = vpop.permute.xlu0 %165  ;;  %v225_v37 = vmul.f32 %v3887_v32, %v114_v43 }
  0xdd   :  { %v220_v48 = vmul.f32 %v3895_v42, %v109_v38  ;;  %v112_v38 = vunpack.c.h.bf16 %v3930_v24  ;;  %v504_v49 = vrot.slane %v256_v27, 4  ;;  %v3984_v24 = vld [vmem:[#allocation4 + $0x90] sm:$0xff] }
  0xdf   :  { %v288_v52 = vrot.slane %v220_v48, 4 }
  0xe1   :  { %v289_v53 = vadd.f32 %v288_v52, %v220_v48  ;;  %v433_v48 = vadd.f32 %v432_v26, %v244_v17 }
  0xe2   :  { %v678_v30 = vld [vmem:[#allocation3] sm:$0xff] }
  0xe3   :  { %v679_v31 = vmax.f32 %v678_v30, 1e-09  ;;  %v290_v56 = vrot.slane %v289_v53, 2  ;;  %v434_v17 = vrot.slane %v433_v48, 2 }
  0xe5   :  { %3649 = vrcp.f32 %v679_v31  ;;  %v291_v58 = vadd.f32 %v290_v56, %v289_v53  ;;  %v151_v31 = vunpack.c.l.bf16 %v3928_v22  ;;  %v119_v56 = vunpack.c.l.bf16 %v3943_v40 }
  0xe7   :  { %v292_v63 = vrot.slane %v291_v58, 1  ;;  %v262_v53 = vmul.f32 %v3938_v34, %v151_v31  ;;  %v223_v31 = vmul.f32 %v3887_v32, %v112_v38  ;;  %v318_v38 = vrot.slane %v225_v37, 4 }
  0xe9   :  { %v293_v6 = vadd.f32 %v292_v63, %v291_v58  ;;  %v120_v58 = vunpack.c.h.bf16 %v3943_v40  ;;  %v123_v63 = vunpack.c.l.bf16 %v3947_v45  ;;  %v4353_v40 = vunpack.c.l.bf16 %v3949_v46 }
  0xeb   :  { %v3918_v12 = vsel %vm600_vm2, %v329_v60, %v293_v6  ;;  %v122_v60 = vunpack.c.h.bf16 %v3902_v57  ;;  %v234_v33 = vmul.f32 %v3897_v47, %v123_v63 }
  0xef   :  { %v3650_v41 = vpop.eup %3649 }
  0xf0   :  { %690 = vperm.xlu0 %3215, %v3650_v41   ;;  %v994_v44 = vmul.f32 %v3650_v41, %v678_v30  ;;  %v468_v30 = vrot.slane %v250_v21, 4  ;;  %v397_v41 = vadd.f32 %v396_v23, %v238_v15  ;;  %v363_v23 = vadd.f32 %v362_v51, %v361_v29 }
  0xf1   :  { %v435_v51 = vadd.f32 %v434_v17, %v433_v48  ;;  %v3991_v17 = vld [vmem:[#allocation4 + $0x98] sm:$0xff] }
  0xf2   :  { %1028 = vperm.xlu1 %3216, %v994_v44   ;;  %v116_v44 = vunpack.c.h.bf16 %v3884_v28  ;;  %v469_v52 = vadd.f32 %v468_v30, %v250_v21  ;;  %v398_v7 = vrot.slane %v397_v41, 2  ;;  %v505_v21 = vadd.f32 %v504_v49, %v256_v27  ;;  %v3980_v49 = vld [vmem:[#allocation4 + $0x8] sm:$0xff] }
  0xf3   :  { %v540_v30 = vrot.slane %v262_v53, 4  ;;  %v364_v9 = vrot.slane %v363_v23, 1 }
  0xf4   :  { %v470_v26 = vrot.slane %v469_v52, 2  ;;  %v399_v16 = vadd.f32 %v398_v7, %v397_v41  ;;  %v506_v11 = vrot.slane %v505_v21, 2 }
  0xf5   :  { %v541_v7 = vadd.f32 %v540_v30, %v262_v53  ;;  %v436_v53 = vrot.slane %v435_v51, 1  ;;  %v365_v27 = vadd.f32 %v364_v9, %v363_v23 }
  0xf6   :  { %v471_v15 = vadd.f32 %v470_v26, %v469_v52  ;;  %v400_v10 = vrot.slane %v399_v16, 1  ;;  %v224_v26 = vmul.f32 %v3887_v32, %v113_v39  ;;  %v507_v41 = vadd.f32 %v506_v11, %v505_v21  ;;  %v4007_v21 = vld [vmem:[#allocation4 + $0xa8] sm:$0xff] }
  0xf7   :  { %v542_v48 = vrot.slane %v541_v7, 2  ;;  %v227_v39 = vmul.f32 %v3887_v32, %v116_v44  ;;  %v300_v52 = vrot.slane %v222_v13, 4  ;;  %v306_v11 = vrot.slane %v223_v31, 4 }
  0xf8   :  { %v472_v3 = vrot.slane %v471_v15, 1  ;;  %v401_v9 = vadd.f32 %v400_v10, %v399_v16  ;;  %v312_v23 = vrot.slane %v224_v26, 4  ;;  %v437_v29 = vadd.f32 %v436_v53, %v435_v51 }
  0xf9   :  { %v508_v25 = vrot.slane %v507_v41, 1  ;;  %v543_v43 = vadd.f32 %v542_v48, %v541_v7  ;;  %v636_v6 = vsel %vm602_vm3, %v365_v27, %v3918_v12  ;;  %v330_v44 = vrot.slane %v227_v39, 4 }
  0xfa   :  { %v473_v30 = vadd.f32 %v472_v3, %v471_v15  ;;  %v637_v10 = vsel %vm604_vm4, %v401_v9, %v636_v6  ;;  %v301_v5 = vadd.f32 %v300_v52, %v222_v13  ;;  %v228_v3 = vmul.f32 %v3890_v35, %v117_v50  ;;  %v4024_v6 = vld [vmem:[#allocation4 + $0xb0] sm:$0xff] }
  0xfb   :  { %v509_v32 = vadd.f32 %v508_v25, %v507_v41  ;;  %v544_v16 = vrot.slane %v543_v43, 1  ;;  %v638_v15 = vsel %vm606_vm5, %v437_v29, %v637_v10  ;;  %v307_v51 = vadd.f32 %v306_v11, %v223_v31 }
  0xfc   :  { %v313_v12 = vadd.f32 %v312_v23, %v224_v26  ;;  %v639_v7 = vsel %vm608_vm6, %v473_v30, %v638_v15  ;;  %v319_v48 = vadd.f32 %v318_v38, %v225_v37  ;;  %v229_v41 = vmul.f32 %v3890_v35, %v118_v55 }
  0xfd   :  { %v545_v27 = vadd.f32 %v544_v16, %v543_v43  ;;  %v230_v13 = vmul.f32 %v3890_v35, %v119_v56  ;;  %v640_v50 = vsel %vm610_vm7, %v509_v32, %v639_v7  ;;  %v231_v31 = vmul.f32 %v3890_v35, %v120_v58 }
  0xfe   :  { %v233_v29 = vmul.f32 %v3890_v35, %v122_v60  ;;  %v336_v56 = vrot.slane %v228_v3, 4  ;;  %v4352_v52 = vunpack.c.h.bf16 %v3947_v45  ;;  %v236_v58 = vmul.f32 %v3897_v47, %v4353_v40 }
  0xff   :  { %v4037_v55 = vsel %vm612_vm8, %v545_v27, %v640_v50  ;;  %v302_v53 = vrot.slane %v301_v5, 2  ;;  %v308_v35 = vrot.slane %v307_v51, 2  ;;  %v331_v60 = vadd.f32 %v330_v44, %v227_v39 }
 0x100   :  { %4351 = vst [vmem:[#allocation19_spill] sm:$0xff] %v4037_v55  ;;  %v235_v26 = vmul.f32 %v3897_v47, %v4352_v52  ;;  %v314_v63 = vrot.slane %v313_v12, 2  ;;  %v320_v37 = vrot.slane %v319_v48, 2  ;;  %v342_v38 = vrot.slane %v229_v41, 4 }
 0x101   :  { %v348_v11 = vrot.slane %v230_v13, 4  ;;  %v354_v9 = vrot.slane %v231_v31, 4  ;;  %v366_v23 = vrot.slane %v233_v29, 4  ;;  %v4354_v45 = vunpack.c.h.bf16 %v3949_v46 }
 0x102   :  { %v372_v43 = vrot.slane %v234_v33, 4  ;;  %v337_v32 = vadd.f32 %v336_v56, %v228_v3  ;;  %v4355_v16 = vunpack.c.h.bf16 %v3904_v59  ;;  %v378_v15 = vrot.slane %v235_v26, 4 }
 0x103   :  { %v237_v25 = vmul.f32 %v3897_v47, %v4354_v45  ;;  %v384_v39 = vrot.slane %v236_v58, 4  ;;  %v303_v44 = vadd.f32 %v302_v53, %v301_v5  ;;  %v309_v27 = vadd.f32 %v308_v35, %v307_v51 }
 0x104   :  { %v239_v10 = vmul.f32 %v3897_v47, %v4355_v16  ;;  %v332_v7 = vrot.slane %v331_v60, 2  ;;  %v315_v52 = vadd.f32 %v314_v63, %v313_v12  ;;  %v321_v40 = vadd.f32 %v320_v37, %v319_v48 }
 0x105   :  { %v343_v30 = vadd.f32 %v342_v38, %v229_v41  ;;  %v349_v28 = vadd.f32 %v348_v11, %v230_v13  ;;  %v355_v46 = vadd.f32 %v354_v9, %v231_v31  ;;  %v367_v57 = vadd.f32 %v366_v23, %v233_v29 }
 0x106   :  { %v373_v45 = vadd.f32 %v372_v43, %v234_v33  ;;  %v390_v2 = vrot.slane %v237_v25, 4  ;;  %v338_v3 = vrot.slane %v337_v32, 2  ;;  %v379_v56 = vadd.f32 %v378_v15, %v235_v26 }
 0x107   :  { %v385_v59 = vadd.f32 %v384_v39, %v236_v58  ;;  %v402_v55 = vrot.slane %v239_v10, 4  ;;  %v304_v47 = vrot.slane %v303_v44, 1  ;;  %v310_v16 = vrot.slane %v309_v27, 1 }
 0x108   :  { %v333_v14 = vadd.f32 %v332_v7, %v331_v60  ;;  %v316_v51 = vrot.slane %v315_v52, 1  ;;  %v322_v53 = vrot.slane %v321_v40, 1  ;;  %v344_v35 = vrot.slane %v343_v30, 2 }
 0x109   :  { %v350_v12 = vrot.slane %v349_v28, 2  ;;  %v356_v48 = vrot.slane %v355_v46, 2  ;;  %v368_v41 = vrot.slane %v367_v57, 2  ;;  %v374_v13 = vrot.slane %v373_v45, 2 }
 0x10a   :  { %v391_v31 = vadd.f32 %v390_v2, %v237_v25  ;;  %v339_v29 = vadd.f32 %v338_v3, %v337_v32  ;;  %v380_v33 = vrot.slane %v379_v56, 2  ;;  %v386_v63 = vrot.slane %v385_v59, 2 }
 0x10b   :  { %v403_v37 = vadd.f32 %v402_v55, %v239_v10  ;;  %v4055_v26 = vadd.f32 %v304_v47, %v303_v44  ;;  %v4057_v58 = vadd.f32 %v310_v16, %v309_v27  ;;  %v334_v38 = vrot.slane %v333_v14, 1 }
 0x10c   :  { %v4356_v60 = vunpack.c.l.bf16 %v3957_v61  ;;  %v4062_v9 = vadd.f32 %v316_v51, %v315_v52  ;;  %v4064_v23 = vadd.f32 %v322_v53, %v321_v40  ;;  %v345_v43 = vadd.f32 %v344_v35, %v343_v30 }
 0x10d   :  { %v351_v15 = vadd.f32 %v350_v12, %v349_v28  ;;  %v357_v2 = vadd.f32 %v356_v48, %v355_v46  ;;  %v369_v25 = vadd.f32 %v368_v41, %v367_v57  ;;  %v375_v32 = vadd.f32 %v374_v13, %v373_v45 }
 0x10e   :  { %v240_v11 = vmul.f32 %v3900_v54, %v4356_v60  ;;  %v392_v39 = vrot.slane %v391_v31, 2  ;;  %v340_v55 = vrot.slane %v339_v29, 1  ;;  %v381_v10 = vadd.f32 %v380_v33, %v379_v56 }
 0x10f   :  { %v387_v44 = vadd.f32 %v386_v63, %v385_v59  ;;  %v404_v27 = vrot.slane %v403_v37, 2  ;;  %v4066_v7 = vadd.f32 %v334_v38, %v333_v14  ;;  %v4357_v3 = vunpack.c.h.bf16 %v3957_v61 }
 0x110   :  { %v4358_v52 = vunpack.c.l.bf16 %v3962_v8  ;;  %v408_v30 = vrot.slane %v240_v11, 4  ;;  %v346_v28 = vrot.slane %v345_v43, 1  ;;  %v352_v46 = vrot.slane %v351_v15, 1 }
 0x111   :  { %v241_v47 = vmul.f32 %v3900_v54, %v4357_v3  ;;  %v4359_v57 = vunpack.c.h.bf16 %v3962_v8  ;;  %v4360_v56 = vunpack.c.h.bf16 %v3907_v62  ;;  %v358_v59 = vrot.slane %v357_v2, 1 }
 0x112   :  { %v242_v40 = vmul.f32 %v3900_v54, %v4358_v52  ;;  %v370_v16 = vrot.slane %v369_v25, 1  ;;  %v376_v61 = vrot.slane %v375_v32, 1  ;;  %v393_v51 = vadd.f32 %v392_v39, %v391_v31 }
 0x113   :  { %v243_v45 = vmul.f32 %v3900_v54, %v4359_v57  ;;  %v245_v14 = vmul.f32 %v3900_v54, %v4360_v56  ;;  %v4080_v53 = vadd.f32 %v340_v55, %v339_v29  ;;  %v382_v35 = vrot.slane %v381_v10, 1 }
 0x114   :  { %v388_v12 = vrot.slane %v387_v44, 1  ;;  %v405_v48 = vadd.f32 %v404_v27, %v403_v37  ;;  %v409_v41 = vadd.f32 %v408_v30, %v240_v11  ;;  %v414_v13 = vrot.slane %v241_v47, 4 }
 0x115   :  { %v420_v33 = vrot.slane %v242_v40, 4  ;;  %v4361_v8 = vunpack.c.h.bf16 %v3975_v4  ;;  %v4085_v38 = vadd.f32 %v346_v28, %v345_v43  ;;  %v4087_v62 = vadd.f32 %v352_v46, %v351_v15 }
 0x116   :  { %v426_v54 = vrot.slane %v243_v45, 4  ;;  %v438_v60 = vrot.slane %v245_v14, 4  ;;  %v4089_v3 = vadd.f32 %v358_v59, %v357_v2  ;;  %v4091_v31 = vadd.f32 %v370_v16, %v369_v25 }
 0x117   :  { %v217_v63 = vmul.f32 %v3895_v42, %v4361_v8  ;;  %v4093_v29 = vadd.f32 %v376_v61, %v375_v32  ;;  %v394_v37 = vrot.slane %v393_v51, 1  ;;  %v4095_v11 = vadd.f32 %v382_v35, %v381_v10 }
 0x118   :  { %v4097_v39 = vadd.f32 %v388_v12, %v387_v44  ;;  %v406_v55 = vrot.slane %v405_v48, 1  ;;  %v4363_v27 = vunpack.c.l.bf16 %v3966_v19  ;;  %v410_v15 = vrot.slane %v409_v41, 2 }
 0x119   :  { %v415_v52 = vadd.f32 %v414_v13, %v241_v47  ;;  %v421_v30 = vadd.f32 %v420_v33, %v242_v40  ;;  %v270_v28 = vrot.slane %v217_v63, 4  ;;  %v427_v2 = vadd.f32 %v426_v54, %v243_v45 }
 0x11a   :  { %4362 = vst [vmem:[#allocation20_spill] sm:$0xff] %v4097_v39  ;;  %v246_v43 = vmul.f32 %v3909_v0, %v4363_v27  ;;  %v439_v46 = vadd.f32 %v438_v60, %v245_v14  ;;  %v4364_v25 = vunpack.c.l.bf16 %v3975_v4  ;;  %v4365_v10 = vunpack.c.l.bf16 %v3980_v49 }
 0x11b   :  { %v4108_v57 = vadd.f32 %v394_v37, %v393_v51  ;;  %v4366_v56 = vunpack.c.h.bf16 %v3966_v19  ;;  %v4367_v47 = vunpack.c.l.bf16 %v3968_v20  ;;  %v4368_v45 = vunpack.c.h.bf16 %v3980_v49 }
 0x11c   :  { %v216_v32 = vmul.f32 %v3895_v42, %v4364_v25  ;;  %v218_v44 = vmul.f32 %v3895_v42, %v4365_v10  ;;  %v4119_v14 = vadd.f32 %v406_v55, %v405_v48  ;;  %v4370_v16 = vunpack.c.h.bf16 %v3968_v20 }
 0x11d   :  { %v247_v59 = vmul.f32 %v3909_v0, %v4366_v56  ;;  %v248_v40 = vmul.f32 %v3909_v0, %v4367_v47  ;;  %v219_v4 = vmul.f32 %v3895_v42, %v4368_v45  ;;  %v444_v51 = vrot.slane %v246_v43, 4 }
 0x11e   :  { %4369 = vst [vmem:[#allocation21_spill] sm:$0xff] %v4119_v14  ;;  %v249_v61 = vmul.f32 %v3909_v0, %v4370_v16  ;;  %v4371_v35 = vunpack.c.h.bf16 %v3892_v36  ;;  %v4127_v12 = vadd.f32 %v410_v15, %v409_v41  ;;  %v416_v13 = vrot.slane %v415_v52, 2 }
 0x11f   :  { %v422_v33 = vrot.slane %v421_v30, 2  ;;  %v271_v8 = vadd.f32 %v270_v28, %v217_v63  ;;  %v428_v54 = vrot.slane %v427_v2, 2  ;;  %v440_v49 = vrot.slane %v439_v46, 2 }
 0x120   :  { %v221_v19 = vmul.f32 %v3895_v42, %v4371_v35  ;;  %v264_v60 = vrot.slane %v216_v32, 4  ;;  %v276_v37 = vrot.slane %v218_v44, 4  ;;  %v4372_v48 = vunpack.c.h.bf16 %v3911_v1 }
 0x121   :  { %v450_v55 = vrot.slane %v247_v59, 4  ;;  %v456_v27 = vrot.slane %v248_v40, 4  ;;  %v282_v25 = vrot.slane %v219_v4, 4  ;;  %v445_v10 = vadd.f32 %v444_v51, %v246_v43 }
 0x122   :  { %v251_v20 = vmul.f32 %v3909_v0, %v4372_v48  ;;  %v462_v36 = vrot.slane %v249_v61, 4  ;;  %v294_v56 = vrot.slane %v221_v19, 4  ;;  %v4373_v42 = vunpack.c.h.bf16 %v3984_v24 }
 0x123   :  { %v4136_v15 = vadd.f32 %v416_v13, %v415_v52  ;;  %v4138_v28 = vadd.f32 %v422_v33, %v421_v30  ;;  %v272_v47 = vrot.slane %v271_v8, 2  ;;  %v4140_v1 = vadd.f32 %v428_v54, %v427_v2 }
 0x124   :  { %v253_v41 = vmul.f32 %v3924_v18, %v4373_v42  ;;  %v4142_v0 = vadd.f32 %v440_v49, %v439_v46  ;;  %v265_v45 = vadd.f32 %v264_v60, %v216_v32  ;;  %v277_v16 = vadd.f32 %v276_v37, %v218_v44 }
 0x125   :  { %4374 = vst [vmem:[#allocation22_spill] sm:$0xff] %v4138_v28  ;;  %v451_v43 = vadd.f32 %v450_v55, %v247_v59  ;;  %v457_v51 = vadd.f32 %v456_v27, %v248_v40  ;;  %v474_v35 = vrot.slane %v251_v20, 4  ;;  %v283_v48 = vadd.f32 %v282_v25, %v219_v4 }
 0x126   :  { %4375 = vst [vmem:[#allocation23_spill] sm:$0xff] %v4142_v0  ;;  %v446_v5 = vrot.slane %v445_v10, 2  ;;  %v463_v50 = vadd.f32 %v462_v36, %v249_v61  ;;  %v295_v42 = vadd.f32 %v294_v56, %v221_v19  ;;  %v486_v14 = vrot.slane %v253_v41, 4 }
 0x127   :  { %v273_v13 = vadd.f32 %v272_v47, %v271_v8  ;;  %v4376_v2 = vunpack.c.h.bf16 %v4007_v21  ;;  %v266_v59 = vrot.slane %v265_v45, 2  ;;  %v278_v40 = vrot.slane %v277_v16, 2 }
 0x128   :  { %v452_v4 = vrot.slane %v451_v43, 2  ;;  %v458_v33 = vrot.slane %v457_v51, 2  ;;  %v475_v61 = vadd.f32 %v474_v35, %v251_v20  ;;  %v284_v19 = vrot.slane %v283_v48, 2 }
 0x129   :  { %v259_v46 = vmul.f32 %v3938_v34, %v4376_v2  ;;  %v4151_v54 = vadd.f32 %v446_v5, %v445_v10  ;;  %v464_v49 = vrot.slane %v463_v50, 2  ;;  %v296_v60 = vrot.slane %v295_v42, 2  ;;  %v4380_v10 = vld [vmem:[#allocation18_spill] sm:$0xff] }
 0x12a   :  { %v487_v37 = vadd.f32 %v486_v14, %v253_v41  ;;  %v274_v8 = vrot.slane %v273_v13, 1  ;;  %v4377_v55 = vunpack.c.l.bf16 %v3984_v24  ;;  %v4378_v25 = vunpack.c.h.bf16 %v3991_v17 }
 0x12b   :  { %v522_v56 = vrot.slane %v259_v46, 4  ;;  %v267_v47 = vadd.f32 %v266_v59, %v265_v45  ;;  %v279_v2 = vadd.f32 %v278_v40, %v277_v16  ;;  %v4379_v20 = vunpack.c.l.bf16 %v3991_v17 }
 0x12c   :  { %v252_v27 = vmul.f32 %v3924_v18, %v4377_v55  ;;  %v255_v36 = vmul.f32 %v3924_v18, %v4378_v25  ;;  %v4381_v35 = vunpack.c.h.bf16 %v4380_v10  ;;  %v453_v41 = vadd.f32 %v452_v4, %v451_v43 }
 0x12d   :  { %v254_v5 = vmul.f32 %v3924_v18, %v4379_v20  ;;  %v476_v44 = vrot.slane %v475_v61, 2  ;;  %v285_v24 = vadd.f32 %v284_v19, %v283_v48  ;;  %v4382_v55 = vunpack.c.h.bf16 %v4024_v6 }
 0x12e   :  { %v257_v14 = vmul.f32 %v3924_v18, %v4381_v35  ;;  %v4168_v63 = vadd.f32 %v458_v33, %v457_v51  ;;  %v465_v25 = vadd.f32 %v464_v49, %v463_v50  ;;  %v297_v45 = vadd.f32 %v296_v60, %v295_v42 }
 0x12f   :  { %v261_v30 = vmul.f32 %v3938_v34, %v4382_v55  ;;  %v488_v16 = vrot.slane %v487_v37, 2  ;;  %v275_v59 = vadd.f32 %v274_v8, %v273_v13  ;;  %v480_v17 = vrot.slane %v252_v27, 4 }
 0x130   :  { %v498_v40 = vrot.slane %v255_v36, 4  ;;  %v523_v20 = vadd.f32 %v522_v56, %v259_v46  ;;  %v268_v32 = vrot.slane %v267_v47, 1  ;;  %v280_v10 = vrot.slane %v279_v2, 1 }
 0x131   :  { %v492_v52 = vrot.slane %v254_v5, 4  ;;  %v510_v18 = vrot.slane %v257_v14, 4  ;;  %v286_v43 = vrot.slane %v285_v24, 1  ;;  %v4383_v48 = vunpack.c.l.bf16 %v4007_v21 }
 0x132   :  { %v4384_v19 = vunpack.c.l.bf16 %v4024_v6  ;;  %v534_v50 = vrot.slane %v261_v30, 4  ;;  %v4176_v42 = vadd.f32 %v476_v44, %v475_v61  ;;  %v298_v13 = vrot.slane %v297_v45, 1 }
 0x133   :  { %v258_v4 = vmul.f32 %v3938_v34, %v4383_v48  ;;  %v4385_v33 = vunpack.c.h.bf16 %v3928_v22  ;;  %v489_v49 = vadd.f32 %v488_v16, %v487_v37  ;;  %v481_v60 = vadd.f32 %v480_v17, %v252_v27 }
 0x134   :  { %v260_v51 = vmul.f32 %v3938_v34, %v4384_v19  ;;  %v499_v8 = vadd.f32 %v498_v40, %v255_v36  ;;  %v524_v56 = vrot.slane %v523_v20, 2  ;;  %v614_v21 = vsel %vm600_vm2, %v4057_v58, %v275_v59 }
 0x135   :  { %v263_v46 = vmul.f32 %v3938_v34, %v4385_v33  ;;  %v269_v35 = vadd.f32 %v268_v32, %v267_v47  ;;  %v281_v55 = vadd.f32 %v280_v10, %v279_v2  ;;  %v493_v6 = vadd.f32 %v492_v52, %v254_v5 }
 0x136   :  { %v511_v48 = vadd.f32 %v510_v18, %v257_v14  ;;  %v287_v19 = vadd.f32 %v286_v43, %v285_v24  ;;  %v516_v39 = vrot.slane %v258_v4, 4  ;;  %v528_v44 = vrot.slane %v260_v51, 4 }
 0x137   :  { %v535_v61 = vadd.f32 %v534_v50, %v261_v30  ;;  %v546_v0 = vrot.slane %v263_v46, 4  ;;  %v454_v28 = vrot.slane %v453_v41, 1  ;;  %v490_v22 = vrot.slane %v489_v49, 1 }
 0x138   :  { %v615_v34 = vsel %vm602_vm3, %v4085_v38, %v614_v21  ;;  %v299_v37 = vadd.f32 %v298_v13, %v297_v45  ;;  %v482_v27 = vrot.slane %v481_v60, 2  ;;  %v500_v36 = vrot.slane %v499_v8, 2  ;;  %v4391_v21 = vld [vmem:[#allocation23_spill] sm:$0xff] }
 0x139   :  { %v4185_v16 = vadd.f32 %v524_v56, %v523_v20  ;;  %v494_v58 = vrot.slane %v493_v6, 2  ;;  %v512_v32 = vrot.slane %v511_v48, 2  ;;  %v4386_v52 = vrot.slane %v4136_v15, 1 }
 0x13a   :  { %v466_v2 = vrot.slane %v465_v25, 1  ;;  %v517_v5 = vadd.f32 %v516_v39, %v258_v4  ;;  %v529_v30 = vadd.f32 %v528_v44, %v260_v51  ;;  %v616_v14 = vsel %vm604_vm4, %v4095_v11, %v615_v34 }
 0x13b   :  { %v419_v47 = vadd.f32 %v4386_v52, %v4136_v15  ;;  %v536_v24 = vrot.slane %v535_v61, 2  ;;  %v547_v59 = vadd.f32 %v546_v0, %v263_v46  ;;  %v455_v38 = vadd.f32 %v454_v28, %v453_v41 }
 0x13c   :  { %v491_v45 = vadd.f32 %v490_v22, %v489_v49  ;;  %v628_v17 = vsel %vm600_vm2, %v4064_v23, %v287_v19  ;;  %v526_v40 = vrot.slane %v4185_v16, 1  ;;  %v4387_v20 = vrot.slane %v4140_v1, 1  ;;  %v4394_v19 = vld [vmem:[#allocation21_spill] sm:$0xff] }
 0x13d   :  { %v501_v15 = vadd.f32 %v500_v36, %v499_v8  ;;  %v601_v39 = vsel %vm600_vm2, %v4055_v26, %v269_v35  ;;  %v617_v18 = vsel %vm606_vm5, %v419_v47, %v616_v14  ;;  %v467_v11 = vadd.f32 %v466_v2, %v465_v25  ;;  %v4389_v8 = vld [vmem:[#allocation22_spill] sm:$0xff] }
 0x13e   :  { %v431_v10 = vadd.f32 %v4387_v20, %v4140_v1  ;;  %v621_v28 = vsel %vm600_vm2, %v4062_v9, %v281_v55  ;;  %v642_v0 = vsel %vm600_vm2, %v4066_v7, %v299_v37  ;;  %v537_v23 = vadd.f32 %v536_v24, %v535_v61 }
 0x13f   :  { %v629_v41 = vsel %vm602_vm3, %v4089_v3, %v628_v17  ;;  %v4388_v1 = vrot.slane %v4127_v12, 1  ;;  %v518_v4 = vrot.slane %v517_v5, 2  ;;  %v483_v51 = vadd.f32 %v482_v27, %v481_v60 }
 0x140   :  { %v603_v26 = vsel %vm602_vm3, %v4080_v53, %v601_v39  ;;  %v530_v25 = vrot.slane %v529_v30, 2  ;;  %v548_v50 = vrot.slane %v547_v59, 2  ;;  %v495_v13 = vadd.f32 %v494_v58, %v493_v6 }
 0x141   :  { %v413_v43 = vadd.f32 %v4388_v1, %v4127_v12  ;;  %v622_v9 = vsel %vm602_vm3, %v4087_v62, %v621_v28  ;;  %v513_v7 = vadd.f32 %v512_v32, %v511_v48  ;;  %v643_v33 = vsel %vm602_vm3, %v4091_v31, %v642_v0 }
 0x142   :  { %v630_v3 = vsel %vm604_vm4, %v4108_v57, %v629_v41  ;;  %v448_v12 = vrot.slane %v4151_v54, 1  ;;  %v460_v46 = vrot.slane %v4168_v63, 1  ;;  %v478_v49 = vrot.slane %v4176_v42, 1  ;;  %v4393_v57 = vld [vmem:[#allocation20_spill] sm:$0xff] }
 0x143   :  { %v519_v53 = vadd.f32 %v518_v4, %v517_v5  ;;  %v605_v60 = vsel %vm604_vm4, %v4093_v29, %v603_v26  ;;  %v4390_v62 = vrot.slane %v4389_v8, 1  ;;  %v4392_v31 = vrot.slane %v4391_v21, 1 }
 0x144   :  { %v531_v55 = vadd.f32 %v530_v25, %v529_v30  ;;  %v623_v6 = vsel %vm604_vm4, %v4393_v57, %v622_v9  ;;  %v549_v48 = vadd.f32 %v548_v50, %v547_v59  ;;  %v644_v44 = vsel %vm604_vm4, %v4394_v19, %v643_v33  ;;  %v4395_v33 = vld [vmem:[#allocation19_spill] sm:$0xff] }
 0x145   :  { %v425_v56 = vadd.f32 %v4390_v62, %v4389_v8  ;;  %v443_v35 = vadd.f32 %v4392_v31, %v4391_v21  ;;  %v502_v61 = vrot.slane %v501_v15, 1  ;;  %v484_v22 = vrot.slane %v483_v51, 1  ;;  %v3321_v62 = vld [vmem:[#allocation9 + $0x634] ss:$24 sps:$4 sm:$0xff]   ;;  %v3319_v31 = vld [vmem:[#allocation9 + $0x630] ss:$24 sps:$4 sm:$0xff]  }
 0x146   :  { %v496_v34 = vrot.slane %v495_v13, 1  ;;  %v514_v29 = vrot.slane %v513_v7, 1  ;;  %v618_v37 = vsel %vm608_vm6, %v455_v38, %v617_v18  ;;  %v449_v27 = vadd.f32 %v448_v12, %v4151_v54  ;;  %v3330_v57 = vld [vmem:[#allocation9 + $0x6c] ss:$24 sps:$4 sm:$0xff]  }
 0x147   :  { %v461_v36 = vadd.f32 %v460_v46, %v4168_v63  ;;  %v479_v58 = vadd.f32 %v478_v49, %v4176_v42  ;;  %v631_v32 = vsel %vm606_vm5, %v431_v10, %v630_v3  ;;  %v607_v52 = vsel %vm606_vm5, %v413_v43, %v605_v60  ;;  %v3313_v49 = vld [vmem:[#allocation9 + $0x600] ss:$24 sps:$4 sm:$0xff]   ;;  %v3333_v19 = vld [vmem:[#allocation9 + $0x694] ss:$24 sps:$4 sm:$0xff]  }
 0x148   :  { %v624_v47 = vsel %vm606_vm5, %v425_v56, %v623_v6  ;;  %v645_v2 = vsel %vm606_vm5, %v443_v35, %v644_v44  ;;  %v538_v5 = vrot.slane %v537_v23, 1  ;;  %v520_v30 = vrot.slane %v519_v53, 1  ;;  %v3324_v56 = vld [vmem:[#allocation9 + $0x3c] ss:$24 sps:$4 sm:$0xff]   ;;  %v3322_v35 = vld [vmem:[#allocation9 + $0x38] ss:$24 sps:$4 sm:$0xff]  }
 0x149   :  { %v532_v14 = vrot.slane %v531_v55, 1  ;;  %v550_v24 = vrot.slane %v549_v48, 1  ;;  %v503_v59 = vadd.f32 %v502_v61, %v501_v15  ;;  %v485_v38 = vadd.f32 %v484_v22, %v483_v51  ;;  %v3325_v6 = vld [vmem:[#allocation9 + $0x660] ss:$24 sps:$4 sm:$0xff]   ;;  %v3336_v44 = vld [vmem:[#allocation9 + $0x9c] ss:$24 sps:$4 sm:$0xff]  }
 0x14a   :  { %v497_v17 = vadd.f32 %v496_v34, %v495_v13  ;;  %v515_v54 = vadd.f32 %v514_v29, %v513_v7  ;;  %v632_v63 = vsel %vm608_vm6, %v467_v11, %v631_v32  ;;  %v609_v42 = vsel %vm608_vm6, %v449_v27, %v607_v52  ;;  %v3331_v61 = vld [vmem:[#allocation9 + $0x690] ss:$24 sps:$4 sm:$0xff]   ;;  %v3339_v34 = vld [vmem:[#allocation9 + $0x6c4] ss:$24 sps:$4 sm:$0xff]  }
 0x14b   :  { %v625_v20 = vsel %vm608_vm6, %v461_v36, %v624_v47  ;;  %v646_v10 = vsel %vm608_vm6, %v479_v58, %v645_v2  ;;  %v527_v39 = vadd.f32 %v526_v40, %v4185_v16  ;;  %v619_v18 = vsel %vm610_vm7, %v491_v45, %v618_v37  ;;  %v3334_v22 = vld [vmem:[#allocation9 + $0x98] ss:$24 sps:$4 sm:$0xff]   ;;  %v3342_v29 = vld [vmem:[#allocation9 + $0xcc] ss:$24 sps:$4 sm:$0xff]   ;;  %v3340_v27 = vld [vmem:[#allocation9 + $0xc8] ss:$24 sps:$4 sm:$0xff]  }
 0x14c   :  { %v539_v28 = vadd.f32 %v538_v5, %v537_v23  ;;  %v521_v0 = vadd.f32 %v520_v30, %v519_v53  ;;  %v533_v41 = vadd.f32 %v532_v14, %v531_v55  ;;  %v551_v1 = vadd.f32 %v550_v24, %v549_v48  ;;  %v3316_v53 = vld [vmem:[#allocation9 + $0x8] ss:$24 sps:$4 sm:$0xff]   ;;  %v3327_v55 = vld [vmem:[#allocation9 + $0x664] ss:$24 sps:$4 sm:$0xff]   ;;  %v3345_v36 = vld [vmem:[#allocation9 + $0x6f4] ss:$24 sps:$4 sm:$0xff]  }
 0x14d   :  { %v633_v15 = vsel %vm610_vm7, %v503_v59, %v632_v63  ;;  %v611_v43 = vsel %vm610_vm7, %v485_v38, %v609_v42  ;;  %v626_v11 = vsel %vm610_vm7, %v497_v17, %v625_v20  ;;  %v647_v4 = vsel %vm610_vm7, %v515_v54, %v646_v10  ;;  %v3328_v48 = vld [vmem:[#allocation9 + $0x68] ss:$24 sps:$4 sm:$0xff]   ;;  %v3348_v58 = vld [vmem:[#allocation9 + $0xfc] ss:$24 sps:$4 sm:$0xff]   ;;  %v3346_v52 = vld [vmem:[#allocation9 + $0xf8] ss:$24 sps:$4 sm:$0xff]  }
 0x14e   :  { %v620_v51 = vsel %vm612_vm8, %v527_v39, %v619_v18  ;;  %v634_v25 = vsel %vm612_vm8, %v539_v28, %v633_v15  ;;  %v613_v16 = vsel %vm612_vm8, %v521_v0, %v611_v43  ;;  %v627_v45 = vsel %vm612_vm8, %v533_v41, %v626_v11  ;;  %v3337_v37 = vld [vmem:[#allocation9 + $0x6c0] ss:$24 sps:$4 sm:$0xff]   ;;  %v3343_v32 = vld [vmem:[#allocation9 + $0x6f0] ss:$24 sps:$4 sm:$0xff]   ;;  %v3351_v47 = vld [vmem:[#allocation9 + $0x724] ss:$24 sps:$4 sm:$0xff]  }
 0x14f   :  { %v648_v40 = vsel %vm612_vm8, %v551_v1, %v647_v4  ;;  %v3354_v2 = vld [vmem:[#allocation9 + $0x12c] ss:$24 sps:$4 sm:$0xff]   ;;  %v3349_v5 = vld [vmem:[#allocation9 + $0x720] ss:$24 sps:$4 sm:$0xff]   ;;  %v3360_v24 = vld [vmem:[#allocation9 + $0x15c] ss:$24 sps:$4 sm:$0xff]  }
 0x150   :  { %v3352_v30 = vld [vmem:[#allocation9 + $0x128] ss:$24 sps:$4 sm:$0xff]   ;;  %v3357_v14 = vld [vmem:[#allocation9 + $0x754] ss:$24 sps:$4 sm:$0xff]   ;;  %v3358_v38 = vld [vmem:[#allocation9 + $0x158] ss:$24 sps:$4 sm:$0xff]  }
 0x151   :  { %v3355_v59 = vld [vmem:[#allocation9 + $0x750] ss:$24 sps:$4 sm:$0xff]   ;;  %v3363_v17 = vld [vmem:[#allocation9 + $0x784] ss:$24 sps:$4 sm:$0xff]   ;;  %v3361_v63 = vld [vmem:[#allocation9 + $0x780] ss:$24 sps:$4 sm:$0xff]  }
 0x152   :  { %v3366_v54 = vld [vmem:[#allocation9 + $0x18c] ss:$24 sps:$4 sm:$0xff]   ;;  %v3364_v42 = vld [vmem:[#allocation9 + $0x188] ss:$24 sps:$4 sm:$0xff]   ;;  %v3372_v10 = vld [vmem:[#allocation9 + $0x1bc] ss:$24 sps:$4 sm:$0xff]  }
 0x153   :  { %v3369_v20 = vld [vmem:[#allocation9 + $0x7b4] ss:$24 sps:$4 sm:$0xff]   ;;  %v3367_v39 = vld [vmem:[#allocation9 + $0x7b0] ss:$24 sps:$4 sm:$0xff]   ;;  %v3375_v28 = vld [vmem:[#allocation9 + $0x7e4] ss:$24 sps:$4 sm:$0xff]  }
 0x154   :  { %v3370_v18 = vld [vmem:[#allocation9 + $0x1b8] ss:$24 sps:$4 sm:$0xff]   ;;  %v3378_v0 = vld [vmem:[#allocation9 + $0x1ec] ss:$24 sps:$4 sm:$0xff]   ;;  %v3376_v1 = vld [vmem:[#allocation9 + $0x1e8] ss:$24 sps:$4 sm:$0xff]  }
 0x155   :  { %v3373_v41 = vld [vmem:[#allocation9 + $0x7e0] ss:$24 sps:$4 sm:$0xff]   ;;  %v3381_v15 = vld [vmem:[#allocation9 + $0x814] ss:$24 sps:$4 sm:$0xff]   ;;  %v3379_v11 = vld [vmem:[#allocation9 + $0x810] ss:$24 sps:$4 sm:$0xff]  }
 0x156   :  { %v3384_v43 = vld [vmem:[#allocation9 + $0x21c] ss:$24 sps:$4 sm:$0xff]   ;;  %v3382_v4 = vld [vmem:[#allocation9 + $0x218] ss:$24 sps:$4 sm:$0xff]  }
 0x16f   :  { %v691_v26 = vpop.permute.xlu0 %690 }
 0x170   :  { %v694_v23 = vmul.f32 %v691_v26, %v620_v51  ;;  %v696_v50 = vmul.f32 %v691_v26, %v634_v25  ;;  %v693_v13 = vmul.f32 %v691_v26, %v613_v16  ;;  %v695_v9 = vmul.f32 %v691_v26, %v627_v45  ;;  %v3387_v51 = vld [vmem:[#allocation9 + $0x844] ss:$24 sps:$4 sm:$0xff]   ;;  %v3385_v25 = vld [vmem:[#allocation9 + $0x840] ss:$24 sps:$4 sm:$0xff]   ;;  %v3393_v45 = vld [vmem:[#allocation9 + $0x874] ss:$24 sps:$4 sm:$0xff]  }
 0x171   :  { %v698_v7 = vmul.f32 %v691_v26, %v648_v40  ;;  %v4257_v3 = vmul.f32 %v691_v26, %v4395_v33  ;;  %v3390_v26 = vld [vmem:[#allocation9 + $0x24c] ss:$24 sps:$4 sm:$0xff]   ;;  %v3388_v16 = vld [vmem:[#allocation9 + $0x248] ss:$24 sps:$4 sm:$0xff]   ;;  %v3396_v40 = vld [vmem:[#allocation9 + $0x27c] ss:$24 sps:$4 sm:$0xff]  }
 0x172   :  { %v4259_v12 = vpack.c.bf16 %v694_v23, %v694_v23  ;;  %v4261_v46 = vpack.c.bf16 %v696_v50, %v696_v50  ;;  %v4263_v60 = vpack.c.bf16 %v693_v13, %v693_v13  ;;  %v4265_v8 = vpack.c.bf16 %v695_v9, %v695_v9  ;;  %v3391_v23 = vld [vmem:[#allocation9 + $0x870] ss:$24 sps:$4 sm:$0xff]   ;;  %v3399_v13 = vld [vmem:[#allocation9 + $0x8a4] ss:$24 sps:$4 sm:$0xff]  }
 0x173   :  { %v4271_v21 = vpack.c.bf16 %v698_v7, %v698_v7  ;;  %v3394_v50 = vld [vmem:[#allocation9 + $0x278] ss:$24 sps:$4 sm:$0xff]   ;;  %v3402_v9 = vld [vmem:[#allocation9 + $0x2ac] ss:$24 sps:$4 sm:$0xff]   ;;  %v3400_v33 = vld [vmem:[#allocation9 + $0x2a8] ss:$24 sps:$4 sm:$0xff]  }
 0x174   :  { %2509 = vmatprep.mubr.bf16.mxu1 %v4259_v12  ;;  %2550 = vmatprep.mubr.bf16.mxu0 %v4261_v46  ;;  %v3397_v7 = vld [vmem:[#allocation9 + $0x8a0] ss:$24 sps:$4 sm:$0xff]  }
 0x175   :  { %2510 = vmatmul.mubr.bf16.vlgmr.msra.gmra.mrb[0].mxu1 %v4263_v60  ;;  %2551 = vmatmul.mubr.bf16.vlgmr.msra.gmra.mrb[0].mxu0 %v4265_v8 }
 0x176   :  { %2560 = vmatpush1.bf16.msra.mxu0 %v3313_v49  ;;  %2601 = vmatpush1.bf16.msra.mxu1 %v3316_v53  ;;  %v3405_v49 = vld [vmem:[#allocation9 + $0x8d4] ss:$24 sps:$4 sm:$0xff]  }
 0x177   :  { %2591 = vmatprep.mubr.bf16.mxu0 %v4271_v21  ;;  %2632 = vmatprep.mubr.bf16.mxu1 %v4259_v12  ;;  %v3408_v53 = vld [vmem:[#allocation9 + $0x2dc] ss:$24 sps:$4 sm:$0xff]  }
 0x178   :  { %2561 = vmatprep.subr.bf16.mxu0 %v3321_v62  ;;  %2602 = vmatprep.subr.bf16.mxu1 %v3324_v56  ;;  %v3403_v62 = vld [vmem:[#allocation9 + $0x8d0] ss:$24 sps:$4 sm:$0xff]  }
 0x179   :  { %v3406_v56 = vld [vmem:[#allocation9 + $0x2d8] ss:$24 sps:$4 sm:$0xff]  }
 0x17a   :  { %2562 = vmatpush1.bf16.msra.mxu0 %v3319_v31  ;;  %2603 = vmatpush1.bf16.msra.mxu1 %v3322_v35  ;;  %v3411_v31 = vld [vmem:[#allocation9 + $0x30c] ss:$24 sps:$4 sm:$0xff]  }
 0x17b   :  { %2563 = vmatprep.subr.bf16.mxu0 %v3327_v55  ;;  %2604 = vmatprep.subr.bf16.mxu1 %v3330_v57  ;;  %v3414_v35 = vld [vmem:[#allocation9 + $0x14] ss:$24 sps:$4 sm:$0xff]   ;;  %v3409_v55 = vld [vmem:[#allocation9 + $0x308] ss:$24 sps:$4 sm:$0xff]   ;;  %v4277_v57 = vpack.c.bf16 %v4257_v3, %v4257_v3 }
 0x17c   :  { %v3426_v3 = vld [vmem:[#allocation9 + $0x74] ss:$24 sps:$4 sm:$0xff]  }
 0x17e   :  { %2564 = vmatpush1.bf16.msra.mxu0 %v3325_v6  ;;  %2605 = vmatpush1.bf16.msra.mxu1 %v3328_v48  ;;  %v3412_v6 = vld [vmem:[#allocation9 + $0x10] ss:$24 sps:$4 sm:$0xff]   ;;  %v3417_v48 = vld [vmem:[#allocation9 + $0x33c] ss:$24 sps:$4 sm:$0xff]  }
 0x17f   :  { %2565 = vmatprep.subr.bf16.mxu0 %v3333_v19  ;;  %2606 = vmatprep.subr.bf16.mxu1 %v3336_v44  ;;  %v3420_v19 = vld [vmem:[#allocation9 + $0x44] ss:$24 sps:$4 sm:$0xff]   ;;  %v3415_v44 = vld [vmem:[#allocation9 + $0x338] ss:$24 sps:$4 sm:$0xff]  }
 0x182   :  { %2566 = vmatpush1.bf16.msra.mxu0 %v3331_v61  ;;  %2607 = vmatpush1.bf16.msra.mxu1 %v3334_v22  ;;  %v3418_v61 = vld [vmem:[#allocation9 + $0x40] ss:$24 sps:$4 sm:$0xff]   ;;  %v3423_v22 = vld [vmem:[#allocation9 + $0x36c] ss:$24 sps:$4 sm:$0xff]  }
 0x183   :  { %2567 = vmatprep.subr.bf16.mxu0 %v3339_v34  ;;  %2608 = vmatprep.subr.bf16.mxu1 %v3342_v29  ;;  %v3421_v34 = vld [vmem:[#allocation9 + $0x368] ss:$24 sps:$4 sm:$0xff]  }
 0x184   :  { %v3424_v29 = vld [vmem:[#allocation9 + $0x70] ss:$24 sps:$4 sm:$0xff]  }
 0x186   :  { %2568 = vmatpush1.bf16.msra.mxu0 %v3337_v37  ;;  %2609 = vmatpush1.bf16.msra.mxu1 %v3340_v27  ;;  %v3429_v37 = vld [vmem:[#allocation9 + $0x39c] ss:$24 sps:$4 sm:$0xff]  }
 0x187   :  { %2569 = vmatprep.subr.bf16.mxu0 %v3345_v36  ;;  %2610 = vmatprep.subr.bf16.mxu1 %v3348_v58  ;;  %v3432_v27 = vld [vmem:[#allocation9 + $0xa4] ss:$24 sps:$4 sm:$0xff]   ;;  %v3427_v36 = vld [vmem:[#allocation9 + $0x398] ss:$24 sps:$4 sm:$0xff]  }
 0x188   :  { %v3430_v58 = vld [vmem:[#allocation9 + $0xa0] ss:$24 sps:$4 sm:$0xff]  }
 0x18a   :  { %2570 = vmatpush1.bf16.msra.mxu0 %v3343_v32  ;;  %2611 = vmatpush1.bf16.msra.mxu1 %v3346_v52  ;;  %v3435_v32 = vld [vmem:[#allocation9 + $0x3cc] ss:$24 sps:$4 sm:$0xff]   ;;  %v3433_v52 = vld [vmem:[#allocation9 + $0x3c8] ss:$24 sps:$4 sm:$0xff]  }
 0x18b   :  { %2571 = vmatprep.subr.bf16.mxu0 %v3351_v47  ;;  %2612 = vmatprep.subr.bf16.mxu1 %v3354_v2  ;;  %v3436_v47 = vld [vmem:[#allocation9 + $0xd0] ss:$24 sps:$4 sm:$0xff]   ;;  %v3441_v2 = vld [vmem:[#allocation9 + $0x3fc] ss:$24 sps:$4 sm:$0xff]  }
 0x18e   :  { %2572 = vmatpush1.bf16.msra.mxu0 %v3349_v5  ;;  %2613 = vmatpush1.bf16.msra.mxu1 %v3352_v30  ;;  %v3444_v5 = vld [vmem:[#allocation9 + $0x104] ss:$24 sps:$4 sm:$0xff]   ;;  %v3439_v30 = vld [vmem:[#allocation9 + $0x3f8] ss:$24 sps:$4 sm:$0xff]  }
 0x18f   :  { %2573 = vmatprep.subr.bf16.mxu0 %v3357_v14  ;;  %2614 = vmatprep.subr.bf16.mxu1 %v3360_v24  ;;  %v3442_v14 = vld [vmem:[#allocation9 + $0x100] ss:$24 sps:$4 sm:$0xff]   ;;  %v3447_v24 = vld [vmem:[#allocation9 + $0x42c] ss:$24 sps:$4 sm:$0xff]  }
 0x192   :  { %2574 = vmatpush1.bf16.msra.mxu0 %v3355_v59  ;;  %2615 = vmatpush1.bf16.msra.mxu1 %v3358_v38  ;;  %v3450_v59 = vld [vmem:[#allocation9 + $0x134] ss:$24 sps:$4 sm:$0xff]   ;;  %v3445_v38 = vld [vmem:[#allocation9 + $0x428] ss:$24 sps:$4 sm:$0xff]  }
 0x193   :  { %2575 = vmatprep.subr.bf16.mxu0 %v3363_v17  ;;  %2616 = vmatprep.subr.bf16.mxu1 %v3366_v54  ;;  %v3448_v17 = vld [vmem:[#allocation9 + $0x130] ss:$24 sps:$4 sm:$0xff]   ;;  %v3453_v54 = vld [vmem:[#allocation9 + $0x45c] ss:$24 sps:$4 sm:$0xff]  }
 0x196   :  { %2576 = vmatpush1.bf16.msra.mxu0 %v3361_v63  ;;  %2617 = vmatpush1.bf16.msra.mxu1 %v3364_v42  ;;  %v3456_v63 = vld [vmem:[#allocation9 + $0x164] ss:$24 sps:$4 sm:$0xff]   ;;  %v3451_v42 = vld [vmem:[#allocation9 + $0x458] ss:$24 sps:$4 sm:$0xff]  }
 0x197   :  { %2577 = vmatprep.subr.bf16.mxu0 %v3369_v20  ;;  %2618 = vmatprep.subr.bf16.mxu1 %v3372_v10  ;;  %v3454_v20 = vld [vmem:[#allocation9 + $0x160] ss:$24 sps:$4 sm:$0xff]   ;;  %v3459_v10 = vld [vmem:[#allocation9 + $0x48c] ss:$24 sps:$4 sm:$0xff]  }
 0x19a   :  { %2578 = vmatpush1.bf16.msra.mxu0 %v3367_v39  ;;  %2619 = vmatpush1.bf16.msra.mxu1 %v3370_v18  ;;  %v3462_v39 = vld [vmem:[#allocation9 + $0x194] ss:$24 sps:$4 sm:$0xff]   ;;  %v3457_v18 = vld [vmem:[#allocation9 + $0x488] ss:$24 sps:$4 sm:$0xff]  }
 0x19b   :  { %2579 = vmatprep.subr.bf16.mxu0 %v3375_v28  ;;  %2620 = vmatprep.subr.bf16.mxu1 %v3378_v0  ;;  %v3460_v28 = vld [vmem:[#allocation9 + $0x190] ss:$24 sps:$4 sm:$0xff]   ;;  %v3465_v0 = vld [vmem:[#allocation9 + $0x4bc] ss:$24 sps:$4 sm:$0xff]  }
 0x19e   :  { %2580 = vmatpush1.bf16.msra.mxu0 %v3373_v41  ;;  %2621 = vmatpush1.bf16.msra.mxu1 %v3376_v1  ;;  %v3468_v41 = vld [vmem:[#allocation9 + $0x1c4] ss:$24 sps:$4 sm:$0xff]   ;;  %v3463_v1 = vld [vmem:[#allocation9 + $0x4b8] ss:$24 sps:$4 sm:$0xff]  }
 0x19f   :  { %2581 = vmatprep.subr.bf16.mxu0 %v3381_v15  ;;  %2622 = vmatprep.subr.bf16.mxu1 %v3384_v43  ;;  %v3466_v15 = vld [vmem:[#allocation9 + $0x1c0] ss:$24 sps:$4 sm:$0xff]   ;;  %v3471_v43 = vld [vmem:[#allocation9 + $0x4ec] ss:$24 sps:$4 sm:$0xff]  }
 0x1a2   :  { %2582 = vmatpush1.bf16.msra.mxu0 %v3379_v11  ;;  %2623 = vmatpush1.bf16.msra.mxu1 %v3382_v4  ;;  %v3474_v11 = vld [vmem:[#allocation9 + $0x1f4] ss:$24 sps:$4 sm:$0xff]   ;;  %v3469_v4 = vld [vmem:[#allocation9 + $0x4e8] ss:$24 sps:$4 sm:$0xff]  }
 0x1a3   :  { %2583 = vmatprep.subr.bf16.mxu0 %v3387_v51  ;;  %2624 = vmatprep.subr.bf16.mxu1 %v3390_v26  ;;  %v3472_v51 = vld [vmem:[#allocation9 + $0x1f0] ss:$24 sps:$4 sm:$0xff]   ;;  %v3477_v26 = vld [vmem:[#allocation9 + $0x51c] ss:$24 sps:$4 sm:$0xff]  }
 0x1a6   :  { %2584 = vmatpush1.bf16.msra.mxu0 %v3385_v25  ;;  %2625 = vmatpush1.bf16.msra.mxu1 %v3388_v16  ;;  %v3480_v25 = vld [vmem:[#allocation9 + $0x224] ss:$24 sps:$4 sm:$0xff]   ;;  %v3475_v16 = vld [vmem:[#allocation9 + $0x518] ss:$24 sps:$4 sm:$0xff]  }
 0x1a7   :  { %2585 = vmatprep.subr.bf16.mxu0 %v3393_v45  ;;  %2626 = vmatprep.subr.bf16.mxu1 %v3396_v40  ;;  %v3478_v45 = vld [vmem:[#allocation9 + $0x220] ss:$24 sps:$4 sm:$0xff]   ;;  %v3483_v40 = vld [vmem:[#allocation9 + $0x54c] ss:$24 sps:$4 sm:$0xff]  }
 0x1aa   :  { %2586 = vmatpush1.bf16.msra.mxu0 %v3391_v23  ;;  %2627 = vmatpush1.bf16.msra.mxu1 %v3394_v50  ;;  %v3486_v23 = vld [vmem:[#allocation9 + $0x254] ss:$24 sps:$4 sm:$0xff]   ;;  %v3481_v50 = vld [vmem:[#allocation9 + $0x548] ss:$24 sps:$4 sm:$0xff]  }
 0x1ab   :  { %2587 = vmatprep.subr.bf16.mxu0 %v3399_v13  ;;  %2628 = vmatprep.subr.bf16.mxu1 %v3402_v9  ;;  %v3484_v13 = vld [vmem:[#allocation9 + $0x250] ss:$24 sps:$4 sm:$0xff]   ;;  %v3489_v9 = vld [vmem:[#allocation9 + $0x57c] ss:$24 sps:$4 sm:$0xff]  }
 0x1ae   :  { %2588 = vmatpush1.bf16.msra.mxu0 %v3397_v7  ;;  %2629 = vmatpush1.bf16.msra.mxu1 %v3400_v33  ;;  %v3492_v7 = vld [vmem:[#allocation9 + $0x284] ss:$24 sps:$4 sm:$0xff]   ;;  %v3487_v33 = vld [vmem:[#allocation9 + $0x578] ss:$24 sps:$4 sm:$0xff]  }
 0x1af   :  { %2589 = vmatprep.subr.bf16.mxu0 %v3405_v49  ;;  %2630 = vmatprep.subr.bf16.mxu1 %v3408_v53  ;;  %v3490_v49 = vld [vmem:[#allocation9 + $0x280] ss:$24 sps:$4 sm:$0xff]   ;;  %v3495_v53 = vld [vmem:[#allocation9 + $0x5ac] ss:$24 sps:$4 sm:$0xff]  }
 0x1b2   :  { %2590 = vmatpush1.bf16.msra.mxu0 %v3403_v62  ;;  %2631 = vmatpush1.bf16.msra.mxu1 %v3406_v56  ;;  %v3498_v62 = vld [vmem:[#allocation9 + $0x2b4] ss:$24 sps:$4 sm:$0xff]   ;;  %v3493_v56 = vld [vmem:[#allocation9 + $0x5a8] ss:$24 sps:$4 sm:$0xff]  }
 0x1b3   :  { %2641 = vmatprep.subr.bf16.mxu1 %v3411_v31  ;;  %2723 = vmatprep.subr.bf16.mxu0 %v3414_v35  ;;  %v3496_v31 = vld [vmem:[#allocation9 + $0x2b0] ss:$24 sps:$4 sm:$0xff]   ;;  %v3501_v35 = vld [vmem:[#allocation9 + $0x5dc] ss:$24 sps:$4 sm:$0xff]  }
 0x1b5   :  { %2592 = vmatmul.mubr.bf16.vlgmr.msra.gmra.mrb[0].mxu0 %v4277_v57  ;;  %2633 = vmatmul.mubr.bf16.vlgmr.msra.gmra.mrb[4].mxu1 %v4263_v60 }
 0x1b6   :  { %2642 = vmatpush1.bf16.msra.mxu1 %v3409_v55  ;;  %2673 = vmatprep.mubr.bf16.mxu1 %v4261_v46  ;;  %v3504_v55 = vld [vmem:[#allocation9 + $0x2e4] ss:$24 sps:$4 sm:$0xff]  }
 0x1b7   :  { %2724 = vmatpush1.bf16.msra.mxu0 %v3412_v6  ;;  %2755 = vmatprep.mubr.bf16.mxu0 %v4259_v12  ;;  %v3438_v12 = vld [vmem:[#allocation9 + $0xd4] ss:$24 sps:$4 sm:$0xff]   ;;  %v3499_v6 = vld [vmem:[#allocation9 + $0x5d8] ss:$24 sps:$4 sm:$0xff]  }
 0x1b8   :  { %2643 = vmatprep.subr.bf16.mxu1 %v3417_v48  ;;  %2725 = vmatprep.subr.bf16.mxu0 %v3420_v19  ;;  %v3502_v48 = vld [vmem:[#allocation9 + $0x2e0] ss:$24 sps:$4 sm:$0xff]   ;;  %v3507_v19 = vld [vmem:[#allocation9 + $0x60c] ss:$24 sps:$4 sm:$0xff]  }
 0x1ba   :  { %2644 = vmatpush1.bf16.msra.mxu1 %v3415_v44  ;;  %v3510_v44 = vld [vmem:[#allocation9 + $0x314] ss:$24 sps:$4 sm:$0xff]  }
 0x1bb   :  { %2726 = vmatpush1.bf16.msra.mxu0 %v3418_v61  ;;  %2645 = vmatprep.subr.bf16.mxu1 %v3423_v22  ;;  %v3505_v61 = vld [vmem:[#allocation9 + $0x608] ss:$24 sps:$4 sm:$0xff]  }
 0x1bc   :  { %2727 = vmatprep.subr.bf16.mxu0 %v3426_v3  ;;  %v3508_v22 = vld [vmem:[#allocation9 + $0x310] ss:$24 sps:$4 sm:$0xff]   ;;  %v3513_v3 = vld [vmem:[#allocation9 + $0x63c] ss:$24 sps:$4 sm:$0xff]  }
 0x1be   :  { %2646 = vmatpush1.bf16.msra.mxu1 %v3421_v34  ;;  %v3516_v34 = vld [vmem:[#allocation9 + $0x344] ss:$24 sps:$4 sm:$0xff]  }
 0x1bf   :  { %2728 = vmatpush1.bf16.msra.mxu0 %v3424_v29  ;;  %2647 = vmatprep.subr.bf16.mxu1 %v3429_v37  ;;  %v3511_v29 = vld [vmem:[#allocation9 + $0x638] ss:$24 sps:$4 sm:$0xff]  }
 0x1c0   :  { %2729 = vmatprep.subr.bf16.mxu0 %v3432_v27  ;;  %v3514_v37 = vld [vmem:[#allocation9 + $0x340] ss:$24 sps:$4 sm:$0xff]   ;;  %v3519_v27 = vld [vmem:[#allocation9 + $0x66c] ss:$24 sps:$4 sm:$0xff]  }
 0x1c2   :  { %2648 = vmatpush1.bf16.msra.mxu1 %v3427_v36  ;;  %v3522_v36 = vld [vmem:[#allocation9 + $0x374] ss:$24 sps:$4 sm:$0xff]  }
 0x1c3   :  { %2730 = vmatpush1.bf16.msra.mxu0 %v3430_v58  ;;  %2649 = vmatprep.subr.bf16.mxu1 %v3435_v32  ;;  %v3517_v58 = vld [vmem:[#allocation9 + $0x668] ss:$24 sps:$4 sm:$0xff]  }
 0x1c4   :  { %2731 = vmatprep.subr.bf16.mxu0 %v3438_v12  ;;  %v3520_v32 = vld [vmem:[#allocation9 + $0x370] ss:$24 sps:$4 sm:$0xff]   ;;  %v3525_v12 = vld [vmem:[#allocation9 + $0x69c] ss:$24 sps:$4 sm:$0xff]  }
 0x1c6   :  { %2650 = vmatpush1.bf16.msra.mxu1 %v3433_v52  ;;  %v3523_v52 = vld [vmem:[#allocation9 + $0x698] ss:$24 sps:$4 sm:$0xff]  }
 0x1c7   :  { %2732 = vmatpush1.bf16.msra.mxu0 %v3436_v47  ;;  %2651 = vmatprep.subr.bf16.mxu1 %v3441_v2  ;;  %v3526_v47 = vld [vmem:[#allocation9 + $0x3a0] ss:$24 sps:$4 sm:$0xff]   ;;  %v3531_v2 = vld [vmem:[#allocation9 + $0x6cc] ss:$24 sps:$4 sm:$0xff]  }
 0x1c8   :  { %2733 = vmatprep.subr.bf16.mxu0 %v3444_v5  ;;  %v3534_v5 = vld [vmem:[#allocation9 + $0x3d4] ss:$24 sps:$4 sm:$0xff]  }
 0x1ca   :  { %2652 = vmatpush1.bf16.msra.mxu1 %v3439_v30  ;;  %v3532_v30 = vld [vmem:[#allocation9 + $0x3d0] ss:$24 sps:$4 sm:$0xff]  }
 0x1cb   :  { %2734 = vmatpush1.bf16.msra.mxu0 %v3442_v14  ;;  %2653 = vmatprep.subr.bf16.mxu1 %v3447_v24  ;;  %v3537_v14 = vld [vmem:[#allocation9 + $0x6fc] ss:$24 sps:$4 sm:$0xff]  }
 0x1cc   :  { %2735 = vmatprep.subr.bf16.mxu0 %v3450_v59  ;;  %v3540_v24 = vld [vmem:[#allocation9 + $0x404] ss:$24 sps:$4 sm:$0xff]   ;;  %v3535_v59 = vld [vmem:[#allocation9 + $0x6f8] ss:$24 sps:$4 sm:$0xff]  }
 0x1ce   :  { %2654 = vmatpush1.bf16.msra.mxu1 %v3445_v38  ;;  %v3538_v38 = vld [vmem:[#allocation9 + $0x400] ss:$24 sps:$4 sm:$0xff]  }
 0x1cf   :  { %2736 = vmatpush1.bf16.msra.mxu0 %v3448_v17  ;;  %2655 = vmatprep.subr.bf16.mxu1 %v3453_v54  ;;  %v3543_v17 = vld [vmem:[#allocation9 + $0x72c] ss:$24 sps:$4 sm:$0xff]  }
 0x1d0   :  { %2737 = vmatprep.subr.bf16.mxu0 %v3456_v63  ;;  %v3546_v54 = vld [vmem:[#allocation9 + $0x434] ss:$24 sps:$4 sm:$0xff]   ;;  %v3541_v63 = vld [vmem:[#allocation9 + $0x728] ss:$24 sps:$4 sm:$0xff]  }
 0x1d2   :  { %2656 = vmatpush1.bf16.msra.mxu1 %v3451_v42  ;;  %v3544_v42 = vld [vmem:[#allocation9 + $0x430] ss:$24 sps:$4 sm:$0xff]  }
 0x1d3   :  { %2738 = vmatpush1.bf16.msra.mxu0 %v3454_v20  ;;  %2657 = vmatprep.subr.bf16.mxu1 %v3459_v10  ;;  %v3549_v20 = vld [vmem:[#allocation9 + $0x75c] ss:$24 sps:$4 sm:$0xff]  }
 0x1d4   :  { %2739 = vmatprep.subr.bf16.mxu0 %v3462_v39  ;;  %v3552_v10 = vld [vmem:[#allocation9 + $0x464] ss:$24 sps:$4 sm:$0xff]   ;;  %v3547_v39 = vld [vmem:[#allocation9 + $0x758] ss:$24 sps:$4 sm:$0xff]  }
 0x1d6   :  { %2658 = vmatpush1.bf16.msra.mxu1 %v3457_v18  ;;  %v3550_v18 = vld [vmem:[#allocation9 + $0x460] ss:$24 sps:$4 sm:$0xff]  }
 0x1d7   :  { %2740 = vmatpush1.bf16.msra.mxu0 %v3460_v28  ;;  %2659 = vmatprep.subr.bf16.mxu1 %v3465_v0  ;;  %v3555_v28 = vld [vmem:[#allocation9 + $0x78c] ss:$24 sps:$4 sm:$0xff]  }
 0x1d8   :  { %2741 = vmatprep.subr.bf16.mxu0 %v3468_v41  ;;  %v3558_v0 = vld [vmem:[#allocation9 + $0x494] ss:$24 sps:$4 sm:$0xff]   ;;  %v3553_v41 = vld [vmem:[#allocation9 + $0x788] ss:$24 sps:$4 sm:$0xff]  }
 0x1da   :  { %2660 = vmatpush1.bf16.msra.mxu1 %v3463_v1  ;;  %v3556_v1 = vld [vmem:[#allocation9 + $0x490] ss:$24 sps:$4 sm:$0xff]  }
 0x1db   :  { %2742 = vmatpush1.bf16.msra.mxu0 %v3466_v15  ;;  %2661 = vmatprep.subr.bf16.mxu1 %v3471_v43  ;;  %v3561_v15 = vld [vmem:[#allocation9 + $0x7bc] ss:$24 sps:$4 sm:$0xff]  }
 0x1dc   :  { %2743 = vmatprep.subr.bf16.mxu0 %v3474_v11  ;;  %v3564_v43 = vld [vmem:[#allocation9 + $0x4c4] ss:$24 sps:$4 sm:$0xff]   ;;  %v3559_v11 = vld [vmem:[#allocation9 + $0x7b8] ss:$24 sps:$4 sm:$0xff]  }
 0x1de   :  { %2662 = vmatpush1.bf16.msra.mxu1 %v3469_v4  ;;  %v3562_v4 = vld [vmem:[#allocation9 + $0x4c0] ss:$24 sps:$4 sm:$0xff]  }
 0x1df   :  { %2744 = vmatpush1.bf16.msra.mxu0 %v3472_v51  ;;  %2663 = vmatprep.subr.bf16.mxu1 %v3477_v26  ;;  %v3567_v51 = vld [vmem:[#allocation9 + $0x7ec] ss:$24 sps:$4 sm:$0xff]  }
 0x1e0   :  { %2745 = vmatprep.subr.bf16.mxu0 %v3480_v25  ;;  %v3570_v26 = vld [vmem:[#allocation9 + $0x4f4] ss:$24 sps:$4 sm:$0xff]   ;;  %v3565_v25 = vld [vmem:[#allocation9 + $0x7e8] ss:$24 sps:$4 sm:$0xff]  }
 0x1e2   :  { %2664 = vmatpush1.bf16.msra.mxu1 %v3475_v16  ;;  %v3568_v16 = vld [vmem:[#allocation9 + $0x4f0] ss:$24 sps:$4 sm:$0xff]  }
 0x1e3   :  { %2746 = vmatpush1.bf16.msra.mxu0 %v3478_v45  ;;  %2665 = vmatprep.subr.bf16.mxu1 %v3483_v40  ;;  %v3573_v45 = vld [vmem:[#allocation9 + $0x81c] ss:$24 sps:$4 sm:$0xff]  }
 0x1e4   :  { %2747 = vmatprep.subr.bf16.mxu0 %v3486_v23  ;;  %v3576_v40 = vld [vmem:[#allocation9 + $0x524] ss:$24 sps:$4 sm:$0xff]   ;;  %v3571_v23 = vld [vmem:[#allocation9 + $0x818] ss:$24 sps:$4 sm:$0xff]  }
 0x1e6   :  { %2666 = vmatpush1.bf16.msra.mxu1 %v3481_v50  ;;  %v3574_v50 = vld [vmem:[#allocation9 + $0x520] ss:$24 sps:$4 sm:$0xff]  }
 0x1e7   :  { %2748 = vmatpush1.bf16.msra.mxu0 %v3484_v13  ;;  %2667 = vmatprep.subr.bf16.mxu1 %v3489_v9  ;;  %v3579_v13 = vld [vmem:[#allocation9 + $0x84c] ss:$24 sps:$4 sm:$0xff]  }
 0x1e8   :  { %2749 = vmatprep.subr.bf16.mxu0 %v3492_v7  ;;  %v3582_v9 = vld [vmem:[#allocation9 + $0x554] ss:$24 sps:$4 sm:$0xff]   ;;  %v3577_v7 = vld [vmem:[#allocation9 + $0x848] ss:$24 sps:$4 sm:$0xff]  }
 0x1ea   :  { %2668 = vmatpush1.bf16.msra.mxu1 %v3487_v33  ;;  %v3580_v33 = vld [vmem:[#allocation9 + $0x550] ss:$24 sps:$4 sm:$0xff]  }
 0x1eb   :  { %2750 = vmatpush1.bf16.msra.mxu0 %v3490_v49  ;;  %2669 = vmatprep.subr.bf16.mxu1 %v3495_v53  ;;  %v3585_v49 = vld [vmem:[#allocation9 + $0x87c] ss:$24 sps:$4 sm:$0xff]  }
 0x1ec   :  { %2751 = vmatprep.subr.bf16.mxu0 %v3498_v62  ;;  %v3588_v53 = vld [vmem:[#allocation9 + $0x584] ss:$24 sps:$4 sm:$0xff]   ;;  %v3583_v62 = vld [vmem:[#allocation9 + $0x878] ss:$24 sps:$4 sm:$0xff]  }
 0x1ee   :  { %2670 = vmatpush1.bf16.msra.mxu1 %v3493_v56  ;;  %v3586_v56 = vld [vmem:[#allocation9 + $0x580] ss:$24 sps:$4 sm:$0xff]  }
 0x1ef   :  { %2752 = vmatpush1.bf16.msra.mxu0 %v3496_v31  ;;  %2671 = vmatprep.subr.bf16.mxu1 %v3501_v35  ;;  %v3591_v31 = vld [vmem:[#allocation9 + $0x8ac] ss:$24 sps:$4 sm:$0xff]  }
 0x1f0   :  { %2753 = vmatprep.subr.bf16.mxu0 %v3504_v55  ;;  %v3594_v35 = vld [vmem:[#allocation9 + $0x5b4] ss:$24 sps:$4 sm:$0xff]   ;;  %v3589_v55 = vld [vmem:[#allocation9 + $0x8a8] ss:$24 sps:$4 sm:$0xff]  }
 0x1f2   :  { %2672 = vmatpush1.bf16.msra.mxu1 %v3499_v6  ;;  %v3592_v6 = vld [vmem:[#allocation9 + $0x5b0] ss:$24 sps:$4 sm:$0xff]  }
 0x1f3   :  { %2754 = vmatpush1.bf16.msra.mxu0 %v3502_v48  ;;  %2682 = vmatprep.subr.bf16.mxu1 %v3507_v19  ;;  %v3597_v48 = vld [vmem:[#allocation9 + $0x8dc] ss:$24 sps:$4 sm:$0xff]  }
 0x1f4   :  { %2764 = vmatprep.subr.bf16.mxu0 %v3510_v44  ;;  %v3600_v19 = vld [vmem:[#allocation9 + $0x5e4] ss:$24 sps:$4 sm:$0xff]   ;;  %v3595_v44 = vld [vmem:[#allocation9 + $0x8d8] ss:$24 sps:$4 sm:$0xff]  }
 0x1f5   :  { %2674 = vmatmul.mubr.bf16.vlgmr.msra.gmra.mrb[4].mxu1 %v4265_v8 }
 0x1f6   :  { %2756 = vmatmul.mubr.bf16.vlgmr.msra.gmra.mrb[4].mxu0 %v4263_v60  ;;  %2683 = vmatpush1.bf16.msra.mxu1 %v3505_v61  ;;  %v3528_v60 = vld [vmem:[#allocation9 + $0x3a4] ss:$24 sps:$4 sm:$0xff]   ;;  %v3598_v61 = vld [vmem:[#allocation9 + $0x5e0] ss:$24 sps:$4 sm:$0xff]  }
 0x1f7   :  { %2714 = vmatprep.mubr.bf16.mxu1 %v4271_v21  ;;  %2765 = vmatpush1.bf16.msra.mxu0 %v3508_v22  ;;  %v3603_v22 = vld [vmem:[#allocation9 + $0x614] ss:$24 sps:$4 sm:$0xff]  }
 0x1f8   :  { %2796 = vmatprep.mubr.bf16.mxu0 %v4261_v46  ;;  %2684 = vmatprep.subr.bf16.mxu1 %v3513_v3  ;;  %v3529_v46 = vld [vmem:[#allocation9 + $0x6c8] ss:$24 sps:$4 sm:$0xff]  }
 0x1f9   :  { %2766 = vmatprep.subr.bf16.mxu0 %v3516_v34  ;;  %v3601_v3 = vld [vmem:[#allocation9 + $0x610] ss:$24 sps:$4 sm:$0xff]   ;;  %v3606_v34 = vld [vmem:[#allocation9 + $0x644] ss:$24 sps:$4 sm:$0xff]  }
 0x1fa   :  { %2685 = vmatpush1.bf16.msra.mxu1 %v3511_v29  ;;  %v3604_v29 = vld [vmem:[#allocation9 + $0x640] ss:$24 sps:$4 sm:$0xff]  }
 0x1fb   :  { %2767 = vmatpush1.bf16.msra.mxu0 %v3514_v37  ;;  %2686 = vmatprep.subr.bf16.mxu1 %v3519_v27  ;;  %v3609_v37 = vld [vmem:[#allocation9 + $0x674] ss:$24 sps:$4 sm:$0xff]   ;;  %v3607_v27 = vld [vmem:[#allocation9 + $0x670] ss:$24 sps:$4 sm:$0xff]  }
 0x1fc   :  { %2768 = vmatprep.subr.bf16.mxu0 %v3522_v36  ;;  %v3612_v36 = vld [vmem:[#allocation9 + $0x6a4] ss:$24 sps:$4 sm:$0xff]  }
 0x1fe   :  { %2687 = vmatpush1.bf16.msra.mxu1 %v3517_v58  ;;  %v3610_v58 = vld [vmem:[#allocation9 + $0x6a0] ss:$24 sps:$4 sm:$0xff]  }
 0x1ff   :  { %2769 = vmatpush1.bf16.msra.mxu0 %v3520_v32  ;;  %2688 = vmatprep.subr.bf16.mxu1 %v3525_v12  ;;  %v3615_v32 = vld [vmem:[#allocation9 + $0x6d4] ss:$24 sps:$4 sm:$0xff]   ;;  %v4290_v12 = vld [vmem:[#allocation10] sm:$0x3f] }
 0x200   :  { %2770 = vmatprep.subr.bf16.mxu0 %v3528_v60  ;;  %v3613_v60 = vld [vmem:[#allocation9 + $0x6d0] ss:$24 sps:$4 sm:$0xff]  }
 0x202   :  { %2689 = vmatpush1.bf16.msra.mxu1 %v3523_v52  ;;  %v4396_v52 = vld [vmem:[#allocation17_spill] sm:$0xff] }
 0x203   :  { %2771 = vmatpush1.bf16.msra.mxu0 %v3526_v47  ;;  %2690 = vmatprep.subr.bf16.mxu1 %v3531_v2  ;;  %v4295_v2 = vpop.permute.xlu1 %1028 }
 0x204   :  { %2772 = vmatprep.subr.bf16.mxu0 %v3534_v5  ;;  %v3616_v5 = vld [vmem:[#allocation9 + $0x700] ss:$24 sps:$4 sm:$0xff]  }
 0x206   :  { %2691 = vmatpush1.bf16.msra.mxu1 %v3529_v46 }
 0x207   :  { %2773 = vmatpush1.bf16.msra.mxu0 %v3532_v30  ;;  %2692 = vmatprep.subr.bf16.mxu1 %v3537_v14  ;;  %v3621_v14 = vld [vmem:[#allocation9 + $0x734] ss:$24 sps:$4 sm:$0xff]  }
 0x208   :  { %2774 = vmatprep.subr.bf16.mxu0 %v3540_v24 }
 0x20a   :  { %2693 = vmatpush1.bf16.msra.mxu1 %v3535_v59 }
 0x20b   :  { %2775 = vmatpush1.bf16.msra.mxu0 %v3538_v38  ;;  %2694 = vmatprep.subr.bf16.mxu1 %v3543_v17 }
 0x20c   :  { %2776 = vmatprep.subr.bf16.mxu0 %v3546_v54  ;;  %v3619_v54 = vld [vmem:[#allocation9 + $0x730] ss:$24 sps:$4 sm:$0xff]  }
 0x20e   :  { %2695 = vmatpush1.bf16.msra.mxu1 %v3541_v63  ;;  %v3624_v63 = vld [vmem:[#allocation9 + $0x764] ss:$24 sps:$4 sm:$0xff]  }
 0x20f   :  { %2777 = vmatpush1.bf16.msra.mxu0 %v3544_v42  ;;  %2696 = vmatprep.subr.bf16.mxu1 %v3549_v20  ;;  %v3622_v42 = vld [vmem:[#allocation9 + $0x760] ss:$24 sps:$4 sm:$0xff]   ;;  %v3627_v20 = vld [vmem:[#allocation9 + $0x794] ss:$24 sps:$4 sm:$0xff]  }
 0x210   :  { %2778 = vmatprep.subr.bf16.mxu0 %v3552_v10  ;;  %v3625_v10 = vld [vmem:[#allocation9 + $0x790] ss:$24 sps:$4 sm:$0xff]  }
 0x212   :  { %2697 = vmatpush1.bf16.msra.mxu1 %v3547_v39  ;;  %v3630_v39 = vld [vmem:[#allocation9 + $0x7c4] ss:$24 sps:$4 sm:$0xff]  }
 0x213   :  { %2779 = vmatpush1.bf16.msra.mxu0 %v3550_v18  ;;  %2698 = vmatprep.subr.bf16.mxu1 %v3555_v28  ;;  %v3628_v18 = vld [vmem:[#allocation9 + $0x7c0] ss:$24 sps:$4 sm:$0xff]   ;;  %v3633_v28 = vld [vmem:[#allocation9 + $0x7f4] ss:$24 sps:$4 sm:$0xff]  }
 0x214   :  { %2780 = vmatprep.subr.bf16.mxu0 %v3558_v0  ;;  %v3631_v0 = vld [vmem:[#allocation9 + $0x7f0] ss:$24 sps:$4 sm:$0xff]  }
 0x216   :  { %2699 = vmatpush1.bf16.msra.mxu1 %v3553_v41  ;;  %v3636_v41 = vld [vmem:[#allocation9 + $0x824] ss:$24 sps:$4 sm:$0xff]  }
 0x217   :  { %2781 = vmatpush1.bf16.msra.mxu0 %v3556_v1  ;;  %2700 = vmatprep.subr.bf16.mxu1 %v3561_v15  ;;  %v3634_v1 = vld [vmem:[#allocation9 + $0x820] ss:$24 sps:$4 sm:$0xff]   ;;  %v3639_v15 = vld [vmem:[#allocation9 + $0x854] ss:$24 sps:$4 sm:$0xff]  }
 0x218   :  { %2782 = vmatprep.subr.bf16.mxu0 %v3564_v43  ;;  %v3637_v43 = vld [vmem:[#allocation9 + $0x850] ss:$24 sps:$4 sm:$0xff]  }
 0x21a   :  { %2701 = vmatpush1.bf16.msra.mxu1 %v3559_v11  ;;  %v3642_v11 = vld [vmem:[#allocation9 + $0x884] ss:$24 sps:$4 sm:$0xff]  }
 0x21b   :  { %2783 = vmatpush1.bf16.msra.mxu0 %v3562_v4  ;;  %2702 = vmatprep.subr.bf16.mxu1 %v3567_v51  ;;  %v3640_v4 = vld [vmem:[#allocation9 + $0x880] ss:$24 sps:$4 sm:$0xff]   ;;  %v3645_v51 = vld [vmem:[#allocation9 + $0x8b4] ss:$24 sps:$4 sm:$0xff]  }
 0x21c   :  { %2784 = vmatprep.subr.bf16.mxu0 %v3570_v26  ;;  %v3643_v26 = vld [vmem:[#allocation9 + $0x8b0] ss:$24 sps:$4 sm:$0xff]  }
 0x21e   :  { %2703 = vmatpush1.bf16.msra.mxu1 %v3565_v25  ;;  %v3648_v25 = vld [vmem:[#allocation9 + $0x8e4] ss:$24 sps:$4 sm:$0xff]  }
 0x21f   :  { %2785 = vmatpush1.bf16.msra.mxu0 %v3568_v16  ;;  %2704 = vmatprep.subr.bf16.mxu1 %v3573_v45  ;;  %v3646_v16 = vld [vmem:[#allocation9 + $0x8e0] ss:$24 sps:$4 sm:$0xff]   ;;  %v4398_v45 = vsub.s32 0, %v4396_v52 }
 0x220   :  { %2786 = vmatprep.subr.bf16.mxu0 %v3576_v40 }
 0x221   :  { %v999_v40 = vrot.slane %v4290_v12, %v4398_v45 }
 0x222   :  { %2705 = vmatpush1.bf16.msra.mxu1 %v3571_v23 }
 0x223   :  { %2787 = vmatpush1.bf16.msra.mxu0 %v3574_v50  ;;  %2706 = vmatprep.subr.bf16.mxu1 %v3579_v13  ;;  %v1031_v23 = vmul.f32 %v4295_v2, %v999_v40 }
 0x224   :  { %2788 = vmatprep.subr.bf16.mxu0 %v3582_v9 }
 0x226   :  { %2707 = vmatpush1.bf16.msra.mxu1 %v3577_v7 }
 0x227   :  { %2789 = vmatpush1.bf16.msra.mxu0 %v3580_v33  ;;  %2708 = vmatprep.subr.bf16.mxu1 %v3585_v49 }
 0x228   :  { %2790 = vmatprep.subr.bf16.mxu0 %v3588_v53 }
 0x22a   :  { %2709 = vmatpush1.bf16.msra.mxu1 %v3583_v62 }
 0x22b   :  { %2791 = vmatpush1.bf16.msra.mxu0 %v3586_v56  ;;  %2710 = vmatprep.subr.bf16.mxu1 %v3591_v31 }
 0x22c   :  { %2792 = vmatprep.subr.bf16.mxu0 %v3594_v35 }
 0x22e   :  { %2711 = vmatpush1.bf16.msra.mxu1 %v3589_v55  ;;  %v4399_v55 = vsub.s32 2, %v4396_v52 }
 0x22f   :  { %2793 = vmatpush1.bf16.msra.mxu0 %v3592_v6  ;;  %2712 = vmatprep.subr.bf16.mxu1 %v3597_v48  ;;  %v4400_v48 = vsub.s32 3, %v4396_v52 }
 0x230   :  { %2794 = vmatprep.subr.bf16.mxu0 %v3600_v19 }
 0x231   :  { %v1011_v19 = vrot.slane %v4290_v12, %v4400_v48 }
 0x232   :  { %2713 = vmatpush1.bf16.msra.mxu1 %v3595_v44 }
 0x233   :  { %2795 = vmatpush1.bf16.msra.mxu0 %v3598_v61 }
 0x234   :  { %2805 = vmatprep.subr.bf16.mxu0 %v3603_v22 }
 0x235   :  { %2715 = vmatmul.mubr.bf16.vlgmr.msra.gmra.mrb[4].mxu1 %v4277_v57 }
 0x236   :  { %2797 = vmatmul.mubr.bf16.vlgmr.msra.gmra.mrb[4].mxu0 %v4265_v8  ;;  %v4397_v8 = vsub.s32 1, %v4396_v52 }
 0x237   :  { %2806 = vmatpush1.bf16.msra.mxu0 %v3601_v3  ;;  %2837 = vmatprep.mubr.bf16.mxu0 %v4271_v21  ;;  %v3618_v21 = vld [vmem:[#allocation9 + $0x704] ss:$24 sps:$4 sm:$0xff]   ;;  %v1034_v3 = vmul.f32 %v4295_v2, %v1011_v19 }
 0x238   :  { %2807 = vmatprep.subr.bf16.mxu0 %v3606_v34  ;;  %v1003_v47 = vrot.slane %v4290_v12, %v4397_v8 }
 0x23a   :  { %v1032_v30 = vmul.f32 %v4295_v2, %v1003_v47 }
 0x23b   :  { %2808 = vmatpush1.bf16.msra.mxu0 %v3604_v29 }
 0x23c   :  { %2809 = vmatprep.subr.bf16.mxu0 %v3609_v37  ;;  %v4401_v37 = vsub.s32 4, %v4396_v52 }
 0x23f   :  { %2810 = vmatpush1.bf16.msra.mxu0 %v3607_v27  ;;  %v1015_v27 = vrot.slane %v4290_v12, %v4401_v37 }
 0x240   :  { %2811 = vmatprep.subr.bf16.mxu0 %v3612_v36  ;;  %v4402_v36 = vsub.s32 5, %v4396_v52 }
 0x241   :  { %v1035_v47 = vmul.f32 %v4295_v2, %v1015_v27 }
 0x243   :  { %2812 = vmatpush1.bf16.msra.mxu0 %v3610_v58  ;;  %v1019_v58 = vrot.slane %v4290_v12, %v4402_v36 }
 0x244   :  { %2813 = vmatprep.subr.bf16.mxu0 %v3615_v32 }
 0x247   :  { %2814 = vmatpush1.bf16.msra.mxu0 %v3613_v60 }
 0x248   :  { %v2511_v46 = vpop.f32.mrb[0].mxu1  ;;  %2815 = vmatprep.subr.bf16.mxu0 %v3618_v21 }
 0x249   :  { %v2513_v24 = vpop.f32.mrb[1].mxu1  ;;  %v2512_v50 = vadd.f32 %v2511_v46, %v1031_v23 }
 0x24a   :  { %v2514_v59 = vadd.f32 %v2513_v24, %v1032_v30  ;;  %v2515_v38 = vpop.f32.mrb[2].mxu1 }
 0x24b   :  { %2816 = vmatpush1.bf16.msra.mxu0 %v3616_v5  ;;  %v2516_v17 = vpop.f32.mrb[3].mxu1  ;;  %v1036_v5 = vmul.f32 %v4295_v2, %v1019_v58 }
 0x24c   :  { %2817 = vmatprep.subr.bf16.mxu0 %v3621_v14 }
 0x24f   :  { %2818 = vmatpush1.bf16.msra.mxu0 %v3619_v54 }
 0x250   :  { %2819 = vmatprep.subr.bf16.mxu0 %v3624_v63 }
 0x253   :  { %2820 = vmatpush1.bf16.msra.mxu0 %v3622_v42 }
 0x254   :  { %2821 = vmatprep.subr.bf16.mxu0 %v3627_v20 }
 0x257   :  { %2822 = vmatpush1.bf16.msra.mxu0 %v3625_v10 }
 0x258   :  { %2823 = vmatprep.subr.bf16.mxu0 %v3630_v39 }
 0x25b   :  { %2824 = vmatpush1.bf16.msra.mxu0 %v3628_v18 }
 0x25c   :  { %2825 = vmatprep.subr.bf16.mxu0 %v3633_v28 }
 0x25f   :  { %2826 = vmatpush1.bf16.msra.mxu0 %v3631_v0 }
 0x260   :  { %2827 = vmatprep.subr.bf16.mxu0 %v3636_v41 }
 0x263   :  { %2828 = vmatpush1.bf16.msra.mxu0 %v3634_v1 }
 0x264   :  { %2829 = vmatprep.subr.bf16.mxu0 %v3639_v15 }
 0x267   :  { %2830 = vmatpush1.bf16.msra.mxu0 %v3637_v43 }
 0x268   :  { %2831 = vmatprep.subr.bf16.mxu0 %v3642_v11 }
 0x26b   :  { %2832 = vmatpush1.bf16.msra.mxu0 %v3640_v4 }
 0x26c   :  { %2833 = vmatprep.subr.bf16.mxu0 %v3645_v51 }
 0x26f   :  { %2834 = vmatpush1.bf16.msra.mxu0 %v3643_v26 }
 0x270   :  { %2835 = vmatprep.subr.bf16.mxu0 %v3648_v25 }
 0x273   :  { %2836 = vmatpush1.bf16.msra.mxu0 %v3646_v16 }
 0x276   :  { %2838 = vmatmul.mubr.bf16.vlgmr.msra.gmra.mrb[4].mxu0 %v4277_v57  ;;  %v1007_v57 = vrot.slane %v4290_v12, %v4399_v55 }
 0x278   :  { %v1033_v6 = vmul.f32 %v4295_v2, %v1007_v57 }
 0x288   :  { %v2593_v13 = vpop.f32.mrb[0].mxu0 }
 0x289   :  { %v3179_v9 = vadd.f32 %v2593_v13, %v2512_v50  ;;  %v2595_v7 = vpop.f32.mrb[1].mxu0 }
 0x28a   :  { %v3181_v33 = vadd.f32 %v2595_v7, %v2514_v59  ;;  %v2597_v49 = vpop.f32.mrb[2].mxu0 }
 0x28b   :  { %v2598_v53 = vpop.f32.mrb[3].mxu0  ;;  %v2846_v61 = vmul.f32 %v3179_v9, %v3179_v9 }
 0x28c   :  { %v2847_v22 = vmul.f32 %v3181_v33, %v3181_v33 }
 0x28e   :  { %v2852_v32 = vadd.f32 %v2847_v22, %v2846_v61 }
 0x308   :  { %v2716_v62 = vpop.f32.mrb[4].mxu1 }
 0x309   :  { %v2718_v56 = vpop.f32.mrb[5].mxu1  ;;  %v3182_v44 = vadd.f32 %v2716_v62, %v1033_v6 }
 0x30a   :  { %v2720_v31 = vpop.f32.mrb[6].mxu1  ;;  %v3183_v29 = vadd.f32 %v2718_v56, %v1034_v3 }
 0x30b   :  { %v2721_v35 = vpop.f32.mrb[7].mxu1  ;;  %v2848_v34 = vmul.f32 %v3182_v44, %v3182_v44 }
 0x30c   :  { %v2849_v8 = vmul.f32 %v3183_v29, %v3183_v29 }
 0x30d   :  { %v2853_v60 = vadd.f32 %v2852_v32, %v2848_v34 }
 0x30f   :  { %v2854_v59 = vadd.f32 %v2853_v60, %v2849_v8 }
 0x349   :  { %v2839_v21 = vpop.f32.mrb[4].mxu0 }
 0x34a   :  { %v3184_v46 = vadd.f32 %v2839_v21, %v1035_v47  ;;  %v2841_v30 = vpop.f32.mrb[5].mxu0 }
 0x34b   :  { %v3185_v14 = vadd.f32 %v2841_v30, %v1036_v5  ;;  %v2843_v24 = vpop.f32.mrb[6].mxu0 }
 0x34c   :  { %v2850_v38 = vmul.f32 %v3184_v46, %v3184_v46  ;;  %v2844_v17 = vpop.f32.mrb[7].mxu0 }
 0x34d   :  { %v2851_v54 = vmul.f32 %v3185_v14, %v3185_v14 }
 0x34e   :  { %v2855_v63 = vadd.f32 %v2854_v59, %v2850_v38 }
 0x350   :  { %v2856_v52 = vadd.f32 %v2855_v63, %v2851_v54 }
 0x352   :  { %2857 = vadd.xlane.f32.xlu1 %v2856_v52 }
 0x3df   :  { %v2858_v12 = vpop.xlane.xlu1 %2857 }
 0x3e0   :  { %v2859_v42 = vmax.f32 %v2858_v12, 1e-24 }
 0x3e2   :  { %3651 = vrsqrt.f32 %v2859_v42 }
 0x3ec   :  { %v3652_v20 = vpop.eup %3651 }
 0x3ed   :  { %v2861_v10 = vmul.f32 %v3652_v20, %v3179_v9  ;;  %v2862_v39 = vmul.f32 %v3652_v20, %v3181_v33  ;;  %v2863_v2 = vmul.f32 %v3652_v20, %v3182_v44  ;;  %v2864_v18 = vmul.f32 %v3652_v20, %v3183_v29 }
 0x3ee   :  { %v2865_v28 = vmul.f32 %v3652_v20, %v3184_v46  ;;  %v2866_v0 = vmul.f32 %v3652_v20, %v3185_v14 }
 0x3ef   :  { %2867 = vst [vmem:[#allocation12] sm:$0xff] %v2861_v10  ;;  %2868 = vst [vmem:[#allocation12 + $0x8] sm:$0xff] %v2862_v39 }
 0x3f0   :  { %2869 = vst [vmem:[#allocation12 + $0x10] sm:$0xff] %v2863_v2  ;;  %2870 = vst [vmem:[#allocation12 + $0x18] sm:$0xff] %v2864_v18 }
 0x3f1   :  { %2871 = vst [vmem:[#allocation12 + $0x20] sm:$0xff] %v2865_v28  ;;  %2872 = vst [vmem:[#allocation12 + $0x28] sm:$0xff] %v2866_v0 }
 0x3f2   :  { %3752 = shalt.err (!%p3749_p8)
}
 0x3f3   :  { %s3753_s13 = scalar_lea.hbm %s4335_s4, 768 }
 0x3f4   :  { %p3754_p9 = scmp.ne.s32.totalorder %s4335_s4, %s3753_s13  ;;  %p3757_p10 = scmp.lt.u32.totalorder %s3753_s13, %s4335_s4 }
 0x3f6   :  { %p3759_p11 = pnand %p3757_p10, %p3754_p9 }
 0x3f8   :  { %3762 = shalt.err (!%p3759_p11)
}
 0x3f9   :  { %2882 = dma.vmem_to_hbm [thread:$0]  %s2880_s10, 768, %s4335_s4, [#allocation6]  }
 0x3fa   :  { %3769 = dma.done.wait [#allocation6], 768  }
 0x3fb   :  { %3770 = vsyncadd [#allocation6], 4294966528 }
 0x3fc   :  { %2886 = vsyncpa [#allocation5], 1 }
 0x3fd   :  { %2887 = vsyncpa [#allocation8], 1 }
 0x3fe   :  { %2888 = vsyncpa [#allocation11], 1 }
 0x3ff   :  { %2889 = vsyncpa [#allocation6], 1 }

</bundles_post_ra>
